<compile_context>
chip_gen: v7x
topology: tpu7x:2x2x1
jax: 0.10.0
libtpu: 0.0.40
codegen_flags: <defaults>
</compile_context>

<pallas_src>
import jax
import jax.numpy as jnp
from jax.experimental import pallas as pl
from jax.experimental.pallas import tpu as pltpu

# ----------------------------- configuration -----------------------------
B = 2                 # batch
IMG_H = IMG_W = 16    # small image (stands in for 128x128)
PATCH = 4             # patch size -> 4x4 = 16 image tokens
N_IMG = (IMG_H // PATCH) * (IMG_W // PATCH)
PATCH_DIM = 3 * PATCH * PATCH
IMG_FEAT_DIM = 36     # != EMBED_DIM so img_proj is a real Linear
EMBED_DIM = 24        # divisible by 3 (ph transformer heads) and 4 (cross attn)
PH_LEN = 16           # stands in for 400
FFN_DIM = 2048        # PyTorch TransformerEncoderLayer default dim_feedforward
NUM_CLASSES = 5
NUM_LAYERS = 3
H_PH = 3              # ph transformer heads
DH_PH = EMBED_DIM // H_PH
H_X = 4               # cross-attention heads
DH_X = EMBED_DIM // H_X
LN_EPS = 1e-5


# ----------------------------- in-kernel helpers -----------------------------
def _layernorm(x, g, b):
    """LayerNorm over the last dim of a 2-D tile. g, b: (1, E)."""
    mean = jnp.mean(x, axis=-1, keepdims=True)
    c = x - mean
    var = jnp.mean(c * c, axis=-1, keepdims=True)
    return c * jax.lax.rsqrt(var + LN_EPS) * g + b


def _mha_heads(x_q, x_kv, wq_ref, bq_ref, wk_ref, bk_ref, wv_ref, bv_ref,
               wo_ref, num_heads, head_dim, ref_index):
    """Per-head attention with the head merge folded into the output proj.

    wq/wk/wv refs hold (H, E, Dh) blocks, wo holds (H, Dh, E); `ref_index`
    is the (static) leading index tuple selecting the current block.
    Returns the un-biased output projection sum, shape (rows(x_q), E).
    """
    scale = 1.0 / (head_dim ** 0.5)
    acc = jnp.zeros((x_q.shape[0], EMBED_DIM), jnp.float32)
    for h in range(num_heads):
        idx = ref_index + (h,)
        qh = jnp.dot(x_q, wq_ref[idx], preferred_element_type=jnp.float32) + bq_ref[idx]
        kh = jnp.dot(x_kv, wk_ref[idx], preferred_element_type=jnp.float32) + bk_ref[idx]
        vh = jnp.dot(x_kv, wv_ref[idx], preferred_element_type=jnp.float32) + bv_ref[idx]
        # q @ k^T without materializing a transpose: contract last dims.
        s = jax.lax.dot_general(qh, kh, (((1,), (1,)), ((), ())),
                                preferred_element_type=jnp.float32) * scale
        s = s - jnp.max(s, axis=-1, keepdims=True)
        p = jnp.exp(s)
        p = p * pl.reciprocal(jnp.sum(p, axis=-1, keepdims=True), approx=True)
        oh = jnp.dot(p, vh, preferred_element_type=jnp.float32)
        acc = acc + jnp.dot(oh, wo_ref[idx], preferred_element_type=jnp.float32)
    return acc


# --------------------- single fused kernel: whole forward ---------------------
def _toporet_kernel(
        ph_ref, patch_ref,
        embw_ref, embb_ref, png_ref, pnb_ref,
        wq_ref, bq_ref, wk_ref, bk_ref, wv_ref, bv_ref, wo_ref, bo_ref,
        n1g_ref, n1b_ref, l1w_ref, l1b_ref, l2w_ref, l2b_ref,
        n2g_ref, n2b_ref,
        pw_ref, pb_ref, ipw_ref, ipb_ref, poolw_ref, poolb_ref,
        xwq_ref, xbq_ref, xwk_ref, xbk_ref, xwv_ref, xbv_ref, xwo_ref, xbo_ref,
        f1w_ref, f1b_ref, f2w_ref, f2b_ref, clsw_ref, clsb_ref,
        o_ref, x_scr):
    """One grid step = (batch element b, encoder layer li).

    The ph sequence lives in x_scr (VMEM) across the layer axis; the image
    branch + fusion tail run only on the last layer step.
    """
    li = pl.program_id(1)

    # ---------------- ph branch: embed + pre-LN (layer 0 only) ----------------
    @pl.when(li == 0)
    def _init():
        # ph_embed is Linear(1, E): pure broadcast of the scalar token value.
        x0 = ph_ref[0] * embw_ref[...] + embb_ref[...]        # (L,1)*(1,E)->(L,E)
        x_scr[...] = _layernorm(x0, png_ref[...], pnb_ref[...])

    x = x_scr[...]                                            # (L, E)

    # --- multi-head self-attention (post-norm encoder layer) ---
    attn = _mha_heads(x, x, wq_ref, bq_ref, wk_ref, bk_ref, wv_ref, bv_ref,
                      wo_ref, H_PH, DH_PH, ref_index=(0,))
    attn = attn + bo_ref[0]
    x = _layernorm(x + attn, n1g_ref[0], n1b_ref[0])

    # --- feed-forward (ReLU) ---
    hdn = jnp.dot(x, l1w_ref[0], preferred_element_type=jnp.float32) + l1b_ref[0]
    hdn = jnp.maximum(hdn, 0.0)
    ffn = jnp.dot(hdn, l2w_ref[0], preferred_element_type=jnp.float32) + l2b_ref[0]
    x = _layernorm(x + ffn, n2g_ref[0], n2b_ref[0])

    x_scr[...] = x

    # ---------------- image branch + fusion tail (last layer only) -------------
    @pl.when(li == NUM_LAYERS - 1)
    def _tail():
        pht = x                                                       # (L, E)

        # image feature stand-in (patch embed) + img_proj
        patches = patch_ref[0]                                        # (N, 48)
        feat = jnp.dot(patches, pw_ref[...],
                       preferred_element_type=jnp.float32) + pb_ref[...]   # (N, 36)
        img_tok = jnp.dot(feat, ipw_ref[...],
                          preferred_element_type=jnp.float32) + ipb_ref[...]  # (N, E)

        # attention pooling over ph tokens (softmax along the sequence axis)
        sc = jnp.dot(pht, poolw_ref[...],
                     preferred_element_type=jnp.float32) + poolb_ref[...]  # (L, 1)
        sc = sc - jnp.max(sc, axis=0, keepdims=True)
        wgt = jnp.exp(sc)
        wgt = wgt * pl.reciprocal(jnp.sum(wgt, axis=0, keepdims=True), approx=True)
        ph_weighted = jnp.sum(pht * wgt, axis=0, keepdims=True)        # (1, E)

        # cross attention: image queries, ph keys/values
        xatt = _mha_heads(img_tok, pht, xwq_ref, xbq_ref, xwk_ref, xbk_ref,
                          xwv_ref, xbv_ref, xwo_ref, H_X, DH_X, ref_index=())
        img_att = xatt + xbo_ref[...]                                  # (N, E)

        ia_mean = jnp.mean(img_att, axis=0, keepdims=True)
        ia_max = jnp.max(img_att, axis=0, keepdims=True)
        it_mean = jnp.mean(img_tok, axis=0, keepdims=True)
        it_max = jnp.max(img_tok, axis=0, keepdims=True)

        # fusion MLP: the (5E, 3E) first weight is pre-split into 5 (E, 3E)
        # blocks so the pooled-feature concat becomes a sum of small matmuls
        # (no lane concatenation inside the kernel).
        f = (jnp.dot(ia_mean, f1w_ref[0], preferred_element_type=jnp.float32)
             + jnp.dot(ia_max, f1w_ref[1], preferred_element_type=jnp.float32)
             + jnp.dot(it_mean, f1w_ref[2], preferred_element_type=jnp.float32)
             + jnp.dot(it_max, f1w_ref[3], preferred_element_type=jnp.float32)
             + jnp.dot(ph_weighted, f1w_ref[4], preferred_element_type=jnp.float32)
             + f1b_ref[...])
        f = jnp.maximum(f, 0.0)
        f = jnp.dot(f, f2w_ref[...], preferred_element_type=jnp.float32) + f2b_ref[...]
        f = jnp.maximum(f, 0.0)
        o_ref[0] = (jnp.dot(f, clsw_ref[...], preferred_element_type=jnp.float32)
                    + clsb_ref[...])


def topo_ret_forward(params, image, ph):
    """(B,3,H,W) image + (B,L) ph -> (B, num_classes) logits; one pallas_call."""
    patches = _extract_patches(image)            # (B, N, 48)  host-side glue
    ph3 = ph.reshape(B, PH_LEN, 1)

    def const_spec(shape):
        zeros = (0,) * len(shape)
        return pl.BlockSpec(tuple(shape), lambda b, li, _z=zeros: _z)

    def layer_spec(shape):
        zeros = (0,) * (len(shape) - 1)
        return pl.BlockSpec((1,) + tuple(shape[1:]),
                            lambda b, li, _z=zeros: (li,) + _z)

    in_specs = [
        pl.BlockSpec((1, PH_LEN, 1), lambda b, li: (b, 0, 0)),          # ph
        pl.BlockSpec((1, N_IMG, PATCH_DIM), lambda b, li: (b, 0, 0)),   # patches
        const_spec(params["ph_embed_w"].shape),
        const_spec(params["ph_embed_b"].shape),
        const_spec(params["ph_norm_g"].shape),
        const_spec(params["ph_norm_b"].shape),
        layer_spec(params["ph_wq"].shape), layer_spec(params["ph_bq"].shape),
        layer_spec(params["ph_wk"].shape), layer_spec(params["ph_bk"].shape),
        layer_spec(params["ph_wv"].shape), layer_spec(params["ph_bv"].shape),
        layer_spec(params["ph_wo"].shape), layer_spec(params["ph_bo"].shape),
        layer_spec(params["ph_n1g"].shape), layer_spec(params["ph_n1b"].shape),
        layer_spec(params["ph_l1w"].shape), layer_spec(params["ph_l1b"].shape),
        layer_spec(params["ph_l2w"].shape), layer_spec(params["ph_l2b"].shape),
        layer_spec(params["ph_n2g"].shape), layer_spec(params["ph_n2b"].shape),
        const_spec(params["patch_w"].shape), const_spec(params["patch_b"].shape),
        const_spec(params["img_proj_w"].shape), const_spec(params["img_proj_b"].shape),
        const_spec(params["pool_w"].shape), const_spec(params["pool_b"].shape),
        const_spec(params["x_wq"].shape), const_spec(params["x_bq"].shape),
        const_spec(params["x_wk"].shape), const_spec(params["x_bk"].shape),
        const_spec(params["x_wv"].shape), const_spec(params["x_bv"].shape),
        const_spec(params["x_wo"].shape), const_spec(params["x_bo"].shape),
        const_spec(params["fuse1_w"].shape), const_spec(params["fuse1_b"].shape),
        const_spec(params["fuse2_w"].shape), const_spec(params["fuse2_b"].shape),
        const_spec(params["cls_w"].shape), const_spec(params["cls_b"].shape),
    ]

    out = pl.pallas_call(
        _toporet_kernel,
        out_shape=jax.ShapeDtypeStruct((B, 1, NUM_CLASSES), jnp.float32),
        grid=(B, NUM_LAYERS),
        in_specs=in_specs,
        out_specs=pl.BlockSpec((1, 1, NUM_CLASSES), lambda b, li: (b, 0, 0)),
        scratch_shapes=[pltpu.VMEM((PH_LEN, EMBED_DIM), jnp.float32)],
        compiler_params=pltpu.CompilerParams(
            dimension_semantics=("parallel", "arbitrary")),
    )(ph3, patches,
      params["ph_embed_w"], params["ph_embed_b"],
      params["ph_norm_g"], params["ph_norm_b"],
      params["ph_wq"], params["ph_bq"], params["ph_wk"], params["ph_bk"],
      params["ph_wv"], params["ph_bv"], params["ph_wo"], params["ph_bo"],
      params["ph_n1g"], params["ph_n1b"],
      params["ph_l1w"], params["ph_l1b"], params["ph_l2w"], params["ph_l2b"],
      params["ph_n2g"], params["ph_n2b"],
      params["patch_w"], params["patch_b"],
      params["img_proj_w"], params["img_proj_b"],
      params["pool_w"], params["pool_b"],
      params["x_wq"], params["x_bq"], params["x_wk"], params["x_bk"],
      params["x_wv"], params["x_bv"], params["x_wo"], params["x_bo"],
      params["fuse1_w"], params["fuse1_b"], params["fuse2_w"], params["fuse2_b"],
      params["cls_w"], params["cls_b"])
    return out.reshape(B, NUM_CLASSES)


# ----------------------------- parameter init -----------------------------
def _init_linear(key, in_dim, out_dim, scale=0.05):
    kw, kb = jax.random.split(key)
    w = jax.random.normal(kw, (in_dim, out_dim), jnp.float32) * scale
    b = jax.random.normal(kb, (1, out_dim), jnp.float32) * scale
    return w, b


def _split_heads_w(w, num_heads):
    # (E_in, E_out) -> (H, E_in, Dh): per-head column block of the projection
    e_in, e_out = w.shape
    dh = e_out // num_heads
    return w.reshape(e_in, num_heads, dh).transpose(1, 0, 2)


def _split_heads_b(b, num_heads):
    # (1, E_out) -> (H, 1, Dh)
    e_out = b.shape[-1]
    dh = e_out // num_heads
    return b.reshape(num_heads, dh)[:, None, :]


def _split_out_w(w, num_heads):
    # output projection (E_in, E_out), rows grouped per head -> (H, Dh, E_out)
    e_in, e_out = w.shape
    dh = e_in // num_heads
    return w.reshape(num_heads, dh, e_out)


def init_params(key):
    keys = jax.random.split(key, 12)
    p = {}
    # stand-in for swin patch embedding (image feature extractor)
    p["patch_w"], p["patch_b"] = _init_linear(keys[0], PATCH_DIM, IMG_FEAT_DIM)
    # img_proj (img_feat_dim != embed_dim -> real Linear)
    p["img_proj_w"], p["img_proj_b"] = _init_linear(keys[1], IMG_FEAT_DIM,
                                                    EMBED_DIM)
    # ph_embed: Linear(1, embed_dim)
    p["ph_embed_w"], p["ph_embed_b"] = _init_linear(keys[2], 1, EMBED_DIM)
    # ph_norm
    p["ph_norm_g"] = jnp.ones((1, EMBED_DIM), jnp.float32)
    p["ph_norm_b"] = jnp.zeros((1, EMBED_DIM), jnp.float32)

    # ph_transformer: 3 encoder layers, weights stacked along a leading layer
    # axis, attention projections stored per-head.
    names = ("wq", "bq", "wk", "bk", "wv", "bv", "wo", "bo",
             "n1g", "n1b", "l1w", "l1b", "l2w", "l2b", "n2g", "n2b")
    stacks = {k: [] for k in names}
    for li in range(NUM_LAYERS):
        lk = jax.random.split(keys[3 + li], 6)
        wq, bq = _init_linear(lk[0], EMBED_DIM, EMBED_DIM)
        wk, bk = _init_linear(lk[1], EMBED_DIM, EMBED_DIM)
        wv, bv = _init_linear(lk[2], EMBED_DIM, EMBED_DIM)
        wo, bo = _init_linear(lk[3], EMBED_DIM, EMBED_DIM)
        l1w, l1b = _init_linear(lk[4], EMBED_DIM, FFN_DIM)
        l2w, l2b = _init_linear(lk[5], FFN_DIM, EMBED_DIM)
        stacks["wq"].append(_split_heads_w(wq, H_PH))
        stacks["bq"].append(_split_heads_b(bq, H_PH))
        stacks["wk"].append(_split_heads_w(wk, H_PH))
        stacks["bk"].append(_split_heads_b(bk, H_PH))
        stacks["wv"].append(_split_heads_w(wv, H_PH))
        stacks["bv"].append(_split_heads_b(bv, H_PH))
        stacks["wo"].append(_split_out_w(wo, H_PH))
        stacks["bo"].append(bo)
        stacks["n1g"].append(jnp.ones((1, EMBED_DIM), jnp.float32))
        stacks["n1b"].append(jnp.zeros((1, EMBED_DIM), jnp.float32))
        stacks["l1w"].append(l1w)
        stacks["l1b"].append(l1b)
        stacks["l2w"].append(l2w)
        stacks["l2b"].append(l2b)
        stacks["n2g"].append(jnp.ones((1, EMBED_DIM), jnp.float32))
        stacks["n2b"].append(jnp.zeros((1, EMBED_DIM), jnp.float32))
    for k in names:
        p["ph_" + k] = jnp.stack(stacks[k], axis=0)

    # ph_pool_attn
    p["pool_w"], p["pool_b"] = _init_linear(keys[6], EMBED_DIM, 1)
    # cross_attn_img (cross_attn_ph exists in __init__ but is unused in forward)
    kx = jax.random.split(keys[7], 4)
    xwq, xbq = _init_linear(kx[0], EMBED_DIM, EMBED_DIM)
    xwk, xbk = _init_linear(kx[1], EMBED_DIM, EMBED_DIM)
    xwv, xbv = _init_linear(kx[2], EMBED_DIM, EMBED_DIM)
    xwo, xbo = _init_linear(kx[3], EMBED_DIM, EMBED_DIM)
    p["x_wq"], p["x_bq"] = _split_heads_w(xwq, H_X), _split_heads_b(xbq, H_X)
    p["x_wk"], p["x_bk"] = _split_heads_w(xwk, H_X), _split_heads_b(xbk, H_X)
    p["x_wv"], p["x_bv"] = _split_heads_w(xwv, H_X), _split_heads_b(xbv, H_X)
    p["x_wo"], p["x_bo"] = _split_out_w(xwo, H_X), xbo
    # fusion_mlp (first weight split into the 5 concatenated feature blocks:
    # [img_att_mean, img_att_max, img_tok_mean, img_tok_max, ph_weighted])
    f1w, f1b = _init_linear(keys[8], 5 * EMBED_DIM, 3 * EMBED_DIM)
    p["fuse1_w"] = f1w.reshape(5, EMBED_DIM, 3 * EMBED_DIM)
    p["fuse1_b"] = f1b
    p["fuse2_w"], p["fuse2_b"] = _init_linear(keys[9], 3 * EMBED_DIM,
                                              3 * EMBED_DIM)
    # classifier
    p["cls_w"], p["cls_b"] = _init_linear(keys[10], 3 * EMBED_DIM, NUM_CLASSES)
    return p


# ----------------------------- input glue -----------------------------
def _extract_patches(image):
    """NCHW image -> (B, N_IMG, 3*PATCH*PATCH) patch vectors (layout glue)."""
    b, c, h, w = image.shape
    hn, wn = h // PATCH, w // PATCH
    patches = image.reshape(b, c, hn, PATCH, wn, PATCH)
    return patches.transpose(0, 2, 4, 1, 3, 5).reshape(b, hn * wn,
                                                       c * PATCH * PATCH)


# ----------------------------- main -----------------------------
if __name__ == "__main__":
    key = jax.random.PRNGKey(0)
    k_img, k_ph, k_par = jax.random.split(key, 3)
    image = jax.random.normal(k_img, (B, 3, IMG_H, IMG_W), jnp.float32)
    ph = jax.random.normal(k_ph, (B, PH_LEN), jnp.float32)
    params = init_params(k_par)

    fwd = jax.jit(topo_ret_forward)
    logits = fwd(params, image, ph)
    jax.block_until_ready(logits)
    assert logits.shape == (B, NUM_CLASSES)
    print("KERNEL_OK")
</pallas_src>

<mosaic_0001>
module attributes {stable_mosaic.version = 11 : i64} {
  func.func @_toporet_kernel(%arg0: i32, %arg1: i32, %arg2: memref<1x16x1xf32, #tpu.memory_space<vmem>>, %arg3: memref<1x16x48xf32, #tpu.memory_space<vmem>>, %arg4: memref<1x24xf32, #tpu.memory_space<vmem>>, %arg5: memref<1x24xf32, #tpu.memory_space<vmem>>, %arg6: memref<1x24xf32, #tpu.memory_space<vmem>>, %arg7: memref<1x24xf32, #tpu.memory_space<vmem>>, %arg8: memref<1x3x24x8xf32, #tpu.memory_space<vmem>>, %arg9: memref<1x3x1x8xf32, #tpu.memory_space<vmem>>, %arg10: memref<1x3x24x8xf32, #tpu.memory_space<vmem>>, %arg11: memref<1x3x1x8xf32, #tpu.memory_space<vmem>>, %arg12: memref<1x3x24x8xf32, #tpu.memory_space<vmem>>, %arg13: memref<1x3x1x8xf32, #tpu.memory_space<vmem>>, %arg14: memref<1x3x8x24xf32, #tpu.memory_space<vmem>>, %arg15: memref<1x1x24xf32, #tpu.memory_space<vmem>>, %arg16: memref<1x1x24xf32, #tpu.memory_space<vmem>>, %arg17: memref<1x1x24xf32, #tpu.memory_space<vmem>>, %arg18: memref<1x24x2048xf32, #tpu.memory_space<vmem>>, %arg19: memref<1x1x2048xf32, #tpu.memory_space<vmem>>, %arg20: memref<1x2048x24xf32, #tpu.memory_space<vmem>>, %arg21: memref<1x1x24xf32, #tpu.memory_space<vmem>>, %arg22: memref<1x1x24xf32, #tpu.memory_space<vmem>>, %arg23: memref<1x1x24xf32, #tpu.memory_space<vmem>>, %arg24: memref<48x36xf32, #tpu.memory_space<vmem>>, %arg25: memref<1x36xf32, #tpu.memory_space<vmem>>, %arg26: memref<36x24xf32, #tpu.memory_space<vmem>>, %arg27: memref<1x24xf32, #tpu.memory_space<vmem>>, %arg28: memref<24x1xf32, #tpu.memory_space<vmem>>, %arg29: memref<1x1xf32, #tpu.memory_space<vmem>>, %arg30: memref<4x24x6xf32, #tpu.memory_space<vmem>>, %arg31: memref<4x1x6xf32, #tpu.memory_space<vmem>>, %arg32: memref<4x24x6xf32, #tpu.memory_space<vmem>>, %arg33: memref<4x1x6xf32, #tpu.memory_space<vmem>>, %arg34: memref<4x24x6xf32, #tpu.memory_space<vmem>>, %arg35: memref<4x1x6xf32, #tpu.memory_space<vmem>>, %arg36: memref<4x6x24xf32, #tpu.memory_space<vmem>>, %arg37: memref<1x24xf32, #tpu.memory_space<vmem>>, %arg38: memref<5x24x72xf32, #tpu.memory_space<vmem>>, %arg39: memref<1x72xf32, #tpu.memory_space<vmem>>, %arg40: memref<72x72xf32, #tpu.memory_space<vmem>>, %arg41: memref<1x72xf32, #tpu.memory_space<vmem>>, %arg42: memref<72x5xf32, #tpu.memory_space<vmem>>, %arg43: memref<1x5xf32, #tpu.memory_space<vmem>>, %arg44: memref<1x1x5xf32, #tpu.memory_space<vmem>>, %arg45: memref<16x24xf32, #tpu.memory_space<vmem>>) attributes {dimension_semantics = [#tpu.dimension_semantics<parallel>, #tpu.dimension_semantics<arbitrary>], iteration_bounds = array<i64: 2, 3>, scalar_prefetch = 0 : i64, scratch_operands = 1 : i64, tpu.core_type = #tpu.core_type<tc>, window_params = [{transform_indices = @transform_0, window_bounds = array<i64: 1, 16, 1>}, {transform_indices = @transform_1, window_bounds = array<i64: 1, 16, 48>}, {pipeline_mode = #tpu.pipeline_mode<synchronous>, transform_indices = @transform_2, window_bounds = array<i64: 1, 24>}, {pipeline_mode = #tpu.pipeline_mode<synchronous>, transform_indices = @transform_3, window_bounds = array<i64: 1, 24>}, {pipeline_mode = #tpu.pipeline_mode<synchronous>, transform_indices = @transform_4, window_bounds = array<i64: 1, 24>}, {pipeline_mode = #tpu.pipeline_mode<synchronous>, transform_indices = @transform_5, window_bounds = array<i64: 1, 24>}, {transform_indices = @transform_6, window_bounds = array<i64: 1, 3, 24, 8>}, {transform_indices = @transform_7, window_bounds = array<i64: 1, 3, 1, 8>}, {transform_indices = @transform_8, window_bounds = array<i64: 1, 3, 24, 8>}, {transform_indices = @transform_9, window_bounds = array<i64: 1, 3, 1, 8>}, {transform_indices = @transform_10, window_bounds = array<i64: 1, 3, 24, 8>}, {transform_indices = @transform_11, window_bounds = array<i64: 1, 3, 1, 8>}, {transform_indices = @transform_12, window_bounds = array<i64: 1, 3, 8, 24>}, {transform_indices = @transform_13, window_bounds = array<i64: 1, 1, 24>}, {transform_indices = @transform_14, window_bounds = array<i64: 1, 1, 24>}, {transform_indices = @transform_15, window_bounds = array<i64: 1, 1, 24>}, {transform_indices = @transform_16, window_bounds = array<i64: 1, 24, 2048>}, {transform_indices = @transform_17, window_bounds = array<i64: 1, 1, 2048>}, {transform_indices = @transform_18, window_bounds = array<i64: 1, 2048, 24>}, {transform_indices = @transform_19, window_bounds = array<i64: 1, 1, 24>}, {transform_indices = @transform_20, window_bounds = array<i64: 1, 1, 24>}, {transform_indices = @transform_21, window_bounds = array<i64: 1, 1, 24>}, {pipeline_mode = #tpu.pipeline_mode<synchronous>, transform_indices = @transform_22, window_bounds = array<i64: 48, 36>}, {pipeline_mode = #tpu.pipeline_mode<synchronous>, transform_indices = @transform_23, window_bounds = array<i64: 1, 36>}, {pipeline_mode = #tpu.pipeline_mode<synchronous>, transform_indices = @transform_24, window_bounds = array<i64: 36, 24>}, {pipeline_mode = #tpu.pipeline_mode<synchronous>, transform_indices = @transform_25, window_bounds = array<i64: 1, 24>}, {pipeline_mode = #tpu.pipeline_mode<synchronous>, transform_indices = @transform_26, window_bounds = array<i64: 24, 1>}, {pipeline_mode = #tpu.pipeline_mode<synchronous>, transform_indices = @transform_27, window_bounds = array<i64: 1, 1>}, {pipeline_mode = #tpu.pipeline_mode<synchronous>, transform_indices = @transform_28, window_bounds = array<i64: 4, 24, 6>}, {pipeline_mode = #tpu.pipeline_mode<synchronous>, transform_indices = @transform_29, window_bounds = array<i64: 4, 1, 6>}, {pipeline_mode = #tpu.pipeline_mode<synchronous>, transform_indices = @transform_30, window_bounds = array<i64: 4, 24, 6>}, {pipeline_mode = #tpu.pipeline_mode<synchronous>, transform_indices = @transform_31, window_bounds = array<i64: 4, 1, 6>}, {pipeline_mode = #tpu.pipeline_mode<synchronous>, transform_indices = @transform_32, window_bounds = array<i64: 4, 24, 6>}, {pipeline_mode = #tpu.pipeline_mode<synchronous>, transform_indices = @transform_33, window_bounds = array<i64: 4, 1, 6>}, {pipeline_mode = #tpu.pipeline_mode<synchronous>, transform_indices = @transform_34, window_bounds = array<i64: 4, 6, 24>}, {pipeline_mode = #tpu.pipeline_mode<synchronous>, transform_indices = @transform_35, window_bounds = array<i64: 1, 24>}, {pipeline_mode = #tpu.pipeline_mode<synchronous>, transform_indices = @transform_36, window_bounds = array<i64: 5, 24, 72>}, {pipeline_mode = #tpu.pipeline_mode<synchronous>, transform_indices = @transform_37, window_bounds = array<i64: 1, 72>}, {pipeline_mode = #tpu.pipeline_mode<synchronous>, transform_indices = @transform_38, window_bounds = array<i64: 72, 72>}, {pipeline_mode = #tpu.pipeline_mode<synchronous>, transform_indices = @transform_39, window_bounds = array<i64: 1, 72>}, {pipeline_mode = #tpu.pipeline_mode<synchronous>, transform_indices = @transform_40, window_bounds = array<i64: 72, 5>}, {pipeline_mode = #tpu.pipeline_mode<synchronous>, transform_indices = @transform_41, window_bounds = array<i64: 1, 5>}, {transform_indices = @transform_42, window_bounds = array<i64: 1, 1, 5>}]} {
    %c0_i32 = arith.constant 0 : i32
    %0 = arith.cmpi eq, %arg1, %c0_i32 : i32
    %1 = arith.extui %0 : i1 to i32
    %c0_i32_0 = arith.constant 0 : i32
    %2 = arith.cmpi ne, %1, %c0_i32_0 : i32
    scf.if %2 {
      %c0_154 = arith.constant 0 : index
      %c0_155 = arith.constant 0 : index
      %c0_156 = arith.constant 0 : index
      %196 = vector.load %arg2[%c0_154, %c0_155, %c0_156] : memref<1x16x1xf32, #tpu.memory_space<vmem>>, vector<1x16x1xf32>
      %197 = vector.shape_cast %196 : vector<1x16x1xf32> to vector<16x1xf32>
      %c0_157 = arith.constant 0 : index
      %c0_158 = arith.constant 0 : index
      %198 = vector.load %arg4[%c0_157, %c0_158] : memref<1x24xf32, #tpu.memory_space<vmem>>, vector<1x24xf32>
      %199 = vector.broadcast %197 : vector<16x1xf32> to vector<16x24xf32>
      %200 = vector.broadcast %198 : vector<1x24xf32> to vector<16x24xf32>
      %201 = arith.mulf %199, %200 : vector<16x24xf32>
      %c0_159 = arith.constant 0 : index
      %c0_160 = arith.constant 0 : index
      %202 = vector.load %arg5[%c0_159, %c0_160] : memref<1x24xf32, #tpu.memory_space<vmem>>, vector<1x24xf32>
      %203 = vector.broadcast %202 : vector<1x24xf32> to vector<16x24xf32>
      %204 = arith.addf %201, %203 : vector<16x24xf32>
      %c0_161 = arith.constant 0 : index
      %c0_162 = arith.constant 0 : index
      %205 = vector.load %arg6[%c0_161, %c0_162] : memref<1x24xf32, #tpu.memory_space<vmem>>, vector<1x24xf32>
      %c0_163 = arith.constant 0 : index
      %c0_164 = arith.constant 0 : index
      %206 = vector.load %arg7[%c0_163, %c0_164] : memref<1x24xf32, #tpu.memory_space<vmem>>, vector<1x24xf32>
      %cst_165 = arith.constant dense<0.000000e+00> : vector<16xf32>
      %207 = vector.multi_reduction <add>, %204, %cst_165 [1] : vector<16x24xf32> to vector<16xf32>
      %208 = vector.shape_cast %207 : vector<16xf32> to vector<16x1xf32>
      %cst_166 = arith.constant 2.400000e+01 : f32
      %209 = vector.broadcast %cst_166 : f32 to vector<16x1xf32>
      %210 = arith.divf %208, %209 : vector<16x1xf32>
      %211 = vector.broadcast %210 : vector<16x1xf32> to vector<16x24xf32>
      %212 = arith.subf %204, %211 : vector<16x24xf32>
      %213 = arith.mulf %212, %212 : vector<16x24xf32>
      %cst_167 = arith.constant dense<0.000000e+00> : vector<16xf32>
      %214 = vector.multi_reduction <add>, %213, %cst_167 [1] : vector<16x24xf32> to vector<16xf32>
      %215 = vector.shape_cast %214 : vector<16xf32> to vector<16x1xf32>
      %cst_168 = arith.constant 2.400000e+01 : f32
      %216 = vector.broadcast %cst_168 : f32 to vector<16x1xf32>
      %217 = arith.divf %215, %216 : vector<16x1xf32>
      %cst_169 = arith.constant 9.99999974E-6 : f32
      %218 = vector.broadcast %cst_169 : f32 to vector<16x1xf32>
      %219 = arith.addf %217, %218 : vector<16x1xf32>
      %220 = math.rsqrt %219 : vector<16x1xf32>
      %221 = vector.broadcast %220 : vector<16x1xf32> to vector<16x24xf32>
      %222 = arith.mulf %212, %221 : vector<16x24xf32>
      %223 = vector.broadcast %205 : vector<1x24xf32> to vector<16x24xf32>
      %224 = arith.mulf %222, %223 : vector<16x24xf32>
      %225 = vector.broadcast %206 : vector<1x24xf32> to vector<16x24xf32>
      %226 = arith.addf %224, %225 : vector<16x24xf32>
      %c0_170 = arith.constant 0 : index
      %c0_171 = arith.constant 0 : index
      %227 = vector.load %arg45[%c0_170, %c0_171] : memref<16x24xf32, #tpu.memory_space<vmem>>, vector<16x24xf32>
      tpu.vector_store %arg45[%c0_170, %c0_171], %226 {strides = array<i32>} : memref<16x24xf32, #tpu.memory_space<vmem>>, vector<16x24xf32>,
    } else {
    }
    %c0 = arith.constant 0 : index
    %c0_1 = arith.constant 0 : index
    %3 = vector.load %arg45[%c0, %c0_1] : memref<16x24xf32, #tpu.memory_space<vmem>>, vector<16x24xf32>
    %cst = arith.constant 0.000000e+00 : f32
    %4 = vector.broadcast %cst : f32 to vector<16x24xf32>
    %c0_2 = arith.constant 0 : index
    %c0_3 = arith.constant 0 : index
    %c0_4 = arith.constant 0 : index
    %c0_5 = arith.constant 0 : index
    %5 = vector.load %arg8[%c0_2, %c0_3, %c0_4, %c0_5] : memref<1x3x24x8xf32, #tpu.memory_space<vmem>>, vector<1x1x24x8xf32>
    %6 = vector.shape_cast %5 : vector<1x1x24x8xf32> to vector<24x8xf32>
    %cst_6 = arith.constant dense<0.000000e+00> : vector<16x8xf32>
    %7 = tpu.matmul %3, %6, %cst_6 {dimension_numbers = #tpu.dot_dimension_numbers<[1], [0], [0], [1], [0, 0, 1, 1], [], []>} : vector<16x24xf32>, vector<24x8xf32>, vector<16x8xf32> -> vector<16x8xf32>
    %c0_7 = arith.constant 0 : index
    %c0_8 = arith.constant 0 : index
    %c0_9 = arith.constant 0 : index
    %c0_10 = arith.constant 0 : index
    %8 = vector.load %arg9[%c0_7, %c0_8, %c0_9, %c0_10] : memref<1x3x1x8xf32, #tpu.memory_space<vmem>>, vector<1x1x1x8xf32>
    %9 = vector.shape_cast %8 : vector<1x1x1x8xf32> to vector<1x8xf32>
    %10 = vector.broadcast %9 : vector<1x8xf32> to vector<16x8xf32>
    %11 = arith.addf %7, %10 : vector<16x8xf32>
    %c0_11 = arith.constant 0 : index
    %c0_12 = arith.constant 0 : index
    %c0_13 = arith.constant 0 : index
    %c0_14 = arith.constant 0 : index
    %12 = vector.load %arg10[%c0_11, %c0_12, %c0_13, %c0_14] : memref<1x3x24x8xf32, #tpu.memory_space<vmem>>, vector<1x1x24x8xf32>
    %13 = vector.shape_cast %12 : vector<1x1x24x8xf32> to vector<24x8xf32>
    %cst_15 = arith.constant dense<0.000000e+00> : vector<16x8xf32>
    %14 = tpu.matmul %3, %13, %cst_15 {dimension_numbers = #tpu.dot_dimension_numbers<[1], [0], [0], [1], [0, 0, 1, 1], [], []>} : vector<16x24xf32>, vector<24x8xf32>, vector<16x8xf32> -> vector<16x8xf32>
    %c0_16 = arith.constant 0 : index
    %c0_17 = arith.constant 0 : index
    %c0_18 = arith.constant 0 : index
    %c0_19 = arith.constant 0 : index
    %15 = vector.load %arg11[%c0_16, %c0_17, %c0_18, %c0_19] : memref<1x3x1x8xf32, #tpu.memory_space<vmem>>, vector<1x1x1x8xf32>
    %16 = vector.shape_cast %15 : vector<1x1x1x8xf32> to vector<1x8xf32>
    %17 = vector.broadcast %16 : vector<1x8xf32> to vector<16x8xf32>
    %18 = arith.addf %14, %17 : vector<16x8xf32>
    %c0_20 = arith.constant 0 : index
    %c0_21 = arith.constant 0 : index
    %c0_22 = arith.constant 0 : index
    %c0_23 = arith.constant 0 : index
    %19 = vector.load %arg12[%c0_20, %c0_21, %c0_22, %c0_23] : memref<1x3x24x8xf32, #tpu.memory_space<vmem>>, vector<1x1x24x8xf32>
    %20 = vector.shape_cast %19 : vector<1x1x24x8xf32> to vector<24x8xf32>
    %cst_24 = arith.constant dense<0.000000e+00> : vector<16x8xf32>
    %21 = tpu.matmul %3, %20, %cst_24 {dimension_numbers = #tpu.dot_dimension_numbers<[1], [0], [0], [1], [0, 0, 1, 1], [], []>} : vector<16x24xf32>, vector<24x8xf32>, vector<16x8xf32> -> vector<16x8xf32>
    %c0_25 = arith.constant 0 : index
    %c0_26 = arith.constant 0 : index
    %c0_27 = arith.constant 0 : index
    %c0_28 = arith.constant 0 : index
    %22 = vector.load %arg13[%c0_25, %c0_26, %c0_27, %c0_28] : memref<1x3x1x8xf32, #tpu.memory_space<vmem>>, vector<1x1x1x8xf32>
    %23 = vector.shape_cast %22 : vector<1x1x1x8xf32> to vector<1x8xf32>
    %24 = vector.broadcast %23 : vector<1x8xf32> to vector<16x8xf32>
    %25 = arith.addf %21, %24 : vector<16x8xf32>
    %cst_29 = arith.constant dense<0.000000e+00> : vector<16x16xf32>
    %26 = tpu.matmul %11, %18, %cst_29 {dimension_numbers = #tpu.dot_dimension_numbers<[1], [1], [0], [0], [0, 0, 1, 0], [], []>} : vector<16x8xf32>, vector<16x8xf32>, vector<16x16xf32> -> vector<16x16xf32>
    %cst_30 = arith.constant 0.353553385 : f32
    %27 = vector.broadcast %cst_30 : f32 to vector<16x16xf32>
    %28 = arith.mulf %26, %27 : vector<16x16xf32>
    %cst_31 = arith.constant dense<0xFF800000> : vector<16xf32>
    %29 = vector.multi_reduction <maximumf>, %28, %cst_31 [1] : vector<16x16xf32> to vector<16xf32>
    %30 = vector.shape_cast %29 : vector<16xf32> to vector<16x1xf32>
    %31 = vector.broadcast %30 : vector<16x1xf32> to vector<16x16xf32>
    %32 = arith.subf %28, %31 : vector<16x16xf32>
    %33 = math.exp %32 : vector<16x16xf32>
    %cst_32 = arith.constant dense<0.000000e+00> : vector<16xf32>
    %34 = vector.multi_reduction <add>, %33, %cst_32 [1] : vector<16x16xf32> to vector<16xf32>
    %35 = vector.shape_cast %34 : vector<16xf32> to vector<16x1xf32>
    %36 = tpu.reciprocal %35 {approx = true} : vector<16x1xf32> -> vector<16x1xf32>
    %37 = vector.broadcast %36 : vector<16x1xf32> to vector<16x16xf32>
    %38 = arith.mulf %33, %37 : vector<16x16xf32>
    %cst_33 = arith.constant dense<0.000000e+00> : vector<16x8xf32>
    %39 = tpu.matmul %38, %25, %cst_33 {dimension_numbers = #tpu.dot_dimension_numbers<[1], [0], [0], [1], [0, 0, 1, 1], [], []>} : vector<16x16xf32>, vector<16x8xf32>, vector<16x8xf32> -> vector<16x8xf32>
    %c0_34 = arith.constant 0 : index
    %c0_35 = arith.constant 0 : index
    %c0_36 = arith.constant 0 : index
    %c0_37 = arith.constant 0 : index
    %40 = vector.load %arg14[%c0_34, %c0_35, %c0_36, %c0_37] : memref<1x3x8x24xf32, #tpu.memory_space<vmem>>, vector<1x1x8x24xf32>
    %41 = vector.shape_cast %40 : vector<1x1x8x24xf32> to vector<8x24xf32>
    %cst_38 = arith.constant dense<0.000000e+00> : vector<16x24xf32>
    %42 = tpu.matmul %39, %41, %cst_38 {dimension_numbers = #tpu.dot_dimension_numbers<[1], [0], [0], [1], [0, 0, 1, 1], [], []>} : vector<16x8xf32>, vector<8x24xf32>, vector<16x24xf32> -> vector<16x24xf32>
    %43 = arith.addf %4, %42 : vector<16x24xf32>
    %c0_39 = arith.constant 0 : index
    %c1 = arith.constant 1 : index
    %c0_40 = arith.constant 0 : index
    %c0_41 = arith.constant 0 : index
    %44 = vector.load %arg8[%c0_39, %c1, %c0_40, %c0_41] : memref<1x3x24x8xf32, #tpu.memory_space<vmem>>, vector<1x1x24x8xf32>
    %45 = vector.shape_cast %44 : vector<1x1x24x8xf32> to vector<24x8xf32>
    %cst_42 = arith.constant dense<0.000000e+00> : vector<16x8xf32>
    %46 = tpu.matmul %3, %45, %cst_42 {dimension_numbers = #tpu.dot_dimension_numbers<[1], [0], [0], [1], [0, 0, 1, 1], [], []>} : vector<16x24xf32>, vector<24x8xf32>, vector<16x8xf32> -> vector<16x8xf32>
    %c0_43 = arith.constant 0 : index
    %c1_44 = arith.constant 1 : index
    %c0_45 = arith.constant 0 : index
    %c0_46 = arith.constant 0 : index
    %47 = vector.load %arg9[%c0_43, %c1_44, %c0_45, %c0_46] : memref<1x3x1x8xf32, #tpu.memory_space<vmem>>, vector<1x1x1x8xf32>
    %48 = vector.shape_cast %47 : vector<1x1x1x8xf32> to vector<1x8xf32>
    %49 = vector.broadcast %48 : vector<1x8xf32> to vector<16x8xf32>
    %50 = arith.addf %46, %49 : vector<16x8xf32>
    %c0_47 = arith.constant 0 : index
    %c1_48 = arith.constant 1 : index
    %c0_49 = arith.constant 0 : index
    %c0_50 = arith.constant 0 : index
    %51 = vector.load %arg10[%c0_47, %c1_48, %c0_49, %c0_50] : memref<1x3x24x8xf32, #tpu.memory_space<vmem>>, vector<1x1x24x8xf32>
    %52 = vector.shape_cast %51 : vector<1x1x24x8xf32> to vector<24x8xf32>
    %cst_51 = arith.constant dense<0.000000e+00> : vector<16x8xf32>
    %53 = tpu.matmul %3, %52, %cst_51 {dimension_numbers = #tpu.dot_dimension_numbers<[1], [0], [0], [1], [0, 0, 1, 1], [], []>} : vector<16x24xf32>, vector<24x8xf32>, vector<16x8xf32> -> vector<16x8xf32>
    %c0_52 = arith.constant 0 : index
    %c1_53 = arith.constant 1 : index
    %c0_54 = arith.constant 0 : index
    %c0_55 = arith.constant 0 : index
    %54 = vector.load %arg11[%c0_52, %c1_53, %c0_54, %c0_55] : memref<1x3x1x8xf32, #tpu.memory_space<vmem>>, vector<1x1x1x8xf32>
    %55 = vector.shape_cast %54 : vector<1x1x1x8xf32> to vector<1x8xf32>
    %56 = vector.broadcast %55 : vector<1x8xf32> to vector<16x8xf32>
    %57 = arith.addf %53, %56 : vector<16x8xf32>
    %c0_56 = arith.constant 0 : index
    %c1_57 = arith.constant 1 : index
    %c0_58 = arith.constant 0 : index
    %c0_59 = arith.constant 0 : index
    %58 = vector.load %arg12[%c0_56, %c1_57, %c0_58, %c0_59] : memref<1x3x24x8xf32, #tpu.memory_space<vmem>>, vector<1x1x24x8xf32>
    %59 = vector.shape_cast %58 : vector<1x1x24x8xf32> to vector<24x8xf32>
    %cst_60 = arith.constant dense<0.000000e+00> : vector<16x8xf32>
    %60 = tpu.matmul %3, %59, %cst_60 {dimension_numbers = #tpu.dot_dimension_numbers<[1], [0], [0], [1], [0, 0, 1, 1], [], []>} : vector<16x24xf32>, vector<24x8xf32>, vector<16x8xf32> -> vector<16x8xf32>
    %c0_61 = arith.constant 0 : index
    %c1_62 = arith.constant 1 : index
    %c0_63 = arith.constant 0 : index
    %c0_64 = arith.constant 0 : index
    %61 = vector.load %arg13[%c0_61, %c1_62, %c0_63, %c0_64] : memref<1x3x1x8xf32, #tpu.memory_space<vmem>>, vector<1x1x1x8xf32>
    %62 = vector.shape_cast %61 : vector<1x1x1x8xf32> to vector<1x8xf32>
    %63 = vector.broadcast %62 : vector<1x8xf32> to vector<16x8xf32>
    %64 = arith.addf %60, %63 : vector<16x8xf32>
    %cst_65 = arith.constant dense<0.000000e+00> : vector<16x16xf32>
    %65 = tpu.matmul %50, %57, %cst_65 {dimension_numbers = #tpu.dot_dimension_numbers<[1], [1], [0], [0], [0, 0, 1, 0], [], []>} : vector<16x8xf32>, vector<16x8xf32>, vector<16x16xf32> -> vector<16x16xf32>
    %cst_66 = arith.constant 0.353553385 : f32
    %66 = vector.broadcast %cst_66 : f32 to vector<16x16xf32>
    %67 = arith.mulf %65, %66 : vector<16x16xf32>
    %cst_67 = arith.constant dense<0xFF800000> : vector<16xf32>
    %68 = vector.multi_reduction <maximumf>, %67, %cst_67 [1] : vector<16x16xf32> to vector<16xf32>
    %69 = vector.shape_cast %68 : vector<16xf32> to vector<16x1xf32>
    %70 = vector.broadcast %69 : vector<16x1xf32> to vector<16x16xf32>
    %71 = arith.subf %67, %70 : vector<16x16xf32>
    %72 = math.exp %71 : vector<16x16xf32>
    %cst_68 = arith.constant dense<0.000000e+00> : vector<16xf32>
    %73 = vector.multi_reduction <add>, %72, %cst_68 [1] : vector<16x16xf32> to vector<16xf32>
    %74 = vector.shape_cast %73 : vector<16xf32> to vector<16x1xf32>
    %75 = tpu.reciprocal %74 {approx = true} : vector<16x1xf32> -> vector<16x1xf32>
    %76 = vector.broadcast %75 : vector<16x1xf32> to vector<16x16xf32>
    %77 = arith.mulf %72, %76 : vector<16x16xf32>
    %cst_69 = arith.constant dense<0.000000e+00> : vector<16x8xf32>
    %78 = tpu.matmul %77, %64, %cst_69 {dimension_numbers = #tpu.dot_dimension_numbers<[1], [0], [0], [1], [0, 0, 1, 1], [], []>} : vector<16x16xf32>, vector<16x8xf32>, vector<16x8xf32> -> vector<16x8xf32>
    %c0_70 = arith.constant 0 : index
    %c1_71 = arith.constant 1 : index
    %c0_72 = arith.constant 0 : index
    %c0_73 = arith.constant 0 : index
    %79 = vector.load %arg14[%c0_70, %c1_71, %c0_72, %c0_73] : memref<1x3x8x24xf32, #tpu.memory_space<vmem>>, vector<1x1x8x24xf32>
    %80 = vector.shape_cast %79 : vector<1x1x8x24xf32> to vector<8x24xf32>
    %cst_74 = arith.constant dense<0.000000e+00> : vector<16x24xf32>
    %81 = tpu.matmul %78, %80, %cst_74 {dimension_numbers = #tpu.dot_dimension_numbers<[1], [0], [0], [1], [0, 0, 1, 1], [], []>} : vector<16x8xf32>, vector<8x24xf32>, vector<16x24xf32> -> vector<16x24xf32>
    %82 = arith.addf %43, %81 : vector<16x24xf32>
    %c0_75 = arith.constant 0 : index
    %c2 = arith.constant 2 : index
    %c0_76 = arith.constant 0 : index
    %c0_77 = arith.constant 0 : index
    %83 = vector.load %arg8[%c0_75, %c2, %c0_76, %c0_77] : memref<1x3x24x8xf32, #tpu.memory_space<vmem>>, vector<1x1x24x8xf32>
    %84 = vector.shape_cast %83 : vector<1x1x24x8xf32> to vector<24x8xf32>
    %cst_78 = arith.constant dense<0.000000e+00> : vector<16x8xf32>
    %85 = tpu.matmul %3, %84, %cst_78 {dimension_numbers = #tpu.dot_dimension_numbers<[1], [0], [0], [1], [0, 0, 1, 1], [], []>} : vector<16x24xf32>, vector<24x8xf32>, vector<16x8xf32> -> vector<16x8xf32>
    %c0_79 = arith.constant 0 : index
    %c2_80 = arith.constant 2 : index
    %c0_81 = arith.constant 0 : index
    %c0_82 = arith.constant 0 : index
    %86 = vector.load %arg9[%c0_79, %c2_80, %c0_81, %c0_82] : memref<1x3x1x8xf32, #tpu.memory_space<vmem>>, vector<1x1x1x8xf32>
    %87 = vector.shape_cast %86 : vector<1x1x1x8xf32> to vector<1x8xf32>
    %88 = vector.broadcast %87 : vector<1x8xf32> to vector<16x8xf32>
    %89 = arith.addf %85, %88 : vector<16x8xf32>
    %c0_83 = arith.constant 0 : index
    %c2_84 = arith.constant 2 : index
    %c0_85 = arith.constant 0 : index
    %c0_86 = arith.constant 0 : index
    %90 = vector.load %arg10[%c0_83, %c2_84, %c0_85, %c0_86] : memref<1x3x24x8xf32, #tpu.memory_space<vmem>>, vector<1x1x24x8xf32>
    %91 = vector.shape_cast %90 : vector<1x1x24x8xf32> to vector<24x8xf32>
    %cst_87 = arith.constant dense<0.000000e+00> : vector<16x8xf32>
    %92 = tpu.matmul %3, %91, %cst_87 {dimension_numbers = #tpu.dot_dimension_numbers<[1], [0], [0], [1], [0, 0, 1, 1], [], []>} : vector<16x24xf32>, vector<24x8xf32>, vector<16x8xf32> -> vector<16x8xf32>
    %c0_88 = arith.constant 0 : index
    %c2_89 = arith.constant 2 : index
    %c0_90 = arith.constant 0 : index
    %c0_91 = arith.constant 0 : index
    %93 = vector.load %arg11[%c0_88, %c2_89, %c0_90, %c0_91] : memref<1x3x1x8xf32, #tpu.memory_space<vmem>>, vector<1x1x1x8xf32>
    %94 = vector.shape_cast %93 : vector<1x1x1x8xf32> to vector<1x8xf32>
    %95 = vector.broadcast %94 : vector<1x8xf32> to vector<16x8xf32>
    %96 = arith.addf %92, %95 : vector<16x8xf32>
    %c0_92 = arith.constant 0 : index
    %c2_93 = arith.constant 2 : index
    %c0_94 = arith.constant 0 : index
    %c0_95 = arith.constant 0 : index
    %97 = vector.load %arg12[%c0_92, %c2_93, %c0_94, %c0_95] : memref<1x3x24x8xf32, #tpu.memory_space<vmem>>, vector<1x1x24x8xf32>
    %98 = vector.shape_cast %97 : vector<1x1x24x8xf32> to vector<24x8xf32>
    %cst_96 = arith.constant dense<0.000000e+00> : vector<16x8xf32>
    %99 = tpu.matmul %3, %98, %cst_96 {dimension_numbers = #tpu.dot_dimension_numbers<[1], [0], [0], [1], [0, 0, 1, 1], [], []>} : vector<16x24xf32>, vector<24x8xf32>, vector<16x8xf32> -> vector<16x8xf32>
    %c0_97 = arith.constant 0 : index
    %c2_98 = arith.constant 2 : index
    %c0_99 = arith.constant 0 : index
    %c0_100 = arith.constant 0 : index
    %100 = vector.load %arg13[%c0_97, %c2_98, %c0_99, %c0_100] : memref<1x3x1x8xf32, #tpu.memory_space<vmem>>, vector<1x1x1x8xf32>
    %101 = vector.shape_cast %100 : vector<1x1x1x8xf32> to vector<1x8xf32>
    %102 = vector.broadcast %101 : vector<1x8xf32> to vector<16x8xf32>
    %103 = arith.addf %99, %102 : vector<16x8xf32>
    %cst_101 = arith.constant dense<0.000000e+00> : vector<16x16xf32>
    %104 = tpu.matmul %89, %96, %cst_101 {dimension_numbers = #tpu.dot_dimension_numbers<[1], [1], [0], [0], [0, 0, 1, 0], [], []>} : vector<16x8xf32>, vector<16x8xf32>, vector<16x16xf32> -> vector<16x16xf32>
    %cst_102 = arith.constant 0.353553385 : f32
    %105 = vector.broadcast %cst_102 : f32 to vector<16x16xf32>
    %106 = arith.mulf %104, %105 : vector<16x16xf32>
    %cst_103 = arith.constant dense<0xFF800000> : vector<16xf32>
    %107 = vector.multi_reduction <maximumf>, %106, %cst_103 [1] : vector<16x16xf32> to vector<16xf32>
    %108 = vector.shape_cast %107 : vector<16xf32> to vector<16x1xf32>
    %109 = vector.broadcast %108 : vector<16x1xf32> to vector<16x16xf32>
    %110 = arith.subf %106, %109 : vector<16x16xf32>
    %111 = math.exp %110 : vector<16x16xf32>
    %cst_104 = arith.constant dense<0.000000e+00> : vector<16xf32>
    %112 = vector.multi_reduction <add>, %111, %cst_104 [1] : vector<16x16xf32> to vector<16xf32>
    %113 = vector.shape_cast %112 : vector<16xf32> to vector<16x1xf32>
    %114 = tpu.reciprocal %113 {approx = true} : vector<16x1xf32> -> vector<16x1xf32>
    %115 = vector.broadcast %114 : vector<16x1xf32> to vector<16x16xf32>
    %116 = arith.mulf %111, %115 : vector<16x16xf32>
    %cst_105 = arith.constant dense<0.000000e+00> : vector<16x8xf32>
    %117 = tpu.matmul %116, %103, %cst_105 {dimension_numbers = #tpu.dot_dimension_numbers<[1], [0], [0], [1], [0, 0, 1, 1], [], []>} : vector<16x16xf32>, vector<16x8xf32>, vector<16x8xf32> -> vector<16x8xf32>
    %c0_106 = arith.constant 0 : index
    %c2_107 = arith.constant 2 : index
    %c0_108 = arith.constant 0 : index
    %c0_109 = arith.constant 0 : index
    %118 = vector.load %arg14[%c0_106, %c2_107, %c0_108, %c0_109] : memref<1x3x8x24xf32, #tpu.memory_space<vmem>>, vector<1x1x8x24xf32>
    %119 = vector.shape_cast %118 : vector<1x1x8x24xf32> to vector<8x24xf32>
    %cst_110 = arith.constant dense<0.000000e+00> : vector<16x24xf32>
    %120 = tpu.matmul %117, %119, %cst_110 {dimension_numbers = #tpu.dot_dimension_numbers<[1], [0], [0], [1], [0, 0, 1, 1], [], []>} : vector<16x8xf32>, vector<8x24xf32>, vector<16x24xf32> -> vector<16x24xf32>
    %121 = arith.addf %82, %120 : vector<16x24xf32>
    %c0_111 = arith.constant 0 : index
    %c0_112 = arith.constant 0 : index
    %c0_113 = arith.constant 0 : index
    %122 = vector.load %arg15[%c0_111, %c0_112, %c0_113] : memref<1x1x24xf32, #tpu.memory_space<vmem>>, vector<1x1x24xf32>
    %123 = vector.shape_cast %122 : vector<1x1x24xf32> to vector<1x24xf32>
    %124 = vector.broadcast %123 : vector<1x24xf32> to vector<16x24xf32>
    %125 = arith.addf %121, %124 : vector<16x24xf32>
    %126 = arith.addf %3, %125 : vector<16x24xf32>
    %c0_114 = arith.constant 0 : index
    %c0_115 = arith.constant 0 : index
    %c0_116 = arith.constant 0 : index
    %127 = vector.load %arg16[%c0_114, %c0_115, %c0_116] : memref<1x1x24xf32, #tpu.memory_space<vmem>>, vector<1x1x24xf32>
    %128 = vector.shape_cast %127 : vector<1x1x24xf32> to vector<1x24xf32>
    %c0_117 = arith.constant 0 : index
    %c0_118 = arith.constant 0 : index
    %c0_119 = arith.constant 0 : index
    %129 = vector.load %arg17[%c0_117, %c0_118, %c0_119] : memref<1x1x24xf32, #tpu.memory_space<vmem>>, vector<1x1x24xf32>
    %130 = vector.shape_cast %129 : vector<1x1x24xf32> to vector<1x24xf32>
    %cst_120 = arith.constant dense<0.000000e+00> : vector<16xf32>
    %131 = vector.multi_reduction <add>, %126, %cst_120 [1] : vector<16x24xf32> to vector<16xf32>
    %132 = vector.shape_cast %131 : vector<16xf32> to vector<16x1xf32>
    %cst_121 = arith.constant 2.400000e+01 : f32
    %133 = vector.broadcast %cst_121 : f32 to vector<16x1xf32>
    %134 = arith.divf %132, %133 : vector<16x1xf32>
    %135 = vector.broadcast %134 : vector<16x1xf32> to vector<16x24xf32>
    %136 = arith.subf %126, %135 : vector<16x24xf32>
    %137 = arith.mulf %136, %136 : vector<16x24xf32>
    %cst_122 = arith.constant dense<0.000000e+00> : vector<16xf32>
    %138 = vector.multi_reduction <add>, %137, %cst_122 [1] : vector<16x24xf32> to vector<16xf32>
    %139 = vector.shape_cast %138 : vector<16xf32> to vector<16x1xf32>
    %cst_123 = arith.constant 2.400000e+01 : f32
    %140 = vector.broadcast %cst_123 : f32 to vector<16x1xf32>
    %141 = arith.divf %139, %140 : vector<16x1xf32>
    %cst_124 = arith.constant 9.99999974E-6 : f32
    %142 = vector.broadcast %cst_124 : f32 to vector<16x1xf32>
    %143 = arith.addf %141, %142 : vector<16x1xf32>
    %144 = math.rsqrt %143 : vector<16x1xf32>
    %145 = vector.broadcast %144 : vector<16x1xf32> to vector<16x24xf32>
    %146 = arith.mulf %136, %145 : vector<16x24xf32>
    %147 = vector.broadcast %128 : vector<1x24xf32> to vector<16x24xf32>
    %148 = arith.mulf %146, %147 : vector<16x24xf32>
    %149 = vector.broadcast %130 : vector<1x24xf32> to vector<16x24xf32>
    %150 = arith.addf %148, %149 : vector<16x24xf32>
    %c0_125 = arith.constant 0 : index
    %c0_126 = arith.constant 0 : index
    %c0_127 = arith.constant 0 : index
    %151 = vector.load %arg18[%c0_125, %c0_126, %c0_127] : memref<1x24x2048xf32, #tpu.memory_space<vmem>>, vector<1x24x2048xf32>
    %152 = vector.shape_cast %151 : vector<1x24x2048xf32> to vector<24x2048xf32>
    %cst_128 = arith.constant dense<0.000000e+00> : vector<16x2048xf32>
    %153 = tpu.matmul %150, %152, %cst_128 {dimension_numbers = #tpu.dot_dimension_numbers<[1], [0], [0], [1], [0, 0, 1, 1], [], []>} : vector<16x24xf32>, vector<24x2048xf32>, vector<16x2048xf32> -> vector<16x2048xf32>
    %c0_129 = arith.constant 0 : index
    %c0_130 = arith.constant 0 : index
    %c0_131 = arith.constant 0 : index
    %154 = vector.load %arg19[%c0_129, %c0_130, %c0_131] : memref<1x1x2048xf32, #tpu.memory_space<vmem>>, vector<1x1x2048xf32>
    %155 = vector.shape_cast %154 : vector<1x1x2048xf32> to vector<1x2048xf32>
    %156 = vector.broadcast %155 : vector<1x2048xf32> to vector<16x2048xf32>
    %157 = arith.addf %153, %156 : vector<16x2048xf32>
    %cst_132 = arith.constant 0.000000e+00 : f32
    %158 = vector.broadcast %cst_132 : f32 to vector<16x2048xf32>
    %159 = arith.maximumf %157, %158 : vector<16x2048xf32>
    %c0_133 = arith.constant 0 : index
    %c0_134 = arith.constant 0 : index
    %c0_135 = arith.constant 0 : index
    %160 = vector.load %arg20[%c0_133, %c0_134, %c0_135] : memref<1x2048x24xf32, #tpu.memory_space<vmem>>, vector<1x2048x24xf32>
    %161 = vector.shape_cast %160 : vector<1x2048x24xf32> to vector<2048x24xf32>
    %cst_136 = arith.constant dense<0.000000e+00> : vector<16x24xf32>
    %162 = tpu.matmul %159, %161, %cst_136 {dimension_numbers = #tpu.dot_dimension_numbers<[1], [0], [0], [1], [0, 0, 1, 1], [], []>} : vector<16x2048xf32>, vector<2048x24xf32>, vector<16x24xf32> -> vector<16x24xf32>
    %c0_137 = arith.constant 0 : index
    %c0_138 = arith.constant 0 : index
    %c0_139 = arith.constant 0 : index
    %163 = vector.load %arg21[%c0_137, %c0_138, %c0_139] : memref<1x1x24xf32, #tpu.memory_space<vmem>>, vector<1x1x24xf32>
    %164 = vector.shape_cast %163 : vector<1x1x24xf32> to vector<1x24xf32>
    %165 = vector.broadcast %164 : vector<1x24xf32> to vector<16x24xf32>
    %166 = arith.addf %162, %165 : vector<16x24xf32>
    %167 = arith.addf %150, %166 : vector<16x24xf32>
    %c0_140 = arith.constant 0 : index
    %c0_141 = arith.constant 0 : index
    %c0_142 = arith.constant 0 : index
    %168 = vector.load %arg22[%c0_140, %c0_141, %c0_142] : memref<1x1x24xf32, #tpu.memory_space<vmem>>, vector<1x1x24xf32>
    %169 = vector.shape_cast %168 : vector<1x1x24xf32> to vector<1x24xf32>
    %c0_143 = arith.constant 0 : index
    %c0_144 = arith.constant 0 : index
    %c0_145 = arith.constant 0 : index
    %170 = vector.load %arg23[%c0_143, %c0_144, %c0_145] : memref<1x1x24xf32, #tpu.memory_space<vmem>>, vector<1x1x24xf32>
    %171 = vector.shape_cast %170 : vector<1x1x24xf32> to vector<1x24xf32>
    %cst_146 = arith.constant dense<0.000000e+00> : vector<16xf32>
    %172 = vector.multi_reduction <add>, %167, %cst_146 [1] : vector<16x24xf32> to vector<16xf32>
    %173 = vector.shape_cast %172 : vector<16xf32> to vector<16x1xf32>
    %cst_147 = arith.constant 2.400000e+01 : f32
    %174 = vector.broadcast %cst_147 : f32 to vector<16x1xf32>
    %175 = arith.divf %173, %174 : vector<16x1xf32>
    %176 = vector.broadcast %175 : vector<16x1xf32> to vector<16x24xf32>
    %177 = arith.subf %167, %176 : vector<16x24xf32>
    %178 = arith.mulf %177, %177 : vector<16x24xf32>
    %cst_148 = arith.constant dense<0.000000e+00> : vector<16xf32>
    %179 = vector.multi_reduction <add>, %178, %cst_148 [1] : vector<16x24xf32> to vector<16xf32>
    %180 = vector.shape_cast %179 : vector<16xf32> to vector<16x1xf32>
    %cst_149 = arith.constant 2.400000e+01 : f32
    %181 = vector.broadcast %cst_149 : f32 to vector<16x1xf32>
    %182 = arith.divf %180, %181 : vector<16x1xf32>
    %cst_150 = arith.constant 9.99999974E-6 : f32
    %183 = vector.broadcast %cst_150 : f32 to vector<16x1xf32>
    %184 = arith.addf %182, %183 : vector<16x1xf32>
    %185 = math.rsqrt %184 : vector<16x1xf32>
    %186 = vector.broadcast %185 : vector<16x1xf32> to vector<16x24xf32>
    %187 = arith.mulf %177, %186 : vector<16x24xf32>
    %188 = vector.broadcast %169 : vector<1x24xf32> to vector<16x24xf32>
    %189 = arith.mulf %187, %188 : vector<16x24xf32>
    %190 = vector.broadcast %171 : vector<1x24xf32> to vector<16x24xf32>
    %191 = arith.addf %189, %190 : vector<16x24xf32>
    %c0_151 = arith.constant 0 : index
    %c0_152 = arith.constant 0 : index
    %192 = vector.load %arg45[%c0_151, %c0_152] : memref<16x24xf32, #tpu.memory_space<vmem>>, vector<16x24xf32>
    tpu.vector_store %arg45[%c0_151, %c0_152], %191 {strides = array<i32>} : memref<16x24xf32, #tpu.memory_space<vmem>>, vector<16x24xf32>,
    %c2_i32 = arith.constant 2 : i32
    %193 = arith.cmpi eq, %arg1, %c2_i32 : i32
    %194 = arith.extui %193 : i1 to i32
    %c0_i32_153 = arith.constant 0 : i32
    %195 = arith.cmpi ne, %194, %c0_i32_153 : i32
    scf.if %195 {
      %c0_154 = arith.constant 0 : index
      %c0_155 = arith.constant 0 : index
      %c0_156 = arith.constant 0 : index
      %196 = vector.load %arg3[%c0_154, %c0_155, %c0_156] : memref<1x16x48xf32, #tpu.memory_space<vmem>>, vector<1x16x48xf32>
      %197 = vector.shape_cast %196 : vector<1x16x48xf32> to vector<16x48xf32>
      %c0_157 = arith.constant 0 : index
      %c0_158 = arith.constant 0 : index
      %198 = vector.load %arg24[%c0_157, %c0_158] : memref<48x36xf32, #tpu.memory_space<vmem>>, vector<48x36xf32>
      %cst_159 = arith.constant dense<0.000000e+00> : vector<16x36xf32>
      %199 = tpu.matmul %197, %198, %cst_159 {dimension_numbers = #tpu.dot_dimension_numbers<[1], [0], [0], [1], [0, 0, 1, 1], [], []>} : vector<16x48xf32>, vector<48x36xf32>, vector<16x36xf32> -> vector<16x36xf32>
      %c0_160 = arith.constant 0 : index
      %c0_161 = arith.constant 0 : index
      %200 = vector.load %arg25[%c0_160, %c0_161] : memref<1x36xf32, #tpu.memory_space<vmem>>, vector<1x36xf32>
      %201 = vector.broadcast %200 : vector<1x36xf32> to vector<16x36xf32>
      %202 = arith.addf %199, %201 : vector<16x36xf32>
      %c0_162 = arith.constant 0 : index
      %c0_163 = arith.constant 0 : index
      %203 = vector.load %arg26[%c0_162, %c0_163] : memref<36x24xf32, #tpu.memory_space<vmem>>, vector<36x24xf32>
      %cst_164 = arith.constant dense<0.000000e+00> : vector<16x24xf32>
      %204 = tpu.matmul %202, %203, %cst_164 {dimension_numbers = #tpu.dot_dimension_numbers<[1], [0], [0], [1], [0, 0, 1, 1], [], []>} : vector<16x36xf32>, vector<36x24xf32>, vector<16x24xf32> -> vector<16x24xf32>
      %c0_165 = arith.constant 0 : index
      %c0_166 = arith.constant 0 : index
      %205 = vector.load %arg27[%c0_165, %c0_166] : memref<1x24xf32, #tpu.memory_space<vmem>>, vector<1x24xf32>
      %206 = vector.broadcast %205 : vector<1x24xf32> to vector<16x24xf32>
      %207 = arith.addf %204, %206 : vector<16x24xf32>
      %c0_167 = arith.constant 0 : index
      %c0_168 = arith.constant 0 : index
      %208 = vector.load %arg28[%c0_167, %c0_168] : memref<24x1xf32, #tpu.memory_space<vmem>>, vector<24x1xf32>
      %cst_169 = arith.constant dense<0.000000e+00> : vector<16x1xf32>
      %209 = tpu.matmul %191, %208, %cst_169 {dimension_numbers = #tpu.dot_dimension_numbers<[1], [0], [0], [1], [0, 0, 1, 1], [], []>} : vector<16x24xf32>, vector<24x1xf32>, vector<16x1xf32> -> vector<16x1xf32>
      %c0_170 = arith.constant 0 : index
      %c0_171 = arith.constant 0 : index
      %210 = vector.load %arg29[%c0_170, %c0_171] : memref<1x1xf32, #tpu.memory_space<vmem>>, vector<1x1xf32>
      %211 = vector.broadcast %210 : vector<1x1xf32> to vector<16x1xf32>
      %212 = arith.addf %209, %211 : vector<16x1xf32>
      %cst_172 = arith.constant dense<0xFF800000> : vector<1xf32>
      %213 = vector.multi_reduction <maximumf>, %212, %cst_172 [0] : vector<16x1xf32> to vector<1xf32>
      %214 = vector.shape_cast %213 : vector<1xf32> to vector<1x1xf32>
      %215 = vector.broadcast %214 : vector<1x1xf32> to vector<16x1xf32>
      %216 = arith.subf %212, %215 : vector<16x1xf32>
      %217 = math.exp %216 : vector<16x1xf32>
      %cst_173 = arith.constant dense<0.000000e+00> : vector<1xf32>
      %218 = vector.multi_reduction <add>, %217, %cst_173 [0] : vector<16x1xf32> to vector<1xf32>
      %219 = vector.shape_cast %218 : vector<1xf32> to vector<1x1xf32>
      %220 = tpu.reciprocal %219 {approx = true} : vector<1x1xf32> -> vector<1x1xf32>
      %221 = vector.broadcast %220 : vector<1x1xf32> to vector<16x1xf32>
      %222 = arith.mulf %217, %221 : vector<16x1xf32>
      %223 = vector.broadcast %222 : vector<16x1xf32> to vector<16x24xf32>
      %224 = arith.mulf %191, %223 : vector<16x24xf32>
      %cst_174 = arith.constant dense<0.000000e+00> : vector<24xf32>
      %225 = vector.multi_reduction <add>, %224, %cst_174 [0] : vector<16x24xf32> to vector<24xf32>
      %226 = vector.shape_cast %225 : vector<24xf32> to vector<1x24xf32>
      %cst_175 = arith.constant 0.000000e+00 : f32
      %227 = vector.broadcast %cst_175 : f32 to vector<16x24xf32>
      %c0_176 = arith.constant 0 : index
      %c0_177 = arith.constant 0 : index
      %c0_178 = arith.constant 0 : index
      %228 = vector.load %arg30[%c0_176, %c0_177, %c0_178] : memref<4x24x6xf32, #tpu.memory_space<vmem>>, vector<1x24x6xf32>
      %229 = vector.shape_cast %228 : vector<1x24x6xf32> to vector<24x6xf32>
      %cst_179 = arith.constant dense<0.000000e+00> : vector<16x6xf32>
      %230 = tpu.matmul %207, %229, %cst_179 {dimension_numbers = #tpu.dot_dimension_numbers<[1], [0], [0], [1], [0, 0, 1, 1], [], []>} : vector<16x24xf32>, vector<24x6xf32>, vector<16x6xf32> -> vector<16x6xf32>
      %c0_180 = arith.constant 0 : index
      %c0_181 = arith.constant 0 : index
      %c0_182 = arith.constant 0 : index
      %231 = vector.load %arg31[%c0_180, %c0_181, %c0_182] : memref<4x1x6xf32, #tpu.memory_space<vmem>>, vector<1x1x6xf32>
      %232 = vector.shape_cast %231 : vector<1x1x6xf32> to vector<1x6xf32>
      %233 = vector.broadcast %232 : vector<1x6xf32> to vector<16x6xf32>
      %234 = arith.addf %230, %233 : vector<16x6xf32>
      %c0_183 = arith.constant 0 : index
      %c0_184 = arith.constant 0 : index
      %c0_185 = arith.constant 0 : index
      %235 = vector.load %arg32[%c0_183, %c0_184, %c0_185] : memref<4x24x6xf32, #tpu.memory_space<vmem>>, vector<1x24x6xf32>
      %236 = vector.shape_cast %235 : vector<1x24x6xf32> to vector<24x6xf32>
      %cst_186 = arith.constant dense<0.000000e+00> : vector<16x6xf32>
      %237 = tpu.matmul %191, %236, %cst_186 {dimension_numbers = #tpu.dot_dimension_numbers<[1], [0], [0], [1], [0, 0, 1, 1], [], []>} : vector<16x24xf32>, vector<24x6xf32>, vector<16x6xf32> -> vector<16x6xf32>
      %c0_187 = arith.constant 0 : index
      %c0_188 = arith.constant 0 : index
      %c0_189 = arith.constant 0 : index
      %238 = vector.load %arg33[%c0_187, %c0_188, %c0_189] : memref<4x1x6xf32, #tpu.memory_space<vmem>>, vector<1x1x6xf32>
      %239 = vector.shape_cast %238 : vector<1x1x6xf32> to vector<1x6xf32>
      %240 = vector.broadcast %239 : vector<1x6xf32> to vector<16x6xf32>
      %241 = arith.addf %237, %240 : vector<16x6xf32>
      %c0_190 = arith.constant 0 : index
      %c0_191 = arith.constant 0 : index
      %c0_192 = arith.constant 0 : index
      %242 = vector.load %arg34[%c0_190, %c0_191, %c0_192] : memref<4x24x6xf32, #tpu.memory_space<vmem>>, vector<1x24x6xf32>
      %243 = vector.shape_cast %242 : vector<1x24x6xf32> to vector<24x6xf32>
      %cst_193 = arith.constant dense<0.000000e+00> : vector<16x6xf32>
      %244 = tpu.matmul %191, %243, %cst_193 {dimension_numbers = #tpu.dot_dimension_numbers<[1], [0], [0], [1], [0, 0, 1, 1], [], []>} : vector<16x24xf32>, vector<24x6xf32>, vector<16x6xf32> -> vector<16x6xf32>
      %c0_194 = arith.constant 0 : index
      %c0_195 = arith.constant 0 : index
      %c0_196 = arith.constant 0 : index
      %245 = vector.load %arg35[%c0_194, %c0_195, %c0_196] : memref<4x1x6xf32, #tpu.memory_space<vmem>>, vector<1x1x6xf32>
      %246 = vector.shape_cast %245 : vector<1x1x6xf32> to vector<1x6xf32>
      %247 = vector.broadcast %246 : vector<1x6xf32> to vector<16x6xf32>
      %248 = arith.addf %244, %247 : vector<16x6xf32>
      %cst_197 = arith.constant dense<0.000000e+00> : vector<16x16xf32>
      %249 = tpu.matmul %234, %241, %cst_197 {dimension_numbers = #tpu.dot_dimension_numbers<[1], [1], [0], [0], [0, 0, 1, 0], [], []>} : vector<16x6xf32>, vector<16x6xf32>, vector<16x16xf32> -> vector<16x16xf32>
      %cst_198 = arith.constant 0.408248305 : f32
      %250 = vector.broadcast %cst_198 : f32 to vector<16x16xf32>
      %251 = arith.mulf %249, %250 : vector<16x16xf32>
      %cst_199 = arith.constant dense<0xFF800000> : vector<16xf32>
      %252 = vector.multi_reduction <maximumf>, %251, %cst_199 [1] : vector<16x16xf32> to vector<16xf32>
      %253 = vector.shape_cast %252 : vector<16xf32> to vector<16x1xf32>
      %254 = vector.broadcast %253 : vector<16x1xf32> to vector<16x16xf32>
      %255 = arith.subf %251, %254 : vector<16x16xf32>
      %256 = math.exp %255 : vector<16x16xf32>
      %cst_200 = arith.constant dense<0.000000e+00> : vector<16xf32>
      %257 = vector.multi_reduction <add>, %256, %cst_200 [1] : vector<16x16xf32> to vector<16xf32>
      %258 = vector.shape_cast %257 : vector<16xf32> to vector<16x1xf32>
      %259 = tpu.reciprocal %258 {approx = true} : vector<16x1xf32> -> vector<16x1xf32>
      %260 = vector.broadcast %259 : vector<16x1xf32> to vector<16x16xf32>
      %261 = arith.mulf %256, %260 : vector<16x16xf32>
      %cst_201 = arith.constant dense<0.000000e+00> : vector<16x6xf32>
      %262 = tpu.matmul %261, %248, %cst_201 {dimension_numbers = #tpu.dot_dimension_numbers<[1], [0], [0], [1], [0, 0, 1, 1], [], []>} : vector<16x16xf32>, vector<16x6xf32>, vector<16x6xf32> -> vector<16x6xf32>
      %c0_202 = arith.constant 0 : index
      %c0_203 = arith.constant 0 : index
      %c0_204 = arith.constant 0 : index
      %263 = vector.load %arg36[%c0_202, %c0_203, %c0_204] : memref<4x6x24xf32, #tpu.memory_space<vmem>>, vector<1x6x24xf32>
      %264 = vector.shape_cast %263 : vector<1x6x24xf32> to vector<6x24xf32>
      %cst_205 = arith.constant dense<0.000000e+00> : vector<16x24xf32>
      %265 = tpu.matmul %262, %264, %cst_205 {dimension_numbers = #tpu.dot_dimension_numbers<[1], [0], [0], [1], [0, 0, 1, 1], [], []>} : vector<16x6xf32>, vector<6x24xf32>, vector<16x24xf32> -> vector<16x24xf32>
      %266 = arith.addf %227, %265 : vector<16x24xf32>
      %c1_206 = arith.constant 1 : index
      %c0_207 = arith.constant 0 : index
      %c0_208 = arith.constant 0 : index
      %267 = vector.load %arg30[%c1_206, %c0_207, %c0_208] : memref<4x24x6xf32, #tpu.memory_space<vmem>>, vector<1x24x6xf32>
      %268 = vector.shape_cast %267 : vector<1x24x6xf32> to vector<24x6xf32>
      %cst_209 = arith.constant dense<0.000000e+00> : vector<16x6xf32>
      %269 = tpu.matmul %207, %268, %cst_209 {dimension_numbers = #tpu.dot_dimension_numbers<[1], [0], [0], [1], [0, 0, 1, 1], [], []>} : vector<16x24xf32>, vector<24x6xf32>, vector<16x6xf32> -> vector<16x6xf32>
      %c1_210 = arith.constant 1 : index
      %c0_211 = arith.constant 0 : index
      %c0_212 = arith.constant 0 : index
      %270 = vector.load %arg31[%c1_210, %c0_211, %c0_212] : memref<4x1x6xf32, #tpu.memory_space<vmem>>, vector<1x1x6xf32>
      %271 = vector.shape_cast %270 : vector<1x1x6xf32> to vector<1x6xf32>
      %272 = vector.broadcast %271 : vector<1x6xf32> to vector<16x6xf32>
      %273 = arith.addf %269, %272 : vector<16x6xf32>
      %c1_213 = arith.constant 1 : index
      %c0_214 = arith.constant 0 : index
      %c0_215 = arith.constant 0 : index
      %274 = vector.load %arg32[%c1_213, %c0_214, %c0_215] : memref<4x24x6xf32, #tpu.memory_space<vmem>>, vector<1x24x6xf32>
      %275 = vector.shape_cast %274 : vector<1x24x6xf32> to vector<24x6xf32>
      %cst_216 = arith.constant dense<0.000000e+00> : vector<16x6xf32>
      %276 = tpu.matmul %191, %275, %cst_216 {dimension_numbers = #tpu.dot_dimension_numbers<[1], [0], [0], [1], [0, 0, 1, 1], [], []>} : vector<16x24xf32>, vector<24x6xf32>, vector<16x6xf32> -> vector<16x6xf32>
      %c1_217 = arith.constant 1 : index
      %c0_218 = arith.constant 0 : index
      %c0_219 = arith.constant 0 : index
      %277 = vector.load %arg33[%c1_217, %c0_218, %c0_219] : memref<4x1x6xf32, #tpu.memory_space<vmem>>, vector<1x1x6xf32>
      %278 = vector.shape_cast %277 : vector<1x1x6xf32> to vector<1x6xf32>
      %279 = vector.broadcast %278 : vector<1x6xf32> to vector<16x6xf32>
      %280 = arith.addf %276, %279 : vector<16x6xf32>
      %c1_220 = arith.constant 1 : index
      %c0_221 = arith.constant 0 : index
      %c0_222 = arith.constant 0 : index
      %281 = vector.load %arg34[%c1_220, %c0_221, %c0_222] : memref<4x24x6xf32, #tpu.memory_space<vmem>>, vector<1x24x6xf32>
      %282 = vector.shape_cast %281 : vector<1x24x6xf32> to vector<24x6xf32>
      %cst_223 = arith.constant dense<0.000000e+00> : vector<16x6xf32>
      %283 = tpu.matmul %191, %282, %cst_223 {dimension_numbers = #tpu.dot_dimension_numbers<[1], [0], [0], [1], [0, 0, 1, 1], [], []>} : vector<16x24xf32>, vector<24x6xf32>, vector<16x6xf32> -> vector<16x6xf32>
      %c1_224 = arith.constant 1 : index
      %c0_225 = arith.constant 0 : index
      %c0_226 = arith.constant 0 : index
      %284 = vector.load %arg35[%c1_224, %c0_225, %c0_226] : memref<4x1x6xf32, #tpu.memory_space<vmem>>, vector<1x1x6xf32>
      %285 = vector.shape_cast %284 : vector<1x1x6xf32> to vector<1x6xf32>
      %286 = vector.broadcast %285 : vector<1x6xf32> to vector<16x6xf32>
      %287 = arith.addf %283, %286 : vector<16x6xf32>
      %cst_227 = arith.constant dense<0.000000e+00> : vector<16x16xf32>
      %288 = tpu.matmul %273, %280, %cst_227 {dimension_numbers = #tpu.dot_dimension_numbers<[1], [1], [0], [0], [0, 0, 1, 0], [], []>} : vector<16x6xf32>, vector<16x6xf32>, vector<16x16xf32> -> vector<16x16xf32>
      %cst_228 = arith.constant 0.408248305 : f32
      %289 = vector.broadcast %cst_228 : f32 to vector<16x16xf32>
      %290 = arith.mulf %288, %289 : vector<16x16xf32>
      %cst_229 = arith.constant dense<0xFF800000> : vector<16xf32>
      %291 = vector.multi_reduction <maximumf>, %290, %cst_229 [1] : vector<16x16xf32> to vector<16xf32>
      %292 = vector.shape_cast %291 : vector<16xf32> to vector<16x1xf32>
      %293 = vector.broadcast %292 : vector<16x1xf32> to vector<16x16xf32>
      %294 = arith.subf %290, %293 : vector<16x16xf32>
      %295 = math.exp %294 : vector<16x16xf32>
      %cst_230 = arith.constant dense<0.000000e+00> : vector<16xf32>
      %296 = vector.multi_reduction <add>, %295, %cst_230 [1] : vector<16x16xf32> to vector<16xf32>
      %297 = vector.shape_cast %296 : vector<16xf32> to vector<16x1xf32>
      %298 = tpu.reciprocal %297 {approx = true} : vector<16x1xf32> -> vector<16x1xf32>
      %299 = vector.broadcast %298 : vector<16x1xf32> to vector<16x16xf32>
      %300 = arith.mulf %295, %299 : vector<16x16xf32>
      %cst_231 = arith.constant dense<0.000000e+00> : vector<16x6xf32>
      %301 = tpu.matmul %300, %287, %cst_231 {dimension_numbers = #tpu.dot_dimension_numbers<[1], [0], [0], [1], [0, 0, 1, 1], [], []>} : vector<16x16xf32>, vector<16x6xf32>, vector<16x6xf32> -> vector<16x6xf32>
      %c1_232 = arith.constant 1 : index
      %c0_233 = arith.constant 0 : index
      %c0_234 = arith.constant 0 : index
      %302 = vector.load %arg36[%c1_232, %c0_233, %c0_234] : memref<4x6x24xf32, #tpu.memory_space<vmem>>, vector<1x6x24xf32>
      %303 = vector.shape_cast %302 : vector<1x6x24xf32> to vector<6x24xf32>
      %cst_235 = arith.constant dense<0.000000e+00> : vector<16x24xf32>
      %304 = tpu.matmul %301, %303, %cst_235 {dimension_numbers = #tpu.dot_dimension_numbers<[1], [0], [0], [1], [0, 0, 1, 1], [], []>} : vector<16x6xf32>, vector<6x24xf32>, vector<16x24xf32> -> vector<16x24xf32>
      %305 = arith.addf %266, %304 : vector<16x24xf32>
      %c2_236 = arith.constant 2 : index
      %c0_237 = arith.constant 0 : index
      %c0_238 = arith.constant 0 : index
      %306 = vector.load %arg30[%c2_236, %c0_237, %c0_238] : memref<4x24x6xf32, #tpu.memory_space<vmem>>, vector<1x24x6xf32>
      %307 = vector.shape_cast %306 : vector<1x24x6xf32> to vector<24x6xf32>
      %cst_239 = arith.constant dense<0.000000e+00> : vector<16x6xf32>
      %308 = tpu.matmul %207, %307, %cst_239 {dimension_numbers = #tpu.dot_dimension_numbers<[1], [0], [0], [1], [0, 0, 1, 1], [], []>} : vector<16x24xf32>, vector<24x6xf32>, vector<16x6xf32> -> vector<16x6xf32>
      %c2_240 = arith.constant 2 : index
      %c0_241 = arith.constant 0 : index
      %c0_242 = arith.constant 0 : index
      %309 = vector.load %arg31[%c2_240, %c0_241, %c0_242] : memref<4x1x6xf32, #tpu.memory_space<vmem>>, vector<1x1x6xf32>
      %310 = vector.shape_cast %309 : vector<1x1x6xf32> to vector<1x6xf32>
      %311 = vector.broadcast %310 : vector<1x6xf32> to vector<16x6xf32>
      %312 = arith.addf %308, %311 : vector<16x6xf32>
      %c2_243 = arith.constant 2 : index
      %c0_244 = arith.constant 0 : index
      %c0_245 = arith.constant 0 : index
      %313 = vector.load %arg32[%c2_243, %c0_244, %c0_245] : memref<4x24x6xf32, #tpu.memory_space<vmem>>, vector<1x24x6xf32>
      %314 = vector.shape_cast %313 : vector<1x24x6xf32> to vector<24x6xf32>
      %cst_246 = arith.constant dense<0.000000e+00> : vector<16x6xf32>
      %315 = tpu.matmul %191, %314, %cst_246 {dimension_numbers = #tpu.dot_dimension_numbers<[1], [0], [0], [1], [0, 0, 1, 1], [], []>} : vector<16x24xf32>, vector<24x6xf32>, vector<16x6xf32> -> vector<16x6xf32>
      %c2_247 = arith.constant 2 : index
      %c0_248 = arith.constant 0 : index
      %c0_249 = arith.constant 0 : index
      %316 = vector.load %arg33[%c2_247, %c0_248, %c0_249] : memref<4x1x6xf32, #tpu.memory_space<vmem>>, vector<1x1x6xf32>
      %317 = vector.shape_cast %316 : vector<1x1x6xf32> to vector<1x6xf32>
      %318 = vector.broadcast %317 : vector<1x6xf32> to vector<16x6xf32>
      %319 = arith.addf %315, %318 : vector<16x6xf32>
      %c2_250 = arith.constant 2 : index
      %c0_251 = arith.constant 0 : index
      %c0_252 = arith.constant 0 : index
      %320 = vector.load %arg34[%c2_250, %c0_251, %c0_252] : memref<4x24x6xf32, #tpu.memory_space<vmem>>, vector<1x24x6xf32>
      %321 = vector.shape_cast %320 : vector<1x24x6xf32> to vector<24x6xf32>
      %cst_253 = arith.constant dense<0.000000e+00> : vector<16x6xf32>
      %322 = tpu.matmul %191, %321, %cst_253 {dimension_numbers = #tpu.dot_dimension_numbers<[1], [0], [0], [1], [0, 0, 1, 1], [], []>} : vector<16x24xf32>, vector<24x6xf32>, vector<16x6xf32> -> vector<16x6xf32>
      %c2_254 = arith.constant 2 : index
      %c0_255 = arith.constant 0 : index
      %c0_256 = arith.constant 0 : index
      %323 = vector.load %arg35[%c2_254, %c0_255, %c0_256] : memref<4x1x6xf32, #tpu.memory_space<vmem>>, vector<1x1x6xf32>
      %324 = vector.shape_cast %323 : vector<1x1x6xf32> to vector<1x6xf32>
      %325 = vector.broadcast %324 : vector<1x6xf32> to vector<16x6xf32>
      %326 = arith.addf %322, %325 : vector<16x6xf32>
      %cst_257 = arith.constant dense<0.000000e+00> : vector<16x16xf32>
      %327 = tpu.matmul %312, %319, %cst_257 {dimension_numbers = #tpu.dot_dimension_numbers<[1], [1], [0], [0], [0, 0, 1, 0], [], []>} : vector<16x6xf32>, vector<16x6xf32>, vector<16x16xf32> -> vector<16x16xf32>
      %cst_258 = arith.constant 0.408248305 : f32
      %328 = vector.broadcast %cst_258 : f32 to vector<16x16xf32>
      %329 = arith.mulf %327, %328 : vector<16x16xf32>
      %cst_259 = arith.constant dense<0xFF800000> : vector<16xf32>
      %330 = vector.multi_reduction <maximumf>, %329, %cst_259 [1] : vector<16x16xf32> to vector<16xf32>
      %331 = vector.shape_cast %330 : vector<16xf32> to vector<16x1xf32>
      %332 = vector.broadcast %331 : vector<16x1xf32> to vector<16x16xf32>
      %333 = arith.subf %329, %332 : vector<16x16xf32>
      %334 = math.exp %333 : vector<16x16xf32>
      %cst_260 = arith.constant dense<0.000000e+00> : vector<16xf32>
      %335 = vector.multi_reduction <add>, %334, %cst_260 [1] : vector<16x16xf32> to vector<16xf32>
      %336 = vector.shape_cast %335 : vector<16xf32> to vector<16x1xf32>
      %337 = tpu.reciprocal %336 {approx = true} : vector<16x1xf32> -> vector<16x1xf32>
      %338 = vector.broadcast %337 : vector<16x1xf32> to vector<16x16xf32>
      %339 = arith.mulf %334, %338 : vector<16x16xf32>
      %cst_261 = arith.constant dense<0.000000e+00> : vector<16x6xf32>
      %340 = tpu.matmul %339, %326, %cst_261 {dimension_numbers = #tpu.dot_dimension_numbers<[1], [0], [0], [1], [0, 0, 1, 1], [], []>} : vector<16x16xf32>, vector<16x6xf32>, vector<16x6xf32> -> vector<16x6xf32>
      %c2_262 = arith.constant 2 : index
      %c0_263 = arith.constant 0 : index
      %c0_264 = arith.constant 0 : index
      %341 = vector.load %arg36[%c2_262, %c0_263, %c0_264] : memref<4x6x24xf32, #tpu.memory_space<vmem>>, vector<1x6x24xf32>
      %342 = vector.shape_cast %341 : vector<1x6x24xf32> to vector<6x24xf32>
      %cst_265 = arith.constant dense<0.000000e+00> : vector<16x24xf32>
      %343 = tpu.matmul %340, %342, %cst_265 {dimension_numbers = #tpu.dot_dimension_numbers<[1], [0], [0], [1], [0, 0, 1, 1], [], []>} : vector<16x6xf32>, vector<6x24xf32>, vector<16x24xf32> -> vector<16x24xf32>
      %344 = arith.addf %305, %343 : vector<16x24xf32>
      %c3 = arith.constant 3 : index
      %c0_266 = arith.constant 0 : index
      %c0_267 = arith.constant 0 : index
      %345 = vector.load %arg30[%c3, %c0_266, %c0_267] : memref<4x24x6xf32, #tpu.memory_space<vmem>>, vector<1x24x6xf32>
      %346 = vector.shape_cast %345 : vector<1x24x6xf32> to vector<24x6xf32>
      %cst_268 = arith.constant dense<0.000000e+00> : vector<16x6xf32>
      %347 = tpu.matmul %207, %346, %cst_268 {dimension_numbers = #tpu.dot_dimension_numbers<[1], [0], [0], [1], [0, 0, 1, 1], [], []>} : vector<16x24xf32>, vector<24x6xf32>, vector<16x6xf32> -> vector<16x6xf32>
      %c3_269 = arith.constant 3 : index
      %c0_270 = arith.constant 0 : index
      %c0_271 = arith.constant 0 : index
      %348 = vector.load %arg31[%c3_269, %c0_270, %c0_271] : memref<4x1x6xf32, #tpu.memory_space<vmem>>, vector<1x1x6xf32>
      %349 = vector.shape_cast %348 : vector<1x1x6xf32> to vector<1x6xf32>
      %350 = vector.broadcast %349 : vector<1x6xf32> to vector<16x6xf32>
      %351 = arith.addf %347, %350 : vector<16x6xf32>
      %c3_272 = arith.constant 3 : index
      %c0_273 = arith.constant 0 : index
      %c0_274 = arith.constant 0 : index
      %352 = vector.load %arg32[%c3_272, %c0_273, %c0_274] : memref<4x24x6xf32, #tpu.memory_space<vmem>>, vector<1x24x6xf32>
      %353 = vector.shape_cast %352 : vector<1x24x6xf32> to vector<24x6xf32>
      %cst_275 = arith.constant dense<0.000000e+00> : vector<16x6xf32>
      %354 = tpu.matmul %191, %353, %cst_275 {dimension_numbers = #tpu.dot_dimension_numbers<[1], [0], [0], [1], [0, 0, 1, 1], [], []>} : vector<16x24xf32>, vector<24x6xf32>, vector<16x6xf32> -> vector<16x6xf32>
      %c3_276 = arith.constant 3 : index
      %c0_277 = arith.constant 0 : index
      %c0_278 = arith.constant 0 : index
      %355 = vector.load %arg33[%c3_276, %c0_277, %c0_278] : memref<4x1x6xf32, #tpu.memory_space<vmem>>, vector<1x1x6xf32>
      %356 = vector.shape_cast %355 : vector<1x1x6xf32> to vector<1x6xf32>
      %357 = vector.broadcast %356 : vector<1x6xf32> to vector<16x6xf32>
      %358 = arith.addf %354, %357 : vector<16x6xf32>
      %c3_279 = arith.constant 3 : index
      %c0_280 = arith.constant 0 : index
      %c0_281 = arith.constant 0 : index
      %359 = vector.load %arg34[%c3_279, %c0_280, %c0_281] : memref<4x24x6xf32, #tpu.memory_space<vmem>>, vector<1x24x6xf32>
      %360 = vector.shape_cast %359 : vector<1x24x6xf32> to vector<24x6xf32>
      %cst_282 = arith.constant dense<0.000000e+00> : vector<16x6xf32>
      %361 = tpu.matmul %191, %360, %cst_282 {dimension_numbers = #tpu.dot_dimension_numbers<[1], [0], [0], [1], [0, 0, 1, 1], [], []>} : vector<16x24xf32>, vector<24x6xf32>, vector<16x6xf32> -> vector<16x6xf32>
      %c3_283 = arith.constant 3 : index
      %c0_284 = arith.constant 0 : index
      %c0_285 = arith.constant 0 : index
      %362 = vector.load %arg35[%c3_283, %c0_284, %c0_285] : memref<4x1x6xf32, #tpu.memory_space<vmem>>, vector<1x1x6xf32>
      %363 = vector.shape_cast %362 : vector<1x1x6xf32> to vector<1x6xf32>
      %364 = vector.broadcast %363 : vector<1x6xf32> to vector<16x6xf32>
      %365 = arith.addf %361, %364 : vector<16x6xf32>
      %cst_286 = arith.constant dense<0.000000e+00> : vector<16x16xf32>
      %366 = tpu.matmul %351, %358, %cst_286 {dimension_numbers = #tpu.dot_dimension_numbers<[1], [1], [0], [0], [0, 0, 1, 0], [], []>} : vector<16x6xf32>, vector<16x6xf32>, vector<16x16xf32> -> vector<16x16xf32>
      %cst_287 = arith.constant 0.408248305 : f32
      %367 = vector.broadcast %cst_287 : f32 to vector<16x16xf32>
      %368 = arith.mulf %366, %367 : vector<16x16xf32>
      %cst_288 = arith.constant dense<0xFF800000> : vector<16xf32>
      %369 = vector.multi_reduction <maximumf>, %368, %cst_288 [1] : vector<16x16xf32> to vector<16xf32>
      %370 = vector.shape_cast %369 : vector<16xf32> to vector<16x1xf32>
      %371 = vector.broadcast %370 : vector<16x1xf32> to vector<16x16xf32>
      %372 = arith.subf %368, %371 : vector<16x16xf32>
      %373 = math.exp %372 : vector<16x16xf32>
      %cst_289 = arith.constant dense<0.000000e+00> : vector<16xf32>
      %374 = vector.multi_reduction <add>, %373, %cst_289 [1] : vector<16x16xf32> to vector<16xf32>
      %375 = vector.shape_cast %374 : vector<16xf32> to vector<16x1xf32>
      %376 = tpu.reciprocal %375 {approx = true} : vector<16x1xf32> -> vector<16x1xf32>
      %377 = vector.broadcast %376 : vector<16x1xf32> to vector<16x16xf32>
      %378 = arith.mulf %373, %377 : vector<16x16xf32>
      %cst_290 = arith.constant dense<0.000000e+00> : vector<16x6xf32>
      %379 = tpu.matmul %378, %365, %cst_290 {dimension_numbers = #tpu.dot_dimension_numbers<[1], [0], [0], [1], [0, 0, 1, 1], [], []>} : vector<16x16xf32>, vector<16x6xf32>, vector<16x6xf32> -> vector<16x6xf32>
      %c3_291 = arith.constant 3 : index
      %c0_292 = arith.constant 0 : index
      %c0_293 = arith.constant 0 : index
      %380 = vector.load %arg36[%c3_291, %c0_292, %c0_293] : memref<4x6x24xf32, #tpu.memory_space<vmem>>, vector<1x6x24xf32>
      %381 = vector.shape_cast %380 : vector<1x6x24xf32> to vector<6x24xf32>
      %cst_294 = arith.constant dense<0.000000e+00> : vector<16x24xf32>
      %382 = tpu.matmul %379, %381, %cst_294 {dimension_numbers = #tpu.dot_dimension_numbers<[1], [0], [0], [1], [0, 0, 1, 1], [], []>} : vector<16x6xf32>, vector<6x24xf32>, vector<16x24xf32> -> vector<16x24xf32>
      %383 = arith.addf %344, %382 : vector<16x24xf32>
      %c0_295 = arith.constant 0 : index
      %c0_296 = arith.constant 0 : index
      %384 = vector.load %arg37[%c0_295, %c0_296] : memref<1x24xf32, #tpu.memory_space<vmem>>, vector<1x24xf32>
      %385 = vector.broadcast %384 : vector<1x24xf32> to vector<16x24xf32>
      %386 = arith.addf %383, %385 : vector<16x24xf32>
      %cst_297 = arith.constant dense<0.000000e+00> : vector<24xf32>
      %387 = vector.multi_reduction <add>, %386, %cst_297 [0] : vector<16x24xf32> to vector<24xf32>
      %388 = vector.shape_cast %387 : vector<24xf32> to vector<1x24xf32>
      %cst_298 = arith.constant 1.600000e+01 : f32
      %389 = vector.broadcast %cst_298 : f32 to vector<1x24xf32>
      %390 = arith.divf %388, %389 : vector<1x24xf32>
      %cst_299 = arith.constant dense<0xFF800000> : vector<24xf32>
      %391 = vector.multi_reduction <maximumf>, %386, %cst_299 [0] : vector<16x24xf32> to vector<24xf32>
      %392 = vector.shape_cast %391 : vector<24xf32> to vector<1x24xf32>
      %cst_300 = arith.constant dense<0.000000e+00> : vector<24xf32>
      %393 = vector.multi_reduction <add>, %207, %cst_300 [0] : vector<16x24xf32> to vector<24xf32>
      %394 = vector.shape_cast %393 : vector<24xf32> to vector<1x24xf32>
      %cst_301 = arith.constant 1.600000e+01 : f32
      %395 = vector.broadcast %cst_301 : f32 to vector<1x24xf32>
      %396 = arith.divf %394, %395 : vector<1x24xf32>
      %cst_302 = arith.constant dense<0xFF800000> : vector<24xf32>
      %397 = vector.multi_reduction <maximumf>, %207, %cst_302 [0] : vector<16x24xf32> to vector<24xf32>
      %398 = vector.shape_cast %397 : vector<24xf32> to vector<1x24xf32>
      %c0_303 = arith.constant 0 : index
      %c0_304 = arith.constant 0 : index
      %c0_305 = arith.constant 0 : index
      %399 = vector.load %arg38[%c0_303, %c0_304, %c0_305] : memref<5x24x72xf32, #tpu.memory_space<vmem>>, vector<1x24x72xf32>
      %400 = vector.shape_cast %399 : vector<1x24x72xf32> to vector<24x72xf32>
      %cst_306 = arith.constant dense<0.000000e+00> : vector<1x72xf32>
      %401 = tpu.matmul %390, %400, %cst_306 {dimension_numbers = #tpu.dot_dimension_numbers<[1], [0], [0], [1], [0, 0, 1, 1], [], []>} : vector<1x24xf32>, vector<24x72xf32>, vector<1x72xf32> -> vector<1x72xf32>
      %c1_307 = arith.constant 1 : index
      %c0_308 = arith.constant 0 : index
      %c0_309 = arith.constant 0 : index
      %402 = vector.load %arg38[%c1_307, %c0_308, %c0_309] : memref<5x24x72xf32, #tpu.memory_space<vmem>>, vector<1x24x72xf32>
      %403 = vector.shape_cast %402 : vector<1x24x72xf32> to vector<24x72xf32>
      %cst_310 = arith.constant dense<0.000000e+00> : vector<1x72xf32>
      %404 = tpu.matmul %392, %403, %cst_310 {dimension_numbers = #tpu.dot_dimension_numbers<[1], [0], [0], [1], [0, 0, 1, 1], [], []>} : vector<1x24xf32>, vector<24x72xf32>, vector<1x72xf32> -> vector<1x72xf32>
      %405 = arith.addf %401, %404 : vector<1x72xf32>
      %c2_311 = arith.constant 2 : index
      %c0_312 = arith.constant 0 : index
      %c0_313 = arith.constant 0 : index
      %406 = vector.load %arg38[%c2_311, %c0_312, %c0_313] : memref<5x24x72xf32, #tpu.memory_space<vmem>>, vector<1x24x72xf32>
      %407 = vector.shape_cast %406 : vector<1x24x72xf32> to vector<24x72xf32>
      %cst_314 = arith.constant dense<0.000000e+00> : vector<1x72xf32>
      %408 = tpu.matmul %396, %407, %cst_314 {dimension_numbers = #tpu.dot_dimension_numbers<[1], [0], [0], [1], [0, 0, 1, 1], [], []>} : vector<1x24xf32>, vector<24x72xf32>, vector<1x72xf32> -> vector<1x72xf32>
      %409 = arith.addf %405, %408 : vector<1x72xf32>
      %c3_315 = arith.constant 3 : index
      %c0_316 = arith.constant 0 : index
      %c0_317 = arith.constant 0 : index
      %410 = vector.load %arg38[%c3_315, %c0_316, %c0_317] : memref<5x24x72xf32, #tpu.memory_space<vmem>>, vector<1x24x72xf32>
      %411 = vector.shape_cast %410 : vector<1x24x72xf32> to vector<24x72xf32>
      %cst_318 = arith.constant dense<0.000000e+00> : vector<1x72xf32>
      %412 = tpu.matmul %398, %411, %cst_318 {dimension_numbers = #tpu.dot_dimension_numbers<[1], [0], [0], [1], [0, 0, 1, 1], [], []>} : vector<1x24xf32>, vector<24x72xf32>, vector<1x72xf32> -> vector<1x72xf32>
      %413 = arith.addf %409, %412 : vector<1x72xf32>
      %c4 = arith.constant 4 : index
      %c0_319 = arith.constant 0 : index
      %c0_320 = arith.constant 0 : index
      %414 = vector.load %arg38[%c4, %c0_319, %c0_320] : memref<5x24x72xf32, #tpu.memory_space<vmem>>, vector<1x24x72xf32>
      %415 = vector.shape_cast %414 : vector<1x24x72xf32> to vector<24x72xf32>
      %cst_321 = arith.constant dense<0.000000e+00> : vector<1x72xf32>
      %416 = tpu.matmul %226, %415, %cst_321 {dimension_numbers = #tpu.dot_dimension_numbers<[1], [0], [0], [1], [0, 0, 1, 1], [], []>} : vector<1x24xf32>, vector<24x72xf32>, vector<1x72xf32> -> vector<1x72xf32>
      %417 = arith.addf %413, %416 : vector<1x72xf32>
      %c0_322 = arith.constant 0 : index
      %c0_323 = arith.constant 0 : index
      %418 = vector.load %arg39[%c0_322, %c0_323] : memref<1x72xf32, #tpu.memory_space<vmem>>, vector<1x72xf32>
      %419 = arith.addf %417, %418 : vector<1x72xf32>
      %cst_324 = arith.constant 0.000000e+00 : f32
      %420 = vector.broadcast %cst_324 : f32 to vector<1x72xf32>
      %421 = arith.maximumf %419, %420 : vector<1x72xf32>
      %c0_325 = arith.constant 0 : index
      %c0_326 = arith.constant 0 : index
      %422 = vector.load %arg40[%c0_325, %c0_326] : memref<72x72xf32, #tpu.memory_space<vmem>>, vector<72x72xf32>
      %cst_327 = arith.constant dense<0.000000e+00> : vector<1x72xf32>
      %423 = tpu.matmul %421, %422, %cst_327 {dimension_numbers = #tpu.dot_dimension_numbers<[1], [0], [0], [1], [0, 0, 1, 1], [], []>} : vector<1x72xf32>, vector<72x72xf32>, vector<1x72xf32> -> vector<1x72xf32>
      %c0_328 = arith.constant 0 : index
      %c0_329 = arith.constant 0 : index
      %424 = vector.load %arg41[%c0_328, %c0_329] : memref<1x72xf32, #tpu.memory_space<vmem>>, vector<1x72xf32>
      %425 = arith.addf %423, %424 : vector<1x72xf32>
      %cst_330 = arith.constant 0.000000e+00 : f32
      %426 = vector.broadcast %cst_330 : f32 to vector<1x72xf32>
      %427 = arith.maximumf %425, %426 : vector<1x72xf32>
      %c0_331 = arith.constant 0 : index
      %c0_332 = arith.constant 0 : index
      %428 = vector.load %arg42[%c0_331, %c0_332] : memref<72x5xf32, #tpu.memory_space<vmem>>, vector<72x5xf32>
      %cst_333 = arith.constant dense<0.000000e+00> : vector<1x5xf32>
      %429 = tpu.matmul %427, %428, %cst_333 {dimension_numbers = #tpu.dot_dimension_numbers<[1], [0], [0], [1], [0, 0, 1, 1], [], []>} : vector<1x72xf32>, vector<72x5xf32>, vector<1x5xf32> -> vector<1x5xf32>
      %c0_334 = arith.constant 0 : index
      %c0_335 = arith.constant 0 : index
      %430 = vector.load %arg43[%c0_334, %c0_335] : memref<1x5xf32, #tpu.memory_space<vmem>>, vector<1x5xf32>
      %431 = arith.addf %429, %430 : vector<1x5xf32>
      %c0_336 = arith.constant 0 : index
      %c0_337 = arith.constant 0 : index
      %c0_338 = arith.constant 0 : index
      %432 = vector.load %arg44[%c0_336, %c0_337, %c0_338] : memref<1x1x5xf32, #tpu.memory_space<vmem>>, vector<1x1x5xf32>
      %433 = vector.shape_cast %432 : vector<1x1x5xf32> to vector<1x5xf32>
      %434 = vector.shape_cast %431 : vector<1x5xf32> to vector<1x1x5xf32>
      tpu.vector_store %arg44[%c0_336, %c0_337, %c0_338], %434 {strides = array<i32>} : memref<1x1x5xf32, #tpu.memory_space<vmem>>, vector<1x1x5xf32>,
    } else {
    }
    return
  }
  func.func @transform_0(%arg0: i32, %arg1: i32) -> (i32, i32, i32) {
    %c0_i32 = arith.constant 0 : i32
    %c0_i32_0 = arith.constant 0 : i32
    %c0_i32_1 = arith.constant 0 : i32
    return %arg0, %c0_i32, %c0_i32_0 : i32, i32, i32
  }
  func.func @transform_1(%arg0: i32, %arg1: i32) -> (i32, i32, i32) {
    %c0_i32 = arith.constant 0 : i32
    %c0_i32_0 = arith.constant 0 : i32
    %c0_i32_1 = arith.constant 0 : i32
    return %arg0, %c0_i32, %c0_i32_0 : i32, i32, i32
  }
  func.func @transform_2(%arg0: i32, %arg1: i32) -> (i32, i32) {
    %c0_i32 = arith.constant 0 : i32
    %c0_i32_0 = arith.constant 0 : i32
    %c0_i32_1 = arith.constant 0 : i32
    return %c0_i32, %c0_i32_0 : i32, i32
  }
  func.func @transform_3(%arg0: i32, %arg1: i32) -> (i32, i32) {
    %c0_i32 = arith.constant 0 : i32
    %c0_i32_0 = arith.constant 0 : i32
    %c0_i32_1 = arith.constant 0 : i32
    return %c0_i32, %c0_i32_0 : i32, i32
  }
  func.func @transform_4(%arg0: i32, %arg1: i32) -> (i32, i32) {
    %c0_i32 = arith.constant 0 : i32
    %c0_i32_0 = arith.constant 0 : i32
    %c0_i32_1 = arith.constant 0 : i32
    return %c0_i32, %c0_i32_0 : i32, i32
  }
  func.func @transform_5(%arg0: i32, %arg1: i32) -> (i32, i32) {
    %c0_i32 = arith.constant 0 : i32
    %c0_i32_0 = arith.constant 0 : i32
    %c0_i32_1 = arith.constant 0 : i32
    return %c0_i32, %c0_i32_0 : i32, i32
  }
  func.func @transform_6(%arg0: i32, %arg1: i32) -> (i32, i32, i32, i32) {
    %c0_i32 = arith.constant 0 : i32
    %c0_i32_0 = arith.constant 0 : i32
    %c0_i32_1 = arith.constant 0 : i32
    %c0_i32_2 = arith.constant 0 : i32
    return %arg1, %c0_i32, %c0_i32_0, %c0_i32_1 : i32, i32, i32, i32
  }
  func.func @transform_7(%arg0: i32, %arg1: i32) -> (i32, i32, i32, i32) {
    %c0_i32 = arith.constant 0 : i32
    %c0_i32_0 = arith.constant 0 : i32
    %c0_i32_1 = arith.constant 0 : i32
    %c0_i32_2 = arith.constant 0 : i32
    return %arg1, %c0_i32, %c0_i32_0, %c0_i32_1 : i32, i32, i32, i32
  }
  func.func @transform_8(%arg0: i32, %arg1: i32) -> (i32, i32, i32, i32) {
    %c0_i32 = arith.constant 0 : i32
    %c0_i32_0 = arith.constant 0 : i32
    %c0_i32_1 = arith.constant 0 : i32
    %c0_i32_2 = arith.constant 0 : i32
    return %arg1, %c0_i32, %c0_i32_0, %c0_i32_1 : i32, i32, i32, i32
  }
  func.func @transform_9(%arg0: i32, %arg1: i32) -> (i32, i32, i32, i32) {
    %c0_i32 = arith.constant 0 : i32
    %c0_i32_0 = arith.constant 0 : i32
    %c0_i32_1 = arith.constant 0 : i32
    %c0_i32_2 = arith.constant 0 : i32
    return %arg1, %c0_i32, %c0_i32_0, %c0_i32_1 : i32, i32, i32, i32
  }
  func.func @transform_10(%arg0: i32, %arg1: i32) -> (i32, i32, i32, i32) {
    %c0_i32 = arith.constant 0 : i32
    %c0_i32_0 = arith.constant 0 : i32
    %c0_i32_1 = arith.constant 0 : i32
    %c0_i32_2 = arith.constant 0 : i32
    return %arg1, %c0_i32, %c0_i32_0, %c0_i32_1 : i32, i32, i32, i32
  }
  func.func @transform_11(%arg0: i32, %arg1: i32) -> (i32, i32, i32, i32) {
    %c0_i32 = arith.constant 0 : i32
    %c0_i32_0 = arith.constant 0 : i32
    %c0_i32_1 = arith.constant 0 : i32
    %c0_i32_2 = arith.constant 0 : i32
    return %arg1, %c0_i32, %c0_i32_0, %c0_i32_1 : i32, i32, i32, i32
  }
  func.func @transform_12(%arg0: i32, %arg1: i32) -> (i32, i32, i32, i32) {
    %c0_i32 = arith.constant 0 : i32
    %c0_i32_0 = arith.constant 0 : i32
    %c0_i32_1 = arith.constant 0 : i32
    %c0_i32_2 = arith.constant 0 : i32
    return %arg1, %c0_i32, %c0_i32_0, %c0_i32_1 : i32, i32, i32, i32
  }
  func.func @transform_13(%arg0: i32, %arg1: i32) -> (i32, i32, i32) {
    %c0_i32 = arith.constant 0 : i32
    %c0_i32_0 = arith.constant 0 : i32
    %c0_i32_1 = arith.constant 0 : i32
    return %arg1, %c0_i32, %c0_i32_0 : i32, i32, i32
  }
  func.func @transform_14(%arg0: i32, %arg1: i32) -> (i32, i32, i32) {
    %c0_i32 = arith.constant 0 : i32
    %c0_i32_0 = arith.constant 0 : i32
    %c0_i32_1 = arith.constant 0 : i32
    return %arg1, %c0_i32, %c0_i32_0 : i32, i32, i32
  }
  func.func @transform_15(%arg0: i32, %arg1: i32) -> (i32, i32, i32) {
    %c0_i32 = arith.constant 0 : i32
    %c0_i32_0 = arith.constant 0 : i32
    %c0_i32_1 = arith.constant 0 : i32
    return %arg1, %c0_i32, %c0_i32_0 : i32, i32, i32
  }
  func.func @transform_16(%arg0: i32, %arg1: i32) -> (i32, i32, i32) {
    %c0_i32 = arith.constant 0 : i32
    %c0_i32_0 = arith.constant 0 : i32
    %c0_i32_1 = arith.constant 0 : i32
    return %arg1, %c0_i32, %c0_i32_0 : i32, i32, i32
  }
  func.func @transform_17(%arg0: i32, %arg1: i32) -> (i32, i32, i32) {
    %c0_i32 = arith.constant 0 : i32
    %c0_i32_0 = arith.constant 0 : i32
    %c0_i32_1 = arith.constant 0 : i32
    return %arg1, %c0_i32, %c0_i32_0 : i32, i32, i32
  }
  func.func @transform_18(%arg0: i32, %arg1: i32) -> (i32, i32, i32) {
    %c0_i32 = arith.constant 0 : i32
    %c0_i32_0 = arith.constant 0 : i32
    %c0_i32_1 = arith.constant 0 : i32
    return %arg1, %c0_i32, %c0_i32_0 : i32, i32, i32
  }
  func.func @transform_19(%arg0: i32, %arg1: i32) -> (i32, i32, i32) {
    %c0_i32 = arith.constant 0 : i32
    %c0_i32_0 = arith.constant 0 : i32
    %c0_i32_1 = arith.constant 0 : i32
    return %arg1, %c0_i32, %c0_i32_0 : i32, i32, i32
  }
  func.func @transform_20(%arg0: i32, %arg1: i32) -> (i32, i32, i32) {
    %c0_i32 = arith.constant 0 : i32
    %c0_i32_0 = arith.constant 0 : i32
    %c0_i32_1 = arith.constant 0 : i32
    return %arg1, %c0_i32, %c0_i32_0 : i32, i32, i32
  }
  func.func @transform_21(%arg0: i32, %arg1: i32) -> (i32, i32, i32) {
    %c0_i32 = arith.constant 0 : i32
    %c0_i32_0 = arith.constant 0 : i32
    %c0_i32_1 = arith.constant 0 : i32
    return %arg1, %c0_i32, %c0_i32_0 : i32, i32, i32
  }
  func.func @transform_22(%arg0: i32, %arg1: i32) -> (i32, i32) {
    %c0_i32 = arith.constant 0 : i32
    %c0_i32_0 = arith.constant 0 : i32
    %c0_i32_1 = arith.constant 0 : i32
    return %c0_i32, %c0_i32_0 : i32, i32
  }
  func.func @transform_23(%arg0: i32, %arg1: i32) -> (i32, i32) {
    %c0_i32 = arith.constant 0 : i32
    %c0_i32_0 = arith.constant 0 : i32
    %c0_i32_1 = arith.constant 0 : i32
    return %c0_i32, %c0_i32_0 : i32, i32
  }
  func.func @transform_24(%arg0: i32, %arg1: i32) -> (i32, i32) {
    %c0_i32 = arith.constant 0 : i32
    %c0_i32_0 = arith.constant 0 : i32
    %c0_i32_1 = arith.constant 0 : i32
    return %c0_i32, %c0_i32_0 : i32, i32
  }
  func.func @transform_25(%arg0: i32, %arg1: i32) -> (i32, i32) {
    %c0_i32 = arith.constant 0 : i32
    %c0_i32_0 = arith.constant 0 : i32
    %c0_i32_1 = arith.constant 0 : i32
    return %c0_i32, %c0_i32_0 : i32, i32
  }
  func.func @transform_26(%arg0: i32, %arg1: i32) -> (i32, i32) {
    %c0_i32 = arith.constant 0 : i32
    %c0_i32_0 = arith.constant 0 : i32
    %c0_i32_1 = arith.constant 0 : i32
    return %c0_i32, %c0_i32_0 : i32, i32
  }
  func.func @transform_27(%arg0: i32, %arg1: i32) -> (i32, i32) {
    %c0_i32 = arith.constant 0 : i32
    %c0_i32_0 = arith.constant 0 : i32
    %c0_i32_1 = arith.constant 0 : i32
    return %c0_i32, %c0_i32_0 : i32, i32
  }
  func.func @transform_28(%arg0: i32, %arg1: i32) -> (i32, i32, i32) {
    %c0_i32 = arith.constant 0 : i32
    %c0_i32_0 = arith.constant 0 : i32
    %c0_i32_1 = arith.constant 0 : i32
    %c0_i32_2 = arith.constant 0 : i32
    return %c0_i32, %c0_i32_0, %c0_i32_1 : i32, i32, i32
  }
  func.func @transform_29(%arg0: i32, %arg1: i32) -> (i32, i32, i32) {
    %c0_i32 = arith.constant 0 : i32
    %c0_i32_0 = arith.constant 0 : i32
    %c0_i32_1 = arith.constant 0 : i32
    %c0_i32_2 = arith.constant 0 : i32
    return %c0_i32, %c0_i32_0, %c0_i32_1 : i32, i32, i32
  }
  func.func @transform_30(%arg0: i32, %arg1: i32) -> (i32, i32, i32) {
    %c0_i32 = arith.constant 0 : i32
    %c0_i32_0 = arith.constant 0 : i32
    %c0_i32_1 = arith.constant 0 : i32
    %c0_i32_2 = arith.constant 0 : i32
    return %c0_i32, %c0_i32_0, %c0_i32_1 : i32, i32, i32
  }
  func.func @transform_31(%arg0: i32, %arg1: i32) -> (i32, i32, i32) {
    %c0_i32 = arith.constant 0 : i32
    %c0_i32_0 = arith.constant 0 : i32
    %c0_i32_1 = arith.constant 0 : i32
    %c0_i32_2 = arith.constant 0 : i32
    return %c0_i32, %c0_i32_0, %c0_i32_1 : i32, i32, i32
  }
  func.func @transform_32(%arg0: i32, %arg1: i32) -> (i32, i32, i32) {
    %c0_i32 = arith.constant 0 : i32
    %c0_i32_0 = arith.constant 0 : i32
    %c0_i32_1 = arith.constant 0 : i32
    %c0_i32_2 = arith.constant 0 : i32
    return %c0_i32, %c0_i32_0, %c0_i32_1 : i32, i32, i32
  }
  func.func @transform_33(%arg0: i32, %arg1: i32) -> (i32, i32, i32) {
    %c0_i32 = arith.constant 0 : i32
    %c0_i32_0 = arith.constant 0 : i32
    %c0_i32_1 = arith.constant 0 : i32
    %c0_i32_2 = arith.constant 0 : i32
    return %c0_i32, %c0_i32_0, %c0_i32_1 : i32, i32, i32
  }
  func.func @transform_34(%arg0: i32, %arg1: i32) -> (i32, i32, i32) {
    %c0_i32 = arith.constant 0 : i32
    %c0_i32_0 = arith.constant 0 : i32
    %c0_i32_1 = arith.constant 0 : i32
    %c0_i32_2 = arith.constant 0 : i32
    return %c0_i32, %c0_i32_0, %c0_i32_1 : i32, i32, i32
  }
  func.func @transform_35(%arg0: i32, %arg1: i32) -> (i32, i32) {
    %c0_i32 = arith.constant 0 : i32
    %c0_i32_0 = arith.constant 0 : i32
    %c0_i32_1 = arith.constant 0 : i32
    return %c0_i32, %c0_i32_0 : i32, i32
  }
  func.func @transform_36(%arg0: i32, %arg1: i32) -> (i32, i32, i32) {
    %c0_i32 = arith.constant 0 : i32
    %c0_i32_0 = arith.constant 0 : i32
    %c0_i32_1 = arith.constant 0 : i32
    %c0_i32_2 = arith.constant 0 : i32
    return %c0_i32, %c0_i32_0, %c0_i32_1 : i32, i32, i32
  }
  func.func @transform_37(%arg0: i32, %arg1: i32) -> (i32, i32) {
    %c0_i32 = arith.constant 0 : i32
    %c0_i32_0 = arith.constant 0 : i32
    %c0_i32_1 = arith.constant 0 : i32
    return %c0_i32, %c0_i32_0 : i32, i32
  }
  func.func @transform_38(%arg0: i32, %arg1: i32) -> (i32, i32) {
    %c0_i32 = arith.constant 0 : i32
    %c0_i32_0 = arith.constant 0 : i32
    %c0_i32_1 = arith.constant 0 : i32
    return %c0_i32, %c0_i32_0 : i32, i32
  }
  func.func @transform_39(%arg0: i32, %arg1: i32) -> (i32, i32) {
    %c0_i32 = arith.constant 0 : i32
    %c0_i32_0 = arith.constant 0 : i32
    %c0_i32_1 = arith.constant 0 : i32
    return %c0_i32, %c0_i32_0 : i32, i32
  }
  func.func @transform_40(%arg0: i32, %arg1: i32) -> (i32, i32) {
    %c0_i32 = arith.constant 0 : i32
    %c0_i32_0 = arith.constant 0 : i32
    %c0_i32_1 = arith.constant 0 : i32
    return %c0_i32, %c0_i32_0 : i32, i32
  }
  func.func @transform_41(%arg0: i32, %arg1: i32) -> (i32, i32) {
    %c0_i32 = arith.constant 0 : i32
    %c0_i32_0 = arith.constant 0 : i32
    %c0_i32_1 = arith.constant 0 : i32
    return %c0_i32, %c0_i32_0 : i32, i32
  }
  func.func @transform_42(%arg0: i32, %arg1: i32) -> (i32, i32, i32) {
    %c0_i32 = arith.constant 0 : i32
    %c0_i32_0 = arith.constant 0 : i32
    %c0_i32_1 = arith.constant 0 : i32
    return %arg0, %c0_i32, %c0_i32_0 : i32, i32, i32
  }
}

</mosaic_0001>

<bundles_post_ra>
// kernel: topo_ret_forward.1
= control target key start
LH: loop header
LB: loop body
LE: loop exit
PB: predicated region body
PF: predicated region fallthrough
CT: control target
= control target key end

     0   :  { %s10506_s6 = smov 1   ;;  %s10507_s10 = smov 2   ;;  %s11951_s0 = inlined_call_operand.smem [shape: u32[43], index: -1, kind: input, shape index: {}] }
   0x1   :  { %s10563_s5 = sld [smem:[%s11951_s0]]   ;;  %s10508_s14 = smov 3  }
   0x2   :  { %s10568_s9 = sld [smem:[%s11951_s0 + %s10506_s6]]   ;;  %s10509_s18 = smov 4  }
   0x3   :  { %s10573_s13 = sld [smem:[%s11951_s0 + %s10507_s10]]   ;;  %s10510_s22 = smov 5  }
   0x4   :  { %s10578_s17 = sld [smem:[%s11951_s0 + %s10508_s14]]   ;;  %s10511_s26 = smov 6  }
   0x5   :  { %s10583_s21 = sld [smem:[%s11951_s0 + %s10509_s18]]   ;;  %s10512_s30 = smov 7  }
   0x6   :  { %s10588_s25 = sld [smem:[%s11951_s0 + %s10510_s22]]   ;;  %s10513_s4 = smov 8  }
   0x7   :  { %11981 = sst [smem:[#allocation7_spill]] %s10563_s5  ;;  %s10514_s10 = smov 9  }
   0x8   :  { %11982 = sst [smem:[#allocation8_spill]] %s10568_s9  ;;  %s10515_s15 = smov 10  }
   0x9   :  { %11983 = sst [smem:[#allocation9_spill]] %s10573_s13  ;;  %s10516_s20 = smov 11  }
   0xa   :  { %11984 = sst [smem:[#allocation10_spill]] %s10578_s17  ;;  %s10518_s1 = smov 13  }
   0xb   :  { %11985 = sst [smem:[#allocation11_spill]] %s10583_s21  ;;  %s10519_s7 = smov 14  }
   0xc   :  { %11986 = sst [smem:[#allocation12_spill]] %s10588_s25  ;;  %s10521_s22 = smov 16  }
   0xd   :  { %s10593_s29 = sld [smem:[%s11951_s0 + %s10511_s26]]   ;;  %s10517_s26 = smov 12  }
   0xe   :  { %s10598_s3 = sld [smem:[%s11951_s0 + %s10512_s30]]   ;;  %s10522_s28 = smov 17  }
   0xf   :  { %s10603_s8 = sld [smem:[%s11951_s0 + %s10513_s4]]   ;;  %s10533_s23 = smov 28  }
  0x10   :  { %s10608_s14 = sld [smem:[%s11951_s0 + %s10514_s10]]   ;;  %s10535_s10 = smov 30  }
  0x11   :  { %s10613_s19 = sld [smem:[%s11951_s0 + %s10515_s15]]   ;;  %s10520_s15 = smov 15  }
  0x12   :  { %s10618_s24 = sld [smem:[%s11951_s0 + %s10516_s20]]   ;;  %s10536_s16 = smov 31  }
  0x13   :  { %11987 = sst [smem:[#allocation13_spill]] %s10593_s29 }
  0x14   :  { %11988 = sst [smem:[#allocation14_spill]] %s10598_s3 }
  0x15   :  { %11989 = sst [smem:[#allocation15_spill]] %s10603_s8 }
  0x16   :  { %11990 = sst [smem:[#allocation16_spill]] %s10608_s14 }
  0x17   :  { %11991 = sst [smem:[#allocation17_spill]] %s10613_s19 }
  0x18   :  { %s10623_s30 = sld [smem:[%s11951_s0 + %s10517_s26]]  }
  0x19   :  { %s10628_s6 = sld [smem:[%s11951_s0 + %s10518_s1]]   ;;  %s10534_s1 = smov 29  }
  0x1a   :  { %s10633_s12 = sld [smem:[%s11951_s0 + %s10519_s7]]   ;;  %s10523_s7 = smov 18  }
  0x1b   :  { %s10638_s20 = sld [smem:[%s11951_s0 + %s10520_s15]]   ;;  %s10524_s15 = smov 19  }
  0x1c   :  { %s10643_s27 = sld [smem:[%s11951_s0 + %s10521_s22]]   ;;  %s10525_s22 = smov 20  }
  0x1d   :  { %s10648_s4 = sld [smem:[%s11951_s0 + %s10522_s28]]   ;;  %s10526_s28 = smov 21  }
  0x1e   :  { %s10653_s25 = sld [smem:[%s11951_s0 + %s10523_s7]]   ;;  %s10527_s7 = smov 22  }
  0x1f   :  { %11992 = sst [smem:[#allocation18_spill]] %s10628_s6 }
  0x20   :  { %11993 = sst [smem:[#allocation19_spill]] %s10633_s12 }
  0x21   :  { %s10658_s21 = sld [smem:[%s11951_s0 + %s10524_s15]]   ;;  %s10528_s15 = smov 23  }
  0x22   :  { %11994 = sst [smem:[#allocation20_spill]] %s10643_s27 }
  0x23   :  { %s10663_s17 = sld [smem:[%s11951_s0 + %s10525_s22]]   ;;  %s10529_s22 = smov 24  }
  0x24   :  { %11995 = sst [smem:[#allocation21_spill]] %s10653_s25 }
  0x25   :  { %s10668_s13 = sld [smem:[%s11951_s0 + %s10526_s28]]   ;;  %s10530_s28 = smov 25  }
  0x26   :  { %s10673_s25 = sld [smem:[%s11951_s0 + %s10527_s7]]   ;;  %s10531_s7 = smov 26  }
  0x27   :  { %11996 = sst [smem:[#allocation22_spill]] %s10658_s21 }
  0x28   :  { %s10678_s21 = sld [smem:[%s11951_s0 + %s10528_s15]]   ;;  %s10532_s15 = smov 27  }
  0x29   :  { %11997 = sst [smem:[#allocation23_spill]] %s10663_s17 }
  0x2a   :  { %s10683_s17 = sld [smem:[%s11951_s0 + %s10529_s22]]   ;;  %s10541_s22 = smov 36  }
  0x2b   :  { %11998 = sst [smem:[#allocation24_spill]] %s10668_s13 }
  0x2c   :  { %11999 = sst [smem:[#allocation25_spill]] %s10673_s25 }
  0x2d   :  { %s10688_s13 = sld [smem:[%s11951_s0 + %s10530_s28]]  }
  0x2e   :  { %12000 = sst [smem:[#allocation26_spill]] %s10678_s21 }
  0x2f   :  { %s10693_s25 = sld [smem:[%s11951_s0 + %s10531_s7]]  }
  0x30   :  { %12001 = sst [smem:[#allocation27_spill]] %s10683_s17 }
  0x31   :  { %s8418_s21 = sld [smem:[%s11951_s0 + %s10532_s15]]  }
  0x32   :  { %s10701_s17 = sld [smem:[%s11951_s0 + %s10533_s23]]   ;;  %s10537_s23 = smov 32  }
  0x33   :  { %12002 = sst [smem:[#allocation28_spill]] %s10688_s13 }
  0x34   :  { %s10706_s13 = sld [smem:[%s11951_s0 + %s10534_s1]]   ;;  %s10538_s1 = smov 33  }
  0x35   :  { %12003 = sst [smem:[#allocation29_spill]] %s10693_s25 }
  0x36   :  { %s10711_s25 = sld [smem:[%s11951_s0 + %s10535_s10]]   ;;  %s10539_s10 = smov 34  }
  0x37   :  { %s10716_s27 = sld [smem:[%s11951_s0 + %s10536_s16]]   ;;  %v90_v0 = vstv %s8418_s21  ;;  %s10540_s16 = smov 35  }
  0x38   :  { %12004 = sst [smem:[#allocation30_spill]] %s10701_s17  ;;  %91 = vst [vmem:[#allocation3] sm:$0x1] %v90_v0  ;;  %s10542_s21 = smov 37  }
  0x39   :  { %s10721_s17 = sld [smem:[%s11951_s0 + %s10537_s23]]  }
  0x3a   :  { %12005 = sst [smem:[#allocation31_spill]] %s10706_s13 }
  0x3b   :  { %s10726_s13 = sld [smem:[%s11951_s0 + %s10538_s1]]  }
  0x3c   :  { %12006 = sst [smem:[#allocation32_spill]] %s10711_s25 }
  0x3d   :  { %12007 = sst [smem:[#allocation33_spill]] %s10716_s27  ;;  %s10544_s27 = smov 39  }
  0x3e   :  { %s10731_s15 = sld [smem:[%s11951_s0 + %s10539_s10]]   ;;  %s10543_s10 = smov 38  }
  0x3f   :  { %12008 = sst [smem:[#allocation34_spill]] %s10721_s17  ;;  %s10545_s17 = smov 40  }
  0x40   :  { %s10736_s23 = sld [smem:[%s11951_s0 + %s10540_s16]]  }
  0x41   :  { %12009 = sst [smem:[#allocation35_spill]] %s10726_s13 }
  0x42   :  { %s10741_s1 = sld [smem:[%s11951_s0 + %s10541_s22]]  }
  0x43   :  { %s10746_s7 = sld [smem:[%s11951_s0 + %s10542_s21]]   ;;  %s10546_s21 = smov 41  }
  0x44   :  { %12010 = sst [smem:[#allocation36_spill]] %s10731_s15  ;;  %s10547_s15 = smov 42  }
  0x45   :  { %s10751_s13 = sld [smem:[%s11951_s0 + %s10543_s10]]  }
  0x46   :  { %12011 = sst [smem:[#allocation37_spill]] %s10736_s23 }
  0x47   :  { %s10756_s23 = sld [smem:[%s11951_s0 + %s10544_s27]]  }
  0x48   :  { %12012 = sst [smem:[#allocation38_spill]] %s10741_s1 }
  0x49   :  { %12013 = sst [smem:[#allocation39_spill]] %s10746_s7 }
  0x4a   :  { %s10761_s1 = sld [smem:[%s11951_s0 + %s10545_s17]]  }
  0x4b   :  { %12014 = sst [smem:[#allocation40_spill]] %s10751_s13 }
  0x4c   :  { %s10766_s7 = sld [smem:[%s11951_s0 + %s10546_s21]]  }
  0x4d   :  { %12015 = sst [smem:[#allocation41_spill]] %s10756_s23 }
  0x4e   :  { %s10771_s13 = sld [smem:[%s11951_s0 + %s10547_s15]]  }
  0x50   :  { %12016 = sst [smem:[#allocation42_spill]] %s10761_s1 }
  0x52   :  { %12017 = sst [smem:[#allocation43_spill]] %s10766_s7 }
  0x54   :  { %12018 = sst [smem:[#allocation44_spill]] %s10771_s13 }
  0x55   :  { %92 = vsyncpa [#allocation5], 0 }
  0x56   :  { %94 = vsyncpa [#allocation5 + $0x1], 0  ;;  %s10773_s27 = smov 0   ;;  %s10775_s16 = smov 0  }
  0x57   :  { %s10777_s18 = smov 0   ;;  %s10779_s17 = smov 0  }
  0x58   :  { %s10781_s22 = smov 0   ;;  %s10783_s26 = smov 0  }
  0x59   :  { %s10785_s21 = smov 0   ;;  %s10787_s28 = smov 0  }
  0x5a LB: > { %12019 = sst [smem:[#allocation45_spill]] %s10476_s27  ;;  %s8434_s0 = sadd.s32 4294967295, %s10504_s28   ;;  %s10504_s28 = sphi %s10787_s28, %s100_s28   ;;  %s10500_s21 = sphi %s10785_s21, %s12105_s21   ;;  %s10496_s26 = sphi %s10783_s26, %s12104_s26   ;;  %s10492_s22 = sphi %s10781_s22, %s12103_s22   ;;  %s10488_s17 = sphi %s10779_s17, %s12102_s17   ;;  %s10484_s18 = sphi %s10777_s18, %s12101_s18   ;;  %s10480_s16 = sphi %s10775_s16, %s12107_s16   ;;  %s10476_s27 = sphi %s10773_s27, %s12106_s27  }
  0x5b   : > { %12020 = sst [smem:[#allocation46_spill]] %s10484_s18  ;;  %s8435_s2 = sadd.s32 4294967294, %s10504_s28  }
  0x5c   : > { %12021 = sst [smem:[#allocation47_spill]] %s10492_s22  ;;  %s109_s15 = sadd.s32 1, %s10496_s26 }
  0x5d   : > { %12022 = sst [smem:[#allocation48_spill]] %s10496_s26  ;;  %p110_p0 = scmp.ge.s32.totalorder %s109_s15, 3 }
  0x5e   : > { %12023 = sst [smem:[#allocation49_spill]] %s10500_s21  ;;  %s112_s10 = sadd.s32 1, %s10500_s21 }
  0x5f   : > { %12024 = sst [smem:[#allocation50_spill]] %s10504_s28  ;;  %p1101_p1 = scmp.ne.s32.totalorder %s10484_s18, %s10480_s16 }
  0x60   : > { %p1102_p2 = scmp.eq.s32.totalorder %s8434_s0, 5  ;;  %s12109_s15 = smov (%p110_p0, %s109_s15), 0 }
  0x61   : > { %12025 = sst [smem:[#allocation51_spill]] %s12109_s15  ;;  %s12111_s10 = smov (!%p110_p0, %s112_s10), %s10500_s21 }
  0x62   : > { %p10822_p3 = por %p1102_p2, %p1101_p1  ;;  %p1107_p4 = scmp.ne.s32.totalorder %s10480_s16, %s10476_s27 }
  0x63   : > { %p114_p5 = scmp.ge.s32.totalorder %s12111_s10, 2  ;;  %p1108_p6 = scmp.eq.s32.totalorder %s8435_s2, 5 }
  0x64   : > { %s12026_s11 = scalar_select %p10822_p3, 1, 0 }
  0x65   : > { %p8438_p7 = scmp.ge.s32.totalorder %s10504_s28, 1  ;;  %p1326_p8 = scmp.lt.s32.totalorder %s10504_s28, 7 }
  0x66   : > { %12027 = sst [smem:[#allocation52_spill]] %s12026_s11  ;;  %s12113_s10 = smov (%p114_p5, %s12111_s10), 0 }
  0x67   : > { %12028 = sst [smem:[#allocation53_spill]] %s12113_s10  ;;  %p10832_p9 = por %p1108_p6, %p1107_p4 }
  0x68   : > { %p1327_p10 = pnand %p8438_p7, %p1326_p8  ;;  %s1088_s0 = ssub.s32 %s10500_s21, %s12113_s10 }
  0x69   : > { %s12029_s26 = scalar_select %p10832_p9, 1, 0 }
  0x6a   : > { %s1091_s15 = sadd.s32 1, %s10484_s18  ;;  %p1089_p11 = scmp.eq.s32.totalorder %s1088_s0, 0 }
  0x6b   : > { %12030 = sst [smem:[#allocation54_spill]] %s12029_s26  ;;  %1330 = sbr.rel (%p1327_p10) target bundleno = 8636 (0x21bc), region = 188 }
  0x6c   : > { %s10840_s13 = scalar_select %p1089_p11, %s10484_s18, %s1091_s15  }
  0x6e   : > { %12031 = sst [smem:[#allocation55_spill]] %s10840_s13 }
  0x72   : > { %s12032_s5 = sld [smem:[#allocation7_spill]]  ;;  %s12033_s9 = sld [smem:[#allocation8_spill]] }
  0x73   : > { %s12036_s29 = sld [smem:[#allocation13_spill]]  ;;  %s12037_s8 = sld [smem:[#allocation15_spill]] }
  0x74   : > { %s12038_s3 = sld [smem:[#allocation14_spill]]  ;;  %s12039_s14 = sld [smem:[#allocation16_spill]] }
  0x75   : > { %s12040_s19 = sld [smem:[#allocation17_spill]]  ;;  %p1496_p12 = scmp.lt.s32.totalorder %s10492_s22, 1 }
  0x76   : > { %p1506_p13 = scmp.lt.s32.totalorder %s10488_s17, 2  ;;  %s12042_s18 = sld [smem:[#allocation20_spill]] }
  0x77   : > { %s1497_s15 = scalar_select %p1496_p12, %s10492_s22, 1 }
  0x78   : > { %s10847_s0 = scalar_select %p1506_p13, %s10488_s17, 2 }
  0x79   : > { %s8700_s10 = sshll.u32 %s1497_s15, 4  ;;  %s12043_s28 = sld [smem:[#allocation21_spill]] }
  0x7a   : > { %s10850_s21 = scalar_lea.vmem %s12032_s5, %s8700_s10  ;;  %s10853_s2 = scalar_lea.vmem %s12033_s9, %s8700_s10 }
  0x7b   : > { %12041 = sst [smem:[#allocation56_spill]] %s10853_s2  ;;  %s10210_s13 = smul.u32 72, %s10847_s0 }
  0x7c   : > { %s10211_s27 = smul.u32 3, %s10847_s0  ;;  %s12044_s22 = sld [smem:[#allocation22_spill]] }
  0x7d   : > { %s10862_s7 = scalar_lea.vmem %s12036_s29, %s10210_s13  ;;  %s12046_s15 = sld [smem:[#allocation23_spill]] }
  0x7e   : > { %12045 = sst [smem:[#allocation57_spill]] %s10862_s7  ;;  %s10865_s23 = scalar_lea.vmem %s12037_s8, %s10210_s13 }
  0x7f   : > { %s12047_s5 = sld [smem:[#allocation24_spill]]  ;;  %s10868_s10 = scalar_lea.vmem %s12038_s3, %s10211_s27 }
  0x80   : > { %12048 = sst [smem:[#allocation58_spill]] %s10868_s10  ;;  %s10871_s9 = scalar_lea.vmem %s12039_s14, %s10211_s27 }
  0x81   : > { %12049 = sst [smem:[#allocation59_spill]] %s10871_s9  ;;  %s10874_s26 = scalar_lea.vmem %s12040_s19, %s10210_s13 }
  0x82   : > { %s10877_s1 = scalar_lea.vmem %s10618_s24, %s10211_s27  ;;  %s10212_s11 = smul.u32 24, %s10847_s0 }
  0x83   : > { %s1546_s25 = scalar_lea.vmem %s10638_s20, %s10847_s0  ;;  %s10213_s2 = smul.u32 384, %s10847_s0 }
  0x84   : > { %s8448_s29 = sshll.u32 %s10847_s0, 4  ;;  %s10885_s12 = scalar_lea.vmem %s10623_s30, %s10212_s11 }
  0x85   : > { %s10888_s6 = scalar_lea.vmem %s10648_s4, %s8448_s29  ;;  %s10891_s8 = scalar_lea.vmem %s12042_s18, %s10213_s2 }
  0x86   : > { %s8702_s7 = sshll.u32 %s10847_s0, 11  ;;  %s1563_s10 = scalar_lea.vmem %s12044_s22, %s10847_s0 }
  0x87   : > { %s10895_s3 = scalar_lea.vmem %s12043_s28, %s8702_s7  ;;  %s1566_s14 = scalar_lea.vmem %s12046_s15, %s10847_s0 }
  0x88   : > { %s1569_s9 = scalar_lea.vmem %s12047_s5, %s10847_s0  ;;  %s12050_s13 = sand.u32 1, %s10480_s16  }
  0x89   : > { %s10905_s19 = scalar_lea.vmem [#allocation4], %s12050_s13  ;;  %p8451_p0 = scmp.ne.s32.totalorder %s10488_s17, 0 }
  0x8a   : > { %s12051_s27 = sld [smem:[#allocation9_spill]] (!%p8451_p0)  ;;  %s12052_s11 = sld [smem:[#allocation10_spill]] (!%p8451_p0)  ;;  %v1574_v1 = vld [vmem:[%s10850_s21] sm:$0xff] (!%p8451_p0)  ;;  %v10548_v2 = vmov (!%p8451_p0), 0   ;;  %v1575_v3 = vld [vmem:[%s10850_s21 + $0x8] sm:$0xff] (!%p8451_p0)  ;;  %vm1606_vm0 = vcmask (!%p8451_p0), 195584  }
  0x8b   : > { %1573 = sbr.rel (%p8451_p0) target bundleno = 590 (0x24e), region = 192  ;;  %10333 = vset.pattern.permute.xlu0 (!%p8451_p0), %v10548_v2  ;;  %s12053_s5 = sld [smem:[#allocation11_spill]] (!%p8451_p0) }
  0x8c   : > { %1579 = vperm.xlu0 (!%p8451_p0), %10333, %v1574_v1   ;;  %s12054_s29 = sld [smem:[#allocation12_spill]] (!%p8451_p0) }
  0x90   : > { %1584 = vperm.xlu0 (!%p8451_p0), %10333, %v1575_v3   ;;  %v8452_v4 = vld [vmem:[%s12051_s27] ss:$0 sm:$0xff] (!%p8451_p0) }
  0x91   : > { %v8453_v6 = vld [vmem:[%s12052_s11] ss:$0 sm:$0xff] (!%p8451_p0) }
  0x92   : > { %v8454_v31 = vld [vmem:[%s12053_s5] ss:$0 sm:$0xff] }
  0x93   : > { %v8455_v33 = vld [vmem:[%s12054_s29] ss:$0 sm:$0xff] }
 0x10b   : > { %v1580_v5 = vpop.permute.xlu0 %1579 }
 0x10c   : > { %v1593_v7 = vmul.f32 %v8452_v4, %v1580_v5 }
 0x10e   : > { %v1602_v8 = vadd.f32 %v8453_v6, %v1593_v7 }
 0x10f   : > { %v1585_v9 = vpop.permute.xlu0 %1584 }
 0x110   : > { %v1594_v10 = vmul.f32 %v8452_v4, %v1585_v9  ;;  %v1607_v11 = vsel %vm1606_vm0, %v1602_v8, 0.0 }
 0x111   : > { %1608 = vadd.xlane.f32.xlu1 %v1607_v11 }
 0x112   : > { %v1603_v12 = vadd.f32 %v8453_v6, %v1594_v10 }
 0x114   : > { %v1610_v13 = vsel %vm1606_vm0, %v1603_v12, 0.0 }
 0x115   : > { %1611 = vadd.xlane.f32.xlu1 %v1610_v13 }
 0x19e   : > { %v1609_v14 = vpop.xlane.xlu1 %1608 }
 0x19f   : > { %v1614_v15 = vmul.f32 0.041666668, %v1609_v14 }
 0x1a1   : > { %v1616_v16 = vsub.f32 %v1602_v8, %v1614_v15 }
 0x1a2   : > { %v1612_v17 = vpop.xlane.xlu1 %1611 }
 0x1a3   : > { %v1615_v18 = vmul.f32 0.041666668, %v1612_v17  ;;  %v1618_v19 = vmul.f32 %v1616_v16, %v1616_v16 }
 0x1a5   : > { %v1617_v20 = vsub.f32 %v1603_v12, %v1615_v18  ;;  %v1620_v21 = vsel %vm1606_vm0, %v1618_v19, 0.0 }
 0x1a6   : > { %1621 = vadd.xlane.f32.xlu0 %v1620_v21 }
 0x1a7   : > { %v1619_v22 = vmul.f32 %v1617_v20, %v1617_v20 }
 0x1a9   : > { %v1623_v23 = vsel %vm1606_vm0, %v1619_v22, 0.0 }
 0x1aa   : > { %1624 = vadd.xlane.f32.xlu1 %v1623_v23 }
 0x233   : > { %v1622_v24 = vpop.xlane.xlu0 %1621 }
 0x234   : > { %v1626_v25 = vmul.f32 0.041666668, %v1622_v24 }
 0x236   : > { %v1628_v26 = vadd.f32 1e-05, %v1626_v25 }
 0x237   : > { %v1625_v27 = vpop.xlane.xlu1 %1624 }
 0x238   : > { %10334 = vrsqrt.f32 %v1628_v26  ;;  %v1627_v28 = vmul.f32 0.041666668, %v1625_v27 }
 0x23a   : > { %v1629_v29 = vadd.f32 1e-05, %v1627_v28 }
 0x23c   : > { %10336 = vrsqrt.f32 %v1629_v29 }
 0x242   : > { %v10335_v30 = vpop.eup %10334 }
 0x243   : > { %v1632_v32 = vmul.f32 %v10335_v30, %v1616_v16 }
 0x245   : > { %v1640_v34 = vmul.f32 %v8454_v31, %v1632_v32 }
 0x246   : > { %v10337_v35 = vpop.eup %10336 }
 0x247   : > { %v1648_v36 = vadd.f32 %v8455_v33, %v1640_v34  ;;  %v1633_v37 = vmul.f32 %v10337_v35, %v1617_v20 }
 0x249   : > { %1650 = vst.msk [vmem:[#allocation2] sm:$0xff] %vm1606_vm0, %v1648_v36  ;;  %v1641_v38 = vmul.f32 %v8454_v31, %v1633_v37 }
 0x24b   : > { %v1649_v39 = vadd.f32 %v8455_v33, %v1641_v38 }
 0x24d   : > { %1651 = vst.msk [vmem:[#allocation2 + $0x8] sm:$0xff] %vm1606_vm0, %v1649_v39 }
 0x24e PF: > { %s12055_s7 = sld [smem:[#allocation57_spill]]  ;;  %v1746_v40 = vld [vmem:[%s10865_s23] sm:$0xff]  ;;  %v1747_v41 = vld [vmem:[%s10865_s23 + $0x8] sm:$0xff]  ;;  %vm1664_vm1 = vcmask 195584   ;;  %v1748_v45 = vld [vmem:[%s10865_s23 + $0x10] sm:$0xff]  ;;  %s12056_s18 = sld [smem:[#allocation59_spill]] }
 0x24f   : > { %v9699_v42 = vpack.c.bf16 %v1747_v41, %v1746_v40  ;;  %s12057_s22 = sld [smem:[#allocation58_spill]]  ;;  %vm1916_vm2 = vcmask 64512   ;;  %v1831_v62 = vld [vmem:[%s10874_s26] sm:$0xff]  ;;  %v1832_v63 = vld [vmem:[%s10874_s26 + $0x8] sm:$0xff]  ;;  %v1833_v1 = vld [vmem:[%s10874_s26 + $0x10] sm:$0xff]  ;;  %vm2006_vm4 = vcmask 130048  }
 0x250   : > { %v10922_v43 = vld [vmem:[#allocation2] sm:$0xff]  ;;  %vm10944_vm3 = vmpackc.low %vm1916_vm2, %vm1916_vm2  ;;  %v9703_v0 = vpack.c.bf16 %v1832_v63, %v1831_v62  ;;  %v8478_v24 = vld [vmem:[%s10865_s23 + $0x18] sm:$0xff]  ;;  %p8555_p1 = scmp.ne.s32.totalorder %s10488_s17, 2 }
 0x251   : > { %9264 = vmatprep.mubr.msk.f32.mxu1 %vm1664_vm1, %v10922_v43  ;;  %9255 = vmatprep.mubr.msk.f32.mxu0 %vm1664_vm1, %v10922_v43  ;;  %v8462_v19 = vld [vmem:[%s10877_s1] ss:$0 sm:$0xff]  ;;  %v8480_v37 = vld [vmem:[%s10865_s23 + $0x28] sm:$0xff]  ;;  %vm5038_vm5 = vcmask (!%p8555_p1), 392192   ;;  %s12070_s17 = sld [smem:[#allocation29_spill]] (!%p8555_p1)  ;;  %s12072_s21 = sld [smem:[#allocation30_spill]] (!%p8555_p1) }
 0x252   : > { %9700 = vmatprep.subr.bf16.mxu1 %v9699_v42  ;;  %v8479_v25 = vld [vmem:[%s10865_s23 + $0x20] sm:$0xff]  ;;  %s12074_s28 = sld [smem:[#allocation26_spill]] (!%p8555_p1)  ;;  %vm5139_vm6 = vcmask (!%p8555_p1), 1043456   ;;  %s12075_s15 = sld [smem:[#allocation32_spill]] (!%p8555_p1)  ;;  %vm5132_vm7 = vcmask (!%p8555_p1), 293888   ;;  %vm5309_vm8 = vcmask (!%p8555_p1), 7168  }
 0x253   : > { %9702 = vmatpush3.bf16.msra.mxu1 %v9699_v42  ;;  %v9721_v26 = vpack.c.bf16 %v8479_v25, %v8478_v24  ;;  %s12077_s13 = sld [smem:[#allocation33_spill]] (!%p8555_p1)  ;;  %vm5619_vm9 = vcmask (!%p8555_p1), 48128   ;;  %s12080_s27 = sld [smem:[#allocation31_spill]] (!%p8555_p1)  ;;  %vm6274_vm11 = vcmask (!%p8555_p1), 1045504   ;;  %vm10553_vm12 = vmmov (!%p8555_p1), 0  }
 0x254   : > { %v1654_v44 = vld [vmem:[%s12055_s7] sm:$0xff]  ;;  %v1655_v46 = vld [vmem:[%s12055_s7 + $0x8] sm:$0xff]  ;;  %v1656_v48 = vld [vmem:[%s12055_s7 + $0x10] sm:$0xff]  ;;  %9262 = vmatprep.subr.mxu1 %v1748_v45  ;;  %s12082_s5 = sld [smem:[#allocation34_spill]] (!%p8555_p1)  ;;  %s12083_s29 = sld [smem:[#allocation35_spill]] (!%p8555_p1)  ;;  %vm7967_vm13 = vcmask (!%p8555_p1), 588800  }
 0x255   : > { %v9695_v47 = vpack.c.bf16 %v1655_v46, %v1654_v44  ;;  %v10932_v49 = vld [vmem:[#allocation2 + $0x8] sm:$0xff]  ;;  %v8459_v50 = vld [vmem:[%s12056_s18] ss:$0 sm:$0xff]  ;;  %v8471_v27 = vld [vmem:[%s12055_s7 + $0x18] sm:$0xff]  ;;  %vm8125_vm14 = vcmask (!%p8555_p1), 32768  }
 0x256   : > { %v8456_v54 = vld [vmem:[%s12057_s22] ss:$0 sm:$0xff]  ;;  %v8473_v30 = vld [vmem:[%s12055_s7 + $0x28] sm:$0xff]  ;;  %v8475_v38 = vld [vmem:[%s12057_s22 + $0x1] ss:$0 sm:$0xff] }
 0x257   : > { %9696 = vmatprep.subr.bf16.mxu0 %v9695_v47  ;;  %9263 = vmatpush3.msra.mxu1 %v1748_v45  ;;  %v8472_v28 = vld [vmem:[%s12055_s7 + $0x20] sm:$0xff]  ;;  %s12071_s2 = smov (!%p8555_p1), %s12070_s17  ;;  %vm11635_vm10 = vmpackc.low (!%p8555_p1), %vm5619_vm9, %vm5619_vm9 }
 0x258   : > { %9698 = vmatpush3.bf16.msra.mxu0 %v9695_v47  ;;  %9265 = vmatmul.mubr.msk.f32.vlgmr.msra.gmra.mrb[0].mxu1 %vm1664_vm1, %v10932_v49  ;;  %v9717_v29 = vpack.c.bf16 %v8472_v28, %v8471_v27  ;;  %v8482_v46 = vld [vmem:[%s12056_s18 + $0x1] ss:$0 sm:$0xff]  ;;  %v8511_v27 = vld [vmem:[%s10865_s23 + $0x38] sm:$0xff] }
 0x259   : > { %9253 = vmatprep.subr.mxu0 %v1656_v48  ;;  %v8505_v25 = vld [vmem:[%s12055_s7 + $0x40] sm:$0xff]  ;;  %s12081_s11 = smov (!%p8555_p1), %s12080_s27 }
 0x25c   : > { %9254 = vmatpush3.msra.mxu0 %v1656_v48 }
 0x25d   : > { %9256 = vmatmul.mubr.msk.f32.vlgmr.msra.gmra.mrb[0].mxu0 %vm1664_vm1, %v10932_v49  ;;  %9704 = vmatprep.subr.bf16.mxu0 %v9703_v0 }
 0x25e   : > { %9273 = vmatprep.mubr.msk.f32.mxu0 %vm1664_vm1, %v10922_v43  ;;  %9706 = vmatpush3.bf16.msra.mxu0 %v9703_v0 }
 0x25f   : > { %9271 = vmatprep.subr.mxu0 %v1833_v1 }
 0x262   : > { %9272 = vmatpush3.msra.mxu0 %v1833_v1 }
 0x263   : > { %9274 = vmatmul.mubr.msk.f32.vlgmr.msra.gmra.mrb[2].mxu0 %vm1664_vm1, %v10932_v49 }
 0x32b   : > { %v9266_v51 = vpop.f32.mrb[0].mxu1 }
 0x32c   : > { %v1828_v52 = vadd.f32 %v9266_v51, %v8459_v50  ;;  %v1822_v53 = vpop.f32.mrb[1].mxu1 }
 0x32d   : > { %v1823_v55 = vadd.f32 %v8459_v50, %v1822_v53  ;;  %v8485_v53 = vld [vmem:[%s10874_s26 + $0x18] sm:$0xff] }
 0x32f   : > { %v9707_v59 = vpack.c.bf16 %v1828_v52, %v1823_v55 }
 0x330   : > { %v9257_v56 = vpop.f32.mrb[0].mxu0 }
 0x331   : > { %v1737_v58 = vpop.f32.mrb[1].mxu0  ;;  %9709 = vmatprep.subr.msk.bf16.mxu1 %vm10944_vm3, %v9707_v59  ;;  %v1743_v61 = vadd.f32 %v9257_v56, %v8456_v54  ;;  %v8487_v56 = vld [vmem:[%s10874_s26 + $0x28] sm:$0xff] }
 0x332   : > { %v1738_v60 = vadd.f32 %v8456_v54, %v1737_v58  ;;  %9712 = vmatpush3.bf16.xpose.msk.msra.mxu1 %vm10944_vm3, %v9707_v59  ;;  %v8486_v54 = vld [vmem:[%s10874_s26 + $0x20] sm:$0xff] }
 0x333   : > { %9718 = vmatprep.subr.bf16.mxu1 %v9717_v29  ;;  %v9725_v55 = vpack.c.bf16 %v8486_v54, %v8485_v53 }
 0x334   : > { %9280 = vmatprep.mubr.msk.f32.mxu1 %vm1916_vm2, %v1738_v60 }
 0x336   : > { %v9275_v18 = vpop.f32.mrb[2].mxu0 }
 0x337   : > { %v1907_v20 = vpop.f32.mrb[3].mxu0  ;;  %v1913_v21 = vadd.f32 %v9275_v18, %v8462_v19 }
 0x338   : > { %v1908_v22 = vadd.f32 %v8462_v19, %v1907_v20 }
 0x339   : > { %9281 = vmatmul.mubr.msk.f32.vlgmr.msra.gmra.mrb[2].mxu1 %vm1916_vm2, %v1743_v61 }
 0x33a   : > { %9296 = vmatprep.mubr.msk.f32.mxu1 %vm1664_vm1, %v10922_v43  ;;  %v9713_v23 = vpack.c.bf16 %v1913_v21, %v1908_v22  ;;  %9720 = vmatpush3.bf16.msra.mxu1 %v9717_v29  ;;  %v8512_v29 = vld [vmem:[%s10865_s23 + $0x40] sm:$0xff] }
 0x33b   : > { %9294 = vmatprep.subr.mxu1 %v8473_v30 }
 0x33c   : > { %9714 = vmatprep.subr.bf16.mxu0 %v9713_v23 }
 0x33d   : > { %9716 = vmatpush3.bf16.msra.mxu0 %v9713_v23 }
 0x33e   : > { %9722 = vmatprep.subr.bf16.mxu0 %v9721_v26  ;;  %9295 = vmatpush3.msra.mxu1 %v8473_v30  ;;  %v8498_v30 = vld [vmem:[%s10885_s12 + $0x8] sm:$0xff] }
 0x33f   : > { %9297 = vmatmul.mubr.msk.f32.vlgmr.msra.gmra.mrb[4].mxu1 %vm1664_vm1, %v10932_v49  ;;  %9726 = vmatprep.subr.bf16.mxu1 %v9725_v55 }
 0x340   : > { %9314 = vmatprep.mubr.msk.f32.mxu1 %vm1664_vm1, %v10922_v43  ;;  %9728 = vmatpush3.bf16.msra.mxu1 %v9725_v55 }
 0x341   : > { %9312 = vmatprep.subr.mxu1 %v8487_v56 }
 0x344   : > { %9313 = vmatpush3.msra.mxu1 %v8487_v56 }
 0x345   : > { %9315 = vmatmul.mubr.msk.f32.vlgmr.msra.gmra.mrb[6].mxu1 %vm1664_vm1, %v10932_v49 }
 0x40c   : > { %v9282_v2 = vpop.f32.mrb[2].mxu1 }
 0x40d   : > { %v1995_v3 = vpop.f32.mrb[3].mxu1  ;;  %v2005_v5 = vmul.f32 0.35355338, %v9282_v2 }
 0x40e   : > { %v2004_v4 = vmul.f32 0.35355338, %v1995_v3 }
 0x40f   : > { %v2010_v7 = vsel %vm2006_vm4, %v2005_v5, -inf }
 0x410   : > { %v2007_v6 = vsel %vm2006_vm4, %v2004_v4, -inf }
 0x411   : > { %2008 = vmax.xlane.f32.xlu0 %v2007_v6 }
 0x412   : > { %v9298_v39 = vpop.f32.mrb[4].mxu1 }
 0x413   : > { %v2195_v40 = vadd.f32 %v9298_v39, %v8475_v38  ;;  %v2189_v41 = vpop.f32.mrb[5].mxu1 }
 0x414   : > { %v2190_v42 = vadd.f32 %v8475_v38, %v2189_v41  ;;  %v8514_v38 = vld [vmem:[%s12056_s18 + $0x2] ss:$0 sm:$0xff]  ;;  %s12085_s18 = sld [smem:[#allocation38_spill]] (!%p8555_p1) }
 0x415   : > { %2011 = vmax.xlane.f32.xlu0 %v2010_v7 }
 0x49e   : > { %v2009_v8 = vpop.xlane.xlu0 %2008 }
 0x49f   : > { %v2013_v9 = vsub.f32 %v2004_v4, %v2009_v8 }
 0x4a1   : > { %v2015_v10 = vmul.f32 1.442695, %v2013_v9 }
 0x4a2   : > { %v2012_v11 = vpop.xlane.xlu0 %2011 }
 0x4a3   : > { %10338 = vpow2.f32 %v2015_v10  ;;  %v2014_v12 = vsub.f32 %v2005_v5, %v2012_v11  ;;  %v9316_v10 = vpop.f32.mrb[6].mxu1  ;;  %v8489_v11 = vld [vmem:[%s10877_s1 + $0x1] ss:$0 sm:$0xff] }
 0x4a5   : > { %v2017_v13 = vmul.f32 1.442695, %v2014_v12  ;;  %v2363_v12 = vpop.f32.mrb[7].mxu1 }
 0x4a7   : > { %10340 = vpow2.f32 %v2017_v13  ;;  %v2369_v13 = vadd.f32 %v9316_v10, %v8489_v11 }
 0x4ad   : > { %v10339_v14 = vpop.eup %10338 }
 0x4ae   : > { %v2019_v15 = vsel %vm2006_vm4, %v10339_v14, 0.0 }
 0x4af   : > { %2020 = vadd.xlane.f32.xlu1 %v2019_v15 }
 0x4b1   : > { %v10341_v16 = vpop.eup %10340 }
 0x4b2   : > { %v2022_v17 = vsel %vm2006_vm4, %v10341_v16, 0.0 }
 0x4b3   : > { %2023 = vadd.xlane.f32.xlu1 %v2022_v17  ;;  %v8504_v17 = vld [vmem:[%s12055_s7 + $0x38] sm:$0xff] }
 0x53c   : > { %v2021_v31 = vpop.xlane.xlu1 %2020 }
 0x53d   : > { %10342 = vrcp.f32 %v2021_v31  ;;  %v2110_v31 = vld [vmem:[%s10885_s12] sm:$0xff] }
 0x540   : > { %v2024_v32 = vpop.xlane.xlu1 %2023 }
 0x541   : > { %10344 = vrcp.f32 %v2024_v32 }
 0x547   : > { %v10343_v33 = vpop.eup %10342 }
 0x548   : > { %v2027_v34 = vmul.f32 %v10343_v33, %v10339_v14  ;;  %v2364_v14 = vadd.f32 %v8489_v11, %v2363_v12 }
 0x54a   : > { %9287 = vmatprep.mubr.msk.f32.mxu0 %vm2006_vm4, %v2027_v34  ;;  %v9735_v15 = vpack.c.bf16 %v2369_v13, %v2364_v14  ;;  %v8507_v34 = vld [vmem:[%s12057_s22 + $0x2] ss:$0 sm:$0xff]  ;;  %s12087_s22 = sld [smem:[#allocation37_spill]] (!%p8555_p1) }
 0x54b   : > { %v10345_v35 = vpop.eup %10344 }
 0x54c   : > { %v2028_v36 = vmul.f32 %v10345_v35, %v10341_v16  ;;  %9736 = vmatprep.subr.bf16.mxu1 %v9735_v15  ;;  %v8503_v16 = vld [vmem:[%s12055_s7 + $0x30] sm:$0xff]  ;;  %s12084_s7 = sld [smem:[#allocation36_spill]] (!%p8555_p1) }
 0x54d   : > { %9738 = vmatpush3.bf16.msra.mxu1 %v9735_v15  ;;  %v9739_v18 = vpack.c.bf16 %v8504_v17, %v8503_v16 }
 0x54e   : > { %9288 = vmatmul.mubr.msk.f32.vlgmr.msra.gmra.mrb[4].mxu0 %vm2006_vm4, %v2028_v36 }
 0x54f   : > { %9724 = vmatpush3.bf16.msra.mxu0 %v9721_v26  ;;  %9305 = vmatprep.mubr.msk.f32.mxu0 %vm1664_vm1, %v10922_v43  ;;  %v8510_v26 = vld [vmem:[%s10865_s23 + $0x30] sm:$0xff]  ;;  %s12060_s23 = sld [smem:[#allocation18_spill]] }
 0x550   : > { %9303 = vmatprep.subr.mxu0 %v8480_v37  ;;  %9740 = vmatprep.subr.bf16.mxu1 %v9739_v18  ;;  %v9743_v28 = vpack.c.bf16 %v8511_v27, %v8510_v26 }
 0x553   : > { %9304 = vmatpush3.msra.mxu0 %v8480_v37 }
 0x554   : > { %9306 = vmatmul.mubr.msk.f32.vlgmr.msra.gmra.mrb[6].mxu0 %vm1664_vm1, %v10932_v49 }
 0x555   : > { %9321 = vmatprep.mubr.msk.f32.mxu0 %vm1916_vm2, %v2190_v42 }
 0x621   : > { %v10984_v44 = vpop.f32.mrb[4].mxu0 }
 0x622   : > { %v10986_v45 = vpop.f32.mrb[5].mxu0 }
 0x627   : > { %v9307_v47 = vpop.f32.mrb[6].mxu0 }
 0x628   : > { %v2282_v48 = vadd.f32 %v9307_v47, %v8482_v46  ;;  %v2276_v50 = vpop.f32.mrb[7].mxu0  ;;  %v8517_v47 = vld [vmem:[%s10874_s26 + $0x30] sm:$0xff] }
 0x629   : > { %v2277_v51 = vadd.f32 %v8482_v46, %v2276_v50  ;;  %v8519_v50 = vld [vmem:[%s10874_s26 + $0x40] sm:$0xff] }
 0x62b   : > { %v9729_v52 = vpack.c.bf16 %v2282_v48, %v2277_v51  ;;  %v8518_v48 = vld [vmem:[%s10874_s26 + $0x38] sm:$0xff] }
 0x62d   : > { %9731 = vmatprep.subr.msk.bf16.mxu0 %vm10944_vm3, %v9729_v52 }
 0x62e   : > { %9734 = vmatpush3.bf16.xpose.msk.msra.mxu0 %vm10944_vm3, %v9729_v52 }
 0x62f   : > { %9331 = vmatprep.subr.mxu0 %v8498_v30 }
 0x635   : > { %9322 = vmatmul.mubr.msk.f32.vlgmr.msra.gmra.mrb[8].mxu0 %vm1916_vm2, %v2195_v40 }
 0x636   : > { %9332 = vmatpush3.msra.mxu0 %v8498_v30 }
 0x637   : > { %9336 = vmatprep.subr.mxu0 %v2110_v31 }
 0x708   : > { %v9323_v58 = vpop.f32.mrb[8].mxu0 }
 0x709   : > { %v2460_v59 = vmul.f32 0.35355338, %v9323_v58  ;;  %v2450_v60 = vpop.f32.mrb[9].mxu0 }
 0x70a   : > { %v2459_v61 = vmul.f32 0.35355338, %v2450_v60 }
 0x70b   : > { %v2464_v62 = vsel %vm2006_vm4, %v2460_v59, -inf }
 0x70c   : > { %2465 = vmax.xlane.f32.xlu1 %v2464_v62  ;;  %v2461_v63 = vsel %vm2006_vm4, %v2459_v61, -inf }
 0x70d   : > { %2462 = vmax.xlane.f32.xlu0 %v2461_v63 }
 0x799   : > { %v2466_v0 = vpop.xlane.xlu1 %2465 }
 0x79a   : > { %v2468_v1 = vsub.f32 %v2460_v59, %v2466_v0  ;;  %v2463_v2 = vpop.xlane.xlu0 %2462 }
 0x79b   : > { %v2467_v3 = vsub.f32 %v2459_v61, %v2463_v2 }
 0x79c   : > { %v2471_v4 = vmul.f32 1.442695, %v2468_v1 }
 0x79d   : > { %v2469_v5 = vmul.f32 1.442695, %v2467_v3 }
 0x79e   : > { %10346 = vpow2.f32 %v2471_v4  ;;  %v8521_v4 = vld [vmem:[%s10877_s1 + $0x2] ss:$0 sm:$0xff]  ;;  %s12062_s1 = sld [smem:[#allocation19_spill]] }
 0x79f   : > { %10348 = vpow2.f32 %v2469_v5 }
 0x7a4   : > { %s12063_s26 = scalar_lea.vmem %s12062_s1, %s10847_s0  ;;  %s12089_s1 = sld [smem:[#allocation42_spill]] (!%p8555_p1) }
 0x7a8   : > { %v10347_v6 = vpop.eup %10346 }
 0x7a9   : > { %v10349_v7 = vpop.eup %10348  ;;  %v2476_v8 = vsel %vm2006_vm4, %v10347_v6, 0.0 }
 0x7aa   : > { %2477 = vadd.xlane.f32.xlu1 %v2476_v8  ;;  %v2473_v9 = vsel %vm2006_vm4, %v10349_v7, 0.0 }
 0x7ab   : > { %2474 = vadd.xlane.f32.xlu0 %v2473_v9  ;;  %v8530_v9 = vld [vmem:[%s10885_s12 + $0x10] sm:$0xff]  ;;  %s12061_s12 = scalar_lea.vmem %s12060_s23, %s10847_s0  ;;  %s12073_s0 = smov (!%p8555_p1), %s12072_s21 }
 0x7ac   : > { %s12086_s23 = smov (!%p8555_p1), %s12085_s18 }
 0x837   : > { %v2478_v19 = vpop.xlane.xlu1 %2477 }
 0x838   : > { %10350 = vrcp.f32 %v2478_v19  ;;  %v2475_v20 = vpop.xlane.xlu0 %2474 }
 0x839   : > { %10352 = vrcp.f32 %v2475_v20 }
 0x842   : > { %v10351_v21 = vpop.eup %10350 }
 0x843   : > { %v10353_v22 = vpop.eup %10352  ;;  %v2482_v24 = vmul.f32 %v10351_v21, %v10347_v6 }
 0x844   : > { %v2481_v23 = vmul.f32 %v10353_v22, %v10349_v7 }
 0x846   : > { %9328 = vmatprep.mubr.msk.f32.mxu1 %vm2006_vm4, %v2481_v23 }
 0x847   : > { %9329 = vmatmul.mubr.msk.f32.vlgmr.msra.gmra.mrb[8].mxu1 %vm2006_vm4, %v2482_v24 }
 0x848   : > { %9742 = vmatpush3.bf16.msra.mxu1 %v9739_v18  ;;  %9347 = vmatprep.mubr.msk.f32.mxu1 %vm1664_vm1, %v10922_v43  ;;  %v8533_v18 = vld [vmem:[%s12061_s12] ss:$0 sm:$0xff]  ;;  %s12088_s12 = sld [smem:[#allocation40_spill]] (!%p8555_p1) }
 0x849   : > { %9345 = vmatprep.subr.mxu1 %v8505_v25 }
 0x84c   : > { %9346 = vmatpush3.msra.mxu1 %v8505_v25 }
 0x84d   : > { %9348 = vmatmul.mubr.msk.f32.vlgmr.msra.gmra.mrb[10].mxu1 %vm1664_vm1, %v10932_v49  ;;  %9744 = vmatprep.subr.bf16.mxu1 %v9743_v28 }
 0x84e   : > { %9746 = vmatpush3.bf16.msra.mxu1 %v9743_v28  ;;  %9356 = vmatprep.mubr.msk.f32.mxu1 %vm1664_vm1, %v10922_v43 }
 0x84f   : > { %9354 = vmatprep.subr.mxu1 %v8512_v29 }
 0x852   : > { %9355 = vmatpush3.msra.mxu1 %v8512_v29 }
 0x853   : > { %9357 = vmatmul.mubr.msk.f32.vlgmr.msra.gmra.mrb[12].mxu1 %vm1664_vm1, %v10932_v49 }
 0x91a   : > { %v9330_v32 = vpop.f32.mrb[8].mxu1 }
 0x91b   : > { %v2555_v33 = vpop.f32.mrb[9].mxu1 }
 0x91c   : > { %9333 = vmatprep.mubr.msk.f32.mxu0 %vm1916_vm2, %v2555_v33 }
 0x91d   : > { %9334 = vmatmul.mubr.msk.f32.vlgmr.msra.gmra.mrb[10].mxu0 %vm1916_vm2, %v9330_v32 }
 0x91e   : > { %9338 = vmatprep.mubr.msk.f32.mxu0 %vm1916_vm2, %v10986_v45  ;;  %9337 = vmatpush3.msra.mxu0 %v2110_v31 }
 0x920   : > { %v9349_v35 = vpop.f32.mrb[10].mxu1 }
 0x921   : > { %v2806_v36 = vpop.f32.mrb[11].mxu1  ;;  %v2812_v46 = vadd.f32 %v9349_v35, %v8507_v34  ;;  %v3323_v35 = vld [vmem:[%s10891_s8 + $0x8] sm:$0xff] }
 0x922   : > { %v2807_v37 = vadd.f32 %v8507_v34, %v2806_v36  ;;  %v3339_v36 = vld [vmem:[%s10891_s8 + $0x88] sm:$0xff] }
 0x924   : > { %9372 = vmatprep.mubr.msk.f32.mxu1 %vm1916_vm2, %v2807_v37  ;;  %v3325_v37 = vld [vmem:[%s10891_s8 + $0x18] sm:$0xff] }
 0x925   : > { %9339 = vmatmul.mubr.msk.f32.vlgmr.msra.gmra.mrb[10].mxu0 %vm1916_vm2, %v10984_v44  ;;  %v9747_v44 = vpack.c.bf16 %v8518_v48, %v8517_v47  ;;  %v3340_v47 = vld [vmem:[%s10891_s8 + $0x90] sm:$0xff] }
 0x926   : > { %v9358_v39 = vpop.f32.mrb[12].mxu1  ;;  %9365 = vmatprep.mubr.msk.f32.mxu0 %vm1664_vm1, %v10922_v43 }
 0x927   : > { %v2899_v40 = vadd.f32 %v9358_v39, %v8514_v38  ;;  %v2893_v41 = vpop.f32.mrb[13].mxu1  ;;  %9748 = vmatprep.subr.bf16.mxu0 %v9747_v44  ;;  %v3341_v39 = vld [vmem:[%s10891_s8 + $0x98] sm:$0xff] }
 0x928   : > { %v2894_v42 = vadd.f32 %v8514_v38, %v2893_v41  ;;  %9750 = vmatpush3.bf16.msra.mxu0 %v9747_v44  ;;  %v9761_v38 = vpack.c.bf16 %v3339_v36, %v3323_v35  ;;  %v3338_v41 = vld [vmem:[%s10891_s8 + $0x80] sm:$0xff]  ;;  %v3355_v44 = vld [vmem:[%s10891_s8 + $0x108] sm:$0xff]  ;;  %v3337_v36 = vld [vmem:[%s10891_s8 + $0x78] sm:$0xff] }
 0x929   : > { %9363 = vmatprep.subr.mxu0 %v8519_v50  ;;  %v3351_v35 = vld [vmem:[%s10891_s8 + $0xe8] sm:$0xff] }
 0x92a   : > { %v9751_v45 = vpack.c.bf16 %v2899_v40, %v2894_v42  ;;  %v3322_v40 = vld [vmem:[%s10891_s8] sm:$0xff]  ;;  %v9765_v42 = vpack.c.bf16 %v3341_v39, %v3325_v37  ;;  %v3353_v37 = vld [vmem:[%s10891_s8 + $0xf8] sm:$0xff]  ;;  %v3364_v39 = vld [vmem:[%s10891_s8 + $0x150] sm:$0xff] }
 0x92c   : > { %9753 = vmatprep.subr.msk.bf16.mxu1 %vm10944_vm3, %v9751_v45  ;;  %9364 = vmatpush3.msra.mxu0 %v8519_v50  ;;  %v3357_v50 = vld [vmem:[%s10891_s8 + $0x118] sm:$0xff] }
 0x92d   : > { %9756 = vmatpush3.bf16.xpose.msk.msra.mxu1 %vm10944_vm3, %v9751_v45  ;;  %9366 = vmatmul.mubr.msk.f32.vlgmr.msra.gmra.mrb[12].mxu0 %vm1664_vm1, %v10932_v49  ;;  %v9763_v45 = vpack.c.bf16 %v3338_v41, %v3322_v40  ;;  %v3334_v40 = vld [vmem:[%s10891_s8 + $0x60] sm:$0xff] }
 0x92e   : > { %9762 = vmatprep.subr.bf16.mxu1 %v9761_v38  ;;  %v3362_v38 = vld [vmem:[%s10891_s8 + $0x140] sm:$0xff] }
 0x934   : > { %9373 = vmatmul.mubr.msk.f32.vlgmr.msra.gmra.mrb[14].mxu1 %vm1916_vm2, %v2812_v46  ;;  %v3324_v46 = vld [vmem:[%s10891_s8 + $0x10] sm:$0xff] }
 0x935   : > { %v9767_v48 = vpack.c.bf16 %v3340_v47, %v3324_v46  ;;  %9764 = vmatpush1.bf16.msra.mxu1 %v9763_v45  ;;  %v3350_v45 = vld [vmem:[%s10891_s8 + $0xe0] sm:$0xff]  ;;  %v3336_v46 = vld [vmem:[%s10891_s8 + $0x70] sm:$0xff] }
 0x936   : > { %3464 = vmatprep.subr.mxu1 %v3355_v44  ;;  %v3352_v47 = vld [vmem:[%s10891_s8 + $0xf0] sm:$0xff] }
 0x937   : > { %v9791_v44 = vpack.c.bf16 %v3352_v47, %v3336_v46 }
 0xa00   : > { %v9367_v3 = vpop.f32.mrb[12].mxu0 }
 0xa01   : > { %v2980_v5 = vpop.f32.mrb[13].mxu0  ;;  %v2986_v6 = vadd.f32 %v9367_v3, %v8521_v4 }
 0xa02   : > { %v2981_v7 = vadd.f32 %v8521_v4, %v2980_v5  ;;  %v8534_v4 = vld [vmem:[%s12063_s26] ss:$0 sm:$0xff]  ;;  %s12090_s26 = sld [smem:[#allocation39_spill]] (!%p8555_p1) }
 0xa03   : > { %v8535_v5 = vld [vmem:[%s1546_s25] ss:$0 sm:$0xff]  ;;  %s12091_s25 = sld [smem:[#allocation41_spill]] (!%p8555_p1) }
 0xa04   : > { %v9757_v8 = vpack.c.bf16 %v2986_v6, %v2981_v7 }
 0xa06   : > { %9758 = vmatprep.subr.bf16.mxu0 %v9757_v8 }
 0xa07   : > { %v9374_v51 = vpop.f32.mrb[14].mxu1  ;;  %9760 = vmatpush3.bf16.msra.mxu0 %v9757_v8  ;;  %v3326_v8 = vld [vmem:[%s10891_s8 + $0x20] sm:$0xff] }
 0xa08   : > { %v3077_v52 = vmul.f32 0.35355338, %v9374_v51  ;;  %v3067_v53 = vpop.f32.mrb[15].mxu1  ;;  %9382 = vmatprep.subr.mxu0 %v8530_v9  ;;  %v3354_v51 = vld [vmem:[%s10891_s8 + $0x100] sm:$0xff] }
 0xa09   : > { %v3076_v54 = vmul.f32 0.35355338, %v3067_v53  ;;  %3465 = vmatpush1.msra.mxu1 %v3354_v51  ;;  %v10549_v53 = vmov 0.0   ;;  %v3369_v51 = vld [vmem:[%s10891_s8 + $0x178] sm:$0xff] }
 0xa0a   : > { %v3081_v57 = vsel %vm2006_vm4, %v3077_v52, -inf  ;;  %3524 = vmatprep.mubr.f32.mxu1 %v10549_v53 }
 0xa0b   : > { %3082 = vmax.xlane.f32.xlu1 %v3081_v57  ;;  %v3078_v55 = vsel %vm2006_vm4, %v3076_v54, -inf  ;;  %v3343_v57 = vld [vmem:[%s10891_s8 + $0xa8] sm:$0xff] }
 0xa0c   : > { %3079 = vmax.xlane.f32.xlu0 %v3078_v55  ;;  %v3329_v55 = vld [vmem:[%s10891_s8 + $0x38] sm:$0xff] }
 0xa98   : > { %v3083_v56 = vpop.xlane.xlu1 %3082 }
 0xa99   : > { %v3085_v58 = vsub.f32 %v3077_v52, %v3083_v56  ;;  %v3080_v59 = vpop.xlane.xlu0 %3079  ;;  %v3356_v52 = vld [vmem:[%s10891_s8 + $0x110] sm:$0xff] }
 0xa9a   : > { %v3084_v60 = vsub.f32 %v3076_v54, %v3080_v59  ;;  %v3327_v54 = vld [vmem:[%s10891_s8 + $0x28] sm:$0xff] }
 0xa9b   : > { %v3088_v61 = vmul.f32 1.442695, %v3085_v58  ;;  %v9769_v56 = vpack.c.bf16 %v3343_v57, %v3327_v54  ;;  %v3345_v58 = vld [vmem:[%s10891_s8 + $0xb8] sm:$0xff]  ;;  %v4125_v54 = vld [vmem:[%s10895_s3 + $0x88] sm:$0xff]  ;;  %v4156_v57 = vld [vmem:[%s10895_s3 + $0x180] sm:$0xff] }
 0xa9c   : > { %v3086_v62 = vmul.f32 1.442695, %v3084_v60  ;;  %v9773_v59 = vpack.c.bf16 %v3345_v58, %v3329_v55  ;;  %v4157_v55 = vld [vmem:[%s10895_s3 + $0x188] sm:$0xff]  ;;  %v3368_v58 = vld [vmem:[%s10891_s8 + $0x170] sm:$0xff] }
 0xa9d   : > { %10354 = vpow2.f32 %v3088_v61  ;;  %9770 = vmatprep.subr.bf16.mxu1 %v9769_v56  ;;  %v3366_v56 = vld [vmem:[%s10891_s8 + $0x160] sm:$0xff] }
 0xa9e   : > { %10356 = vpow2.f32 %v3086_v62 }
 0xaa7   : > { %v10355_v63 = vpop.eup %10354 }
 0xaa8   : > { %v10357_v0 = vpop.eup %10356  ;;  %v3093_v1 = vsel %vm2006_vm4, %v10355_v63, 0.0 }
 0xaa9   : > { %3094 = vadd.xlane.f32.xlu1 %v3093_v1  ;;  %v3090_v2 = vsel %vm2006_vm4, %v10357_v0, 0.0 }
 0xaaa   : > { %3091 = vadd.xlane.f32.xlu0 %v3090_v2 }
 0xb36   : > { %v3095_v10 = vpop.xlane.xlu1 %3094 }
 0xb37   : > { %10358 = vrcp.f32 %v3095_v10  ;;  %v3092_v11 = vpop.xlane.xlu0 %3091  ;;  %v3328_v10 = vld [vmem:[%s10891_s8 + $0x30] sm:$0xff] }
 0xb38   : > { %10360 = vrcp.f32 %v3092_v11  ;;  %v3344_v11 = vld [vmem:[%s10891_s8 + $0xb0] sm:$0xff] }
 0xb41   : > { %v10359_v12 = vpop.eup %10358 }
 0xb42   : > { %v10361_v13 = vpop.eup %10360  ;;  %v3099_v15 = vmul.f32 %v10359_v12, %v10355_v63 }
 0xb43   : > { %v3098_v14 = vmul.f32 %v10361_v13, %v10357_v0 }
 0xb45   : > { %9379 = vmatprep.mubr.msk.f32.mxu0 %vm2006_vm4, %v3098_v14 }
 0xb46   : > { %9380 = vmatmul.mubr.msk.f32.vlgmr.msra.gmra.mrb[14].mxu0 %vm2006_vm4, %v3099_v15 }
 0xb47   : > { %9383 = vmatpush3.msra.mxu0 %v8530_v9  ;;  %v3342_v9 = vld [vmem:[%s10891_s8 + $0xa0] sm:$0xff] }
 0xb48   : > { %9766 = vmatprep.subr.bf16.mxu0 %v9765_v42  ;;  %v9771_v15 = vpack.c.bf16 %v3342_v9, %v3326_v8  ;;  %v9789_v42 = vpack.c.bf16 %v3353_v37, %v3337_v36  ;;  %v4111_v8 = vld [vmem:[%s10895_s3 + $0x18] sm:$0xff]  ;;  %v4132_v36 = vld [vmem:[%s10895_s3 + $0xc0] sm:$0xff]  ;;  %v4133_v37 = vld [vmem:[%s10895_s3 + $0xc8] sm:$0xff] }
 0xb49   : > { %v9809_v46 = vpack.c.bf16 %v4133_v37, %v4132_v36 }
 0xc19   : > { %v9381_v16 = vpop.f32.mrb[14].mxu0 }
 0xc1a   : > { %v3172_v17 = vpop.f32.mrb[15].mxu0 }
 0xc1b   : > { %9384 = vmatprep.mubr.msk.f32.mxu0 %vm1916_vm2, %v3172_v17  ;;  %v3359_v17 = vld [vmem:[%s10891_s8 + $0x128] sm:$0xff] }
 0xc1c   : > { %9385 = vmatmul.mubr.msk.f32.vlgmr.msra.gmra.mrb[10].mxu0 %vm1916_vm2, %v9381_v16  ;;  %v9775_v16 = vpack.c.bf16 %v3344_v11, %v3328_v10  ;;  %v4142_v11 = vld [vmem:[%s10895_s3 + $0x110] sm:$0xff] }
 0xc1d   : > { %9768 = vmatpush1.bf16.msra.mxu0 %v9767_v48  ;;  %3601 = vmatprep.mubr.f32.mxu0 %v10549_v53  ;;  %v9787_v48 = vpack.c.bf16 %v3350_v45, %v3334_v40  ;;  %v4117_v45 = vld [vmem:[%s10895_s3 + $0x48] sm:$0xff] }
 0xc1e   : > { %3541 = vmatprep.subr.mxu0 %v3357_v50  ;;  %v3367_v50 = vld [vmem:[%s10891_s8 + $0x168] sm:$0xff] }
 0xc21   : > { %3542 = vmatpush1.msra.mxu0 %v3356_v52  ;;  %v4124_v52 = vld [vmem:[%s10895_s3 + $0x80] sm:$0xff] }
 0xc22   : > { %9774 = vmatprep.subr.bf16.mxu0 %v9773_v59  ;;  %v4108_v59 = vld [vmem:[%s10895_s3] sm:$0xff] }
 0xcef   : > { %v9386_v19 = vpop.f32.mrb[10].mxu0 }
 0xcf0   : > { %v3274_v20 = vadd.f32 %v9386_v19, %v8533_v18  ;;  %v3255_v21 = vpop.f32.mrb[11].mxu0  ;;  %v3331_v19 = vld [vmem:[%s10891_s8 + $0x48] sm:$0xff] }
 0xcf1   : > { %v3273_v22 = vadd.f32 %v8533_v18, %v3255_v21  ;;  %v3361_v18 = vld [vmem:[%s10891_s8 + $0x138] sm:$0xff] }
 0xcf2   : > { %v3276_v23 = vadd.f32 %v3274_v20, %v10932_v49  ;;  %v3347_v20 = vld [vmem:[%s10891_s8 + $0xc8] sm:$0xff]  ;;  %v3333_v21 = vld [vmem:[%s10891_s8 + $0x58] sm:$0xff] }
 0xcf3   : > { %v3275_v24 = vadd.f32 %v3273_v22, %v10922_v43  ;;  %v3349_v22 = vld [vmem:[%s10891_s8 + $0xd8] sm:$0xff] }
 0xcf4   : > { %v3282_v25 = vsel %vm1664_vm1, %v3276_v23, 0.0 }
 0xcf5   : > { %3283 = vadd.xlane.f32.xlu1 %v3282_v25  ;;  %v3279_v26 = vsel %vm1664_vm1, %v3275_v24, 0.0  ;;  %v3360_v25 = vld [vmem:[%s10891_s8 + $0x130] sm:$0xff] }
 0xcf6   : > { %3280 = vadd.xlane.f32.xlu0 %v3279_v26  ;;  %v3330_v26 = vld [vmem:[%s10891_s8 + $0x40] sm:$0xff] }
 0xd82   : > { %v3284_v27 = vpop.xlane.xlu1 %3283 }
 0xd83   : > { %v3287_v28 = vmul.f32 0.041666668, %v3284_v27  ;;  %v3281_v29 = vpop.xlane.xlu0 %3280  ;;  %v9777_v27 = vpack.c.bf16 %v3347_v20, %v3331_v19  ;;  %v4112_v20 = vld [vmem:[%s10895_s3 + $0x20] sm:$0xff] }
 0xd84   : > { %v3286_v30 = vmul.f32 0.041666668, %v3281_v29  ;;  %v3346_v29 = vld [vmem:[%s10891_s8 + $0xc0] sm:$0xff] }
 0xd85   : > { %v3289_v31 = vsub.f32 %v3276_v23, %v3287_v28  ;;  %v9781_v28 = vpack.c.bf16 %v3349_v22, %v3333_v21  ;;  %v4113_v21 = vld [vmem:[%s10895_s3 + $0x28] sm:$0xff] }
 0xd86   : > { %v3288_v49 = vsub.f32 %v3275_v24, %v3286_v30  ;;  %v3358_v24 = vld [vmem:[%s10891_s8 + $0x120] sm:$0xff]  ;;  %v3332_v30 = vld [vmem:[%s10891_s8 + $0x50] sm:$0xff] }
 0xd87   : > { %v3291_v43 = vmul.f32 %v3289_v31, %v3289_v31 }
 0xd88   : > { %v3290_v32 = vmul.f32 %v3288_v49, %v3288_v49 }
 0xd89   : > { %v3295_v33 = vsel %vm1664_vm1, %v3291_v43, 0.0 }
 0xd8a   : > { %3296 = vadd.xlane.f32.xlu1 %v3295_v33  ;;  %v3292_v34 = vsel %vm1664_vm1, %v3290_v32, 0.0  ;;  %v3363_v32 = vld [vmem:[%s10891_s8 + $0x148] sm:$0xff]  ;;  %v3365_v33 = vld [vmem:[%s10891_s8 + $0x158] sm:$0xff] }
 0xd8b   : > { %3293 = vadd.xlane.f32.xlu0 %v3292_v34  ;;  %v3335_v34 = vld [vmem:[%s10891_s8 + $0x68] sm:$0xff] }
 0xd8c   : > { %v9785_v41 = vpack.c.bf16 %v3351_v35, %v3335_v34  ;;  %v4146_v34 = vld [vmem:[%s10895_s3 + $0x130] sm:$0xff]  ;;  %v4147_v35 = vld [vmem:[%s10895_s3 + $0x138] sm:$0xff] }
 0xe17   : > { %v3297_v60 = vpop.xlane.xlu1 %3296 }
 0xe18   : > { %v3299_v61 = vmul.f32 0.041666668, %v3297_v60  ;;  %v3294_v62 = vpop.xlane.xlu0 %3293  ;;  %v4109_v60 = vld [vmem:[%s10895_s3 + $0x8] sm:$0xff] }
 0xe19   : > { %v3298_v63 = vmul.f32 0.041666668, %v3294_v62  ;;  %v9825_v62 = vpack.c.bf16 %v4157_v55, %v4156_v57 }
 0xe1a   : > { %v3301_v0 = vadd.f32 1e-05, %v3299_v61  ;;  %v9793_v61 = vpack.c.bf16 %v4125_v54, %v4124_v52  ;;  %v4166_v52 = vld [vmem:[%s10895_s3 + $0x1d0] sm:$0xff]  ;;  %v4167_v54 = vld [vmem:[%s10895_s3 + $0x1d8] sm:$0xff] }
 0xe1b   : > { %v3300_v1 = vadd.f32 1e-05, %v3298_v63  ;;  %v4140_v63 = vld [vmem:[%s10895_s3 + $0x100] sm:$0xff] }
 0xe1c   : > { %10362 = vrsqrt.f32 %v3301_v0  ;;  %v4141_v0 = vld [vmem:[%s10895_s3 + $0x108] sm:$0xff] }
 0xe1d   : > { %10364 = vrsqrt.f32 %v3300_v1  ;;  %v4126_v1 = vld [vmem:[%s10895_s3 + $0x90] sm:$0xff] }
 0xe26   : > { %v10363_v2 = vpop.eup %10362 }
 0xe27   : > { %v10365_v3 = vpop.eup %10364  ;;  %v3305_v6 = vmul.f32 %v10363_v2, %v3289_v31  ;;  %v3348_v31 = vld [vmem:[%s10891_s8 + $0xd0] sm:$0xff]  ;;  %v4127_v2 = vld [vmem:[%s10895_s3 + $0x98] sm:$0xff] }
 0xe28   : > { %v3304_v7 = vmul.f32 %v10365_v3, %v3288_v49  ;;  %v9779_v49 = vpack.c.bf16 %v3346_v29, %v3330_v26  ;;  %v9783_v43 = vpack.c.bf16 %v3348_v31, %v3332_v30  ;;  %v4158_v3 = vld [vmem:[%s10895_s3 + $0x190] sm:$0xff]  ;;  %v9797_v9 = vpack.c.bf16 %v4127_v2, %v4126_v1  ;;  %v4145_v26 = vld [vmem:[%s10895_s3 + $0x128] sm:$0xff]  ;;  %v4163_v29 = vld [vmem:[%s10895_s3 + $0x1b8] sm:$0xff] }
 0xe29   : > { %v3313_v13 = vmul.f32 %v8534_v4, %v3305_v6  ;;  %v9827_v6 = vpack.c.bf16 %v4141_v0, %v4140_v63  ;;  %v9803_v30 = vpack.c.bf16 %v4113_v21, %v4112_v20  ;;  %v4136_v63 = vld [vmem:[%s10895_s3 + $0xe0] sm:$0xff]  ;;  %v4137_v0 = vld [vmem:[%s10895_s3 + $0xe8] sm:$0xff]  ;;  %v4123_v20 = vld [vmem:[%s10895_s3 + $0x78] sm:$0xff] }
 0xe2a   : > { %v3312_v12 = vmul.f32 %v8534_v4, %v3304_v7  ;;  %v4159_v4 = vld [vmem:[%s10895_s3 + $0x198] sm:$0xff]  ;;  %v4110_v7 = vld [vmem:[%s10895_s3 + $0x10] sm:$0xff]  ;;  %v4168_v1 = vld [vmem:[%s10895_s3 + $0x1e0] sm:$0xff] }
 0xe2b   : > { %v11104_v23 = vadd.f32 %v8535_v5, %v3313_v13  ;;  %v9829_v10 = vpack.c.bf16 %v4159_v4, %v4158_v3  ;;  %v4128_v13 = vld [vmem:[%s10895_s3 + $0xa0] sm:$0xff]  ;;  %v4169_v2 = vld [vmem:[%s10895_s3 + $0x1e8] sm:$0xff] }
 0xe2c   : > { %v11090_v14 = vadd.f32 %v8535_v5, %v3312_v12  ;;  %v9795_v5 = vpack.c.bf16 %v4109_v60, %v4108_v59  ;;  %v4143_v12 = vld [vmem:[%s10895_s3 + $0x118] sm:$0xff]  ;;  %v9845_v60 = vpack.c.bf16 %v4167_v54, %v4166_v52 }
 0xe2d   : > { %v9831_v19 = vpack.c.bf16 %v4143_v12, %v4142_v11 }
 0xe2e   : > { %8536 = vmatmul.mubr.msk.f32.vlgmr.msra.gmra.mrb[16].mxu1 %vm1664_vm1, %v11090_v14  ;;  %8538 = vmatmul.mubr.msk.f32.vlgmr.msra.gmra.mrb[16].mxu0 %vm1664_vm1, %v11090_v14 }
 0xe2f   : > { %3530 = vmatprep.mubr.f32.mxu1 %v10549_v53  ;;  %3607 = vmatprep.mubr.f32.mxu0 %v10549_v53 }
 0xe30   : > { %9772 = vmatpush1.bf16.msra.mxu1 %v9771_v15  ;;  %9776 = vmatpush1.bf16.msra.mxu0 %v9775_v16  ;;  %v4129_v15 = vld [vmem:[%s10895_s3 + $0xa8] sm:$0xff]  ;;  %v4160_v16 = vld [vmem:[%s10895_s3 + $0x1a0] sm:$0xff] }
 0xe31   : > { %3618 = vmatprep.subr.mxu1 %v3359_v17  ;;  %3695 = vmatprep.subr.mxu0 %v3361_v18  ;;  %v4161_v17 = vld [vmem:[%s10895_s3 + $0x1a8] sm:$0xff]  ;;  %v9799_v18 = vpack.c.bf16 %v4111_v8, %v4110_v7  ;;  %v9801_v22 = vpack.c.bf16 %v4129_v15, %v4128_v13  ;;  %v9849_v7 = vpack.c.bf16 %v4169_v2, %v4168_v1  ;;  %v4138_v13 = vld [vmem:[%s10895_s3 + $0xf0] sm:$0xff]  ;;  %v4139_v15 = vld [vmem:[%s10895_s3 + $0xf8] sm:$0xff] }
 0xe32   : > { %8537 = vmatmul.mubr.msk.f32.gmra.mrb[18].mxu1 %vm1664_vm1, %v11104_v23  ;;  %8539 = vmatmul.mubr.msk.f32.gmra.mrb[18].mxu0 %vm1664_vm1, %v11104_v23  ;;  %v4121_v8 = vld [vmem:[%s10895_s3 + $0x68] sm:$0xff]  ;;  %v4174_v1 = vld [vmem:[%s10895_s3 + $0x210] sm:$0xff] }
 0xe33   : > { %3678 = vmatprep.mubr.f32.mxu1 %v10549_v53  ;;  %3755 = vmatprep.mubr.f32.mxu0 %v10549_v53 }
 0xe34   : > { %3619 = vmatpush1.msra.mxu1 %v3358_v24  ;;  %3696 = vmatpush1.msra.mxu0 %v3360_v25  ;;  %v9833_v24 = vpack.c.bf16 %v4161_v17, %v4160_v16  ;;  %v4144_v25 = vld [vmem:[%s10895_s3 + $0x120] sm:$0xff]  ;;  %v4170_v16 = vld [vmem:[%s10895_s3 + $0x1f0] sm:$0xff]  ;;  %v9821_v17 = vpack.c.bf16 %v4139_v15, %v4138_v13 }
 0xe35   : > { %9778 = vmatprep.subr.bf16.mxu1 %v9777_v27  ;;  %9782 = vmatprep.subr.bf16.mxu0 %v9781_v28  ;;  %v4130_v27 = vld [vmem:[%s10895_s3 + $0xb0] sm:$0xff]  ;;  %v9835_v31 = vpack.c.bf16 %v4145_v26, %v4144_v25  ;;  %v4155_v25 = vld [vmem:[%s10895_s3 + $0x178] sm:$0xff] }
 0xe36   : > { %8540 = vmatmul.mubr.msk.f32.vlgmr.msra.gmra.mrb[20].mxu1 %vm1664_vm1, %v11090_v14  ;;  %8542 = vmatmul.mubr.msk.f32.vlgmr.msra.gmra.mrb[20].mxu0 %vm1664_vm1, %v11090_v14  ;;  %v4162_v28 = vld [vmem:[%s10895_s3 + $0x1b0] sm:$0xff] }
 0xe37   : > { %3684 = vmatprep.mubr.f32.mxu1 %v10549_v53  ;;  %3761 = vmatprep.mubr.f32.mxu0 %v10549_v53 }
 0xe38   : > { %9780 = vmatpush1.bf16.msra.mxu1 %v9779_v49  ;;  %9784 = vmatpush1.bf16.msra.mxu0 %v9783_v43  ;;  %v4114_v49 = vld [vmem:[%s10895_s3 + $0x30] sm:$0xff]  ;;  %v4115_v43 = vld [vmem:[%s10895_s3 + $0x38] sm:$0xff] }
 0xe39   : > { %3772 = vmatprep.subr.mxu1 %v3363_v32  ;;  %3849 = vmatprep.subr.mxu0 %v3365_v33  ;;  %v9837_v33 = vpack.c.bf16 %v4163_v29, %v4162_v28  ;;  %v9807_v40 = vpack.c.bf16 %v4115_v43, %v4114_v49  ;;  %v4220_v28 = vld [vmem:[%s10895_s3 + $0x380] sm:$0xff]  ;;  %v3374_v49 = vlaneseq }
 0xe3a   : > { %8541 = vmatmul.mubr.msk.f32.gmra.mrb[22].mxu1 %vm1664_vm1, %v11104_v23  ;;  %8543 = vmatmul.mubr.msk.f32.gmra.mrb[22].mxu0 %vm1664_vm1, %v11104_v23 }
 0xe3b   : > { %3832 = vmatprep.mubr.f32.mxu1 %v10549_v53  ;;  %3909 = vmatprep.mubr.f32.mxu0 %v10549_v53  ;;  %v11236_v43 = vshrl.u32 %v3374_v49, 7 }
 0xe3c   : > { %3773 = vmatpush1.msra.mxu1 %v3362_v38  ;;  %3850 = vmatpush1.msra.mxu0 %v3364_v39  ;;  %v4164_v38 = vld [vmem:[%s10895_s3 + $0x1c0] sm:$0xff]  ;;  %v4165_v39 = vld [vmem:[%s10895_s3 + $0x1c8] sm:$0xff] }
 0xe3d   : > { %9786 = vmatprep.subr.bf16.mxu1 %v9785_v41  ;;  %9790 = vmatprep.subr.bf16.mxu0 %v9789_v42  ;;  %v9839_v41 = vpack.c.bf16 %v4147_v35, %v4146_v34  ;;  %v4116_v42 = vld [vmem:[%s10895_s3 + $0x40] sm:$0xff]  ;;  %v9841_v47 = vpack.c.bf16 %v4165_v39, %v4164_v38  ;;  %v3380_v35 = vsub.s32 1, %v11236_v43  ;;  %v3388_v36 = vsub.s32 3, %v11236_v43 }
 0xe3e   : > { %8544 = vmatmul.mubr.msk.f32.vlgmr.msra.gmra.mrb[24].mxu1 %vm1664_vm1, %v11090_v14  ;;  %8546 = vmatmul.mubr.msk.f32.vlgmr.msra.gmra.mrb[24].mxu0 %vm1664_vm1, %v11090_v14  ;;  %v9811_v57 = vpack.c.bf16 %v4117_v45, %v4116_v42  ;;  %v11241_v34 = vld [vmem:[%s10888_s6] sm:$0xff]  ;;  %v4173_v42 = vld [vmem:[%s10895_s3 + $0x208] sm:$0xff]  ;;  %v3396_v45 = vsub.s32 5, %v11236_v43 }
 0xe3f   : > { %3838 = vmatprep.mubr.f32.mxu1 %v10549_v53  ;;  %3915 = vmatprep.mubr.f32.mxu0 %v10549_v53  ;;  %v3381_v39 = vrot.slane %v11241_v34, %v3380_v35 }
 0xe40   : > { %9788 = vmatpush1.bf16.msra.mxu1 %v9787_v48  ;;  %9792 = vmatpush1.bf16.msra.mxu0 %v9791_v44  ;;  %v4148_v48 = vld [vmem:[%s10895_s3 + $0x140] sm:$0xff]  ;;  %v4149_v44 = vld [vmem:[%s10895_s3 + $0x148] sm:$0xff] }
 0xe41   : > { %3926 = vmatprep.subr.mxu1 %v3367_v50  ;;  %4003 = vmatprep.subr.mxu0 %v3369_v51  ;;  %v4134_v50 = vld [vmem:[%s10895_s3 + $0xd0] sm:$0xff]  ;;  %v4135_v51 = vld [vmem:[%s10895_s3 + $0xd8] sm:$0xff]  ;;  %v9843_v55 = vpack.c.bf16 %v4149_v44, %v4148_v48  ;;  %v4204_v48 = vld [vmem:[%s10895_s3 + $0x300] sm:$0xff] }
 0xe42   : > { %8545 = vmatmul.mubr.msk.f32.gmra.mrb[26].mxu1 %vm1664_vm1, %v11104_v23  ;;  %8547 = vmatmul.mubr.msk.f32.gmra.mrb[26].mxu0 %vm1664_vm1, %v11104_v23  ;;  %v9813_v59 = vpack.c.bf16 %v4135_v51, %v4134_v50  ;;  %v4205_v44 = vld [vmem:[%s10895_s3 + $0x308] sm:$0xff]  ;;  %v4190_v50 = vld [vmem:[%s10895_s3 + $0x290] sm:$0xff] }
 0xe43   : > { %3986 = vmatprep.mubr.f32.mxu1 %v10549_v53  ;;  %4063 = vmatprep.mubr.f32.mxu0 %v10549_v53 }
 0xe44   : > { %3927 = vmatpush1.msra.mxu1 %v3366_v56  ;;  %4004 = vmatpush1.msra.mxu0 %v3368_v58  ;;  %v4118_v56 = vld [vmem:[%s10895_s3 + $0x50] sm:$0xff]  ;;  %v4119_v58 = vld [vmem:[%s10895_s3 + $0x58] sm:$0xff] }
 0xe45   : > { %9794 = vmatprep.subr.bf16.mxu1 %v9793_v61  ;;  %9826 = vmatprep.subr.bf16.mxu0 %v9825_v62  ;;  %v4150_v61 = vld [vmem:[%s10895_s3 + $0x150] sm:$0xff]  ;;  %v4151_v62 = vld [vmem:[%s10895_s3 + $0x158] sm:$0xff]  ;;  %v9815_v3 = vpack.c.bf16 %v4119_v58, %v4118_v56 }
 0xe46   : > { %8548 = vmatmul.mubr.msk.f32.vlgmr.msra.gmra.mrb[28].mxu1 %vm1664_vm1, %v11090_v14  ;;  %8550 = vmatmul.mubr.msk.f32.vlgmr.msra.gmra.mrb[28].mxu0 %vm1664_vm1, %v11090_v14  ;;  %v9847_v4 = vpack.c.bf16 %v4151_v62, %v4150_v61  ;;  %v4222_v56 = vld [vmem:[%s10895_s3 + $0x390] sm:$0xff]  ;;  %v4223_v58 = vld [vmem:[%s10895_s3 + $0x398] sm:$0xff]  ;;  %v3404_v61 = vsub.s32 7, %v11236_v43 }
 0xe47   : > { %3992 = vmatprep.mubr.f32.mxu1 %v10549_v53  ;;  %4069 = vmatprep.mubr.f32.mxu0 %v10549_v53  ;;  %v4131_v53 = vld [vmem:[%s10895_s3 + $0xb8] sm:$0xff] }
 0xe48   : > { %9796 = vmatpush3.bf16.msra.mxu1 %v9795_v5  ;;  %9828 = vmatpush3.bf16.msra.mxu0 %v9827_v6  ;;  %v9805_v32 = vpack.c.bf16 %v4131_v53, %v4130_v27  ;;  %v4120_v5 = vld [vmem:[%s10895_s3 + $0x60] sm:$0xff]  ;;  %v9817_v6 = vpack.c.bf16 %v4137_v0, %v4136_v63  ;;  %v4189_v53 = vld [vmem:[%s10895_s3 + $0x288] sm:$0xff]  ;;  %v9891_v63 = vpack.c.bf16 %v4205_v44, %v4204_v48  ;;  %v4194_v44 = vld [vmem:[%s10895_s3 + $0x2b0] sm:$0xff] }
 0xe49   : > { %9798 = vmatprep.subr.bf16.mxu1 %v9797_v9  ;;  %9830 = vmatprep.subr.bf16.mxu0 %v9829_v10  ;;  %v4152_v9 = vld [vmem:[%s10895_s3 + $0x160] sm:$0xff]  ;;  %v4153_v10 = vld [vmem:[%s10895_s3 + $0x168] sm:$0xff]  ;;  %v9819_v11 = vpack.c.bf16 %v4121_v8, %v4120_v5  ;;  %v11270_v0 = vrot.slane %v11241_v34, %v3396_v45  ;;  %v4175_v8 = vld [vmem:[%s10895_s3 + $0x218] sm:$0xff] }
 0xe4a   : > { %8549 = vmatmul.mubr.msk.f32.gmra.mrb[30].mxu1 %vm1664_vm1, %v11104_v23  ;;  %8551 = vmatmul.mubr.msk.f32.gmra.mrb[30].mxu0 %vm1664_vm1, %v11104_v23  ;;  %v9851_v12 = vpack.c.bf16 %v4153_v10, %v4152_v9  ;;  %v4188_v27 = vld [vmem:[%s10895_s3 + $0x280] sm:$0xff]  ;;  %v4206_v9 = vld [vmem:[%s10895_s3 + $0x310] sm:$0xff]  ;;  %v11294_v48 = vld [vmem:[%s10888_s6 + $0x8] sm:$0xff]  ;;  %s12069_s6 = sld [smem:[#allocation27_spill]] (!%p8555_p1) }
 0xe4b   : > { %v9857_v29 = vpack.c.bf16 %v4189_v53, %v4188_v27  ;;  %v4177_v27 = vld [vmem:[%s10895_s3 + $0x228] sm:$0xff] }
 0xe4c   : > { %9800 = vmatpush3.bf16.msra.mxu1 %v9799_v18  ;;  %9832 = vmatpush3.bf16.msra.mxu0 %v9831_v19  ;;  %v4171_v18 = vld [vmem:[%s10895_s3 + $0x1f8] sm:$0xff]  ;;  %v4122_v19 = vld [vmem:[%s10895_s3 + $0x70] sm:$0xff] }
 0xe4d   : > { %9802 = vmatprep.subr.bf16.mxu1 %v9801_v22  ;;  %9834 = vmatprep.subr.bf16.mxu0 %v9833_v24  ;;  %v9853_v21 = vpack.c.bf16 %v4171_v18, %v4170_v16  ;;  %v9823_v22 = vpack.c.bf16 %v4123_v20, %v4122_v19  ;;  %v4154_v24 = vld [vmem:[%s10895_s3 + $0x170] sm:$0xff]  ;;  %v4192_v18 = vld [vmem:[%s10895_s3 + $0x2a0] sm:$0xff] }
 0xe4e   : > { %v9855_v26 = vpack.c.bf16 %v4155_v25, %v4154_v24  ;;  %v4224_v24 = vld [vmem:[%s10895_s3 + $0x3a0] sm:$0xff]  ;;  %v4225_v25 = vld [vmem:[%s10895_s3 + $0x3a8] sm:$0xff] }
 0xe50   : > { %9804 = vmatpush3.bf16.msra.mxu1 %v9803_v30  ;;  %9836 = vmatpush3.bf16.msra.mxu0 %v9835_v31  ;;  %v4221_v30 = vld [vmem:[%s10895_s3 + $0x388] sm:$0xff] }
 0xe51   : > { %9806 = vmatprep.subr.bf16.mxu1 %v9805_v32  ;;  %9838 = vmatprep.subr.bf16.mxu0 %v9837_v33  ;;  %v9889_v31 = vpack.c.bf16 %v4221_v30, %v4220_v28  ;;  %v3376_v32 = vsub.s32 0, %v11236_v43  ;;  %v3384_v33 = vsub.s32 2, %v11236_v43 }
 0xe53   : > { %v3377_v37 = vrot.slane %v11241_v34, %v3376_v32  ;;  %v3385_v38 = vrot.slane %v11241_v34, %v3384_v33 }
 0xe54   : > { %9808 = vmatpush3.bf16.msra.mxu1 %v9807_v40  ;;  %9840 = vmatpush3.bf16.msra.mxu0 %v9839_v41  ;;  %v3389_v40 = vrot.slane %v11241_v34, %v3388_v36  ;;  %v4172_v41 = vld [vmem:[%s10895_s3 + $0x200] sm:$0xff] }
 0xe55   : > { %9810 = vmatprep.subr.bf16.mxu1 %v9809_v46  ;;  %9842 = vmatprep.subr.bf16.mxu0 %v9841_v47  ;;  %v9859_v62 = vpack.c.bf16 %v4173_v42, %v4172_v41 }
 0xe58   : > { %9812 = vmatpush3.bf16.msra.mxu1 %v9811_v57  ;;  %9844 = vmatpush3.bf16.msra.mxu0 %v9843_v55  ;;  %v4191_v55 = vld [vmem:[%s10895_s3 + $0x298] sm:$0xff] }
 0xe59   : > { %9814 = vmatprep.subr.bf16.mxu1 %v9813_v59  ;;  %9846 = vmatprep.subr.bf16.mxu0 %v9845_v60 }
 0xe5c   : > { %9816 = vmatpush3.bf16.msra.mxu1 %v9815_v3  ;;  %9848 = vmatpush3.bf16.msra.mxu0 %v9847_v4 }
 0xe5d   : > { %9818 = vmatprep.subr.bf16.mxu1 %v9817_v6  ;;  %9850 = vmatprep.subr.bf16.mxu0 %v9849_v7  ;;  %v9861_v6 = vpack.c.bf16 %v4191_v55, %v4190_v50  ;;  %v9893_v7 = vpack.c.bf16 %v4223_v58, %v4222_v56 }
 0xe60   : > { %9820 = vmatpush3.bf16.msra.mxu1 %v9819_v11  ;;  %9852 = vmatpush3.bf16.msra.mxu0 %v9851_v12 }
 0xe61   : > { %9822 = vmatprep.subr.bf16.mxu1 %v9821_v17  ;;  %9854 = vmatprep.subr.bf16.mxu0 %v9853_v21  ;;  %v4207_v17 = vld [vmem:[%s10895_s3 + $0x318] sm:$0xff]  ;;  %v11280_v21 = vrot.slane %v11241_v34, %v3404_v61 }
 0xe62   : > { %v9895_v49 = vpack.c.bf16 %v4207_v17, %v4206_v9  ;;  %v4196_v9 = vld [vmem:[%s10895_s3 + $0x2c0] sm:$0xff] }
 0xe63   : > { %v4180_v17 = vld [vmem:[%s10895_s3 + $0x240] sm:$0xff] }
 0xe64   : > { %9824 = vmatpush3.bf16.msra.mxu1 %v9823_v22  ;;  %9856 = vmatpush3.bf16.msra.mxu0 %v9855_v26  ;;  %v4193_v22 = vld [vmem:[%s10895_s3 + $0x2a8] sm:$0xff]  ;;  %v4176_v26 = vld [vmem:[%s10895_s3 + $0x220] sm:$0xff] }
 0xe65   : > { %9858 = vmatprep.subr.bf16.mxu1 %v9857_v29  ;;  %9890 = vmatprep.subr.bf16.mxu0 %v9889_v31  ;;  %v9863_v31 = vpack.c.bf16 %v4175_v8, %v4174_v1  ;;  %v4179_v1 = vld [vmem:[%s10895_s3 + $0x238] sm:$0xff] }
 0xe66   : > { %v4211_v8 = vld [vmem:[%s10895_s3 + $0x338] sm:$0xff] }
 0xf01   : > { %v3526_v46 = vpop.f32.mrb[16].mxu1  ;;  %v3603_v47 = vpop.f32.mrb[16].mxu0 }
 0xf02   : > { %v3527_v51 = vadd.f32 %v3526_v46, %v3377_v37  ;;  %v3604_v52 = vadd.f32 %v3603_v47, %v3385_v38  ;;  %v3528_v54 = vpop.f32.mrb[17].mxu1  ;;  %v3605_v57 = vpop.f32.mrb[17].mxu0  ;;  %v9865_v46 = vpack.c.bf16 %v4193_v22, %v4192_v18  ;;  %v9897_v47 = vpack.c.bf16 %v4225_v25, %v4224_v24  ;;  %v4181_v18 = vld [vmem:[%s10895_s3 + $0x248] sm:$0xff] }
 0xf03   : > { %v3529_v59 = vadd.f32 %v3528_v54, %v3381_v39  ;;  %v3606_v60 = vadd.f32 %v3605_v57, %v3389_v40  ;;  %v4226_v54 = vld [vmem:[%s10895_s3 + $0x3b0] sm:$0xff]  ;;  %v4227_v57 = vld [vmem:[%s10895_s3 + $0x3b8] sm:$0xff] }
 0xf04   : > { %v4076_v10 = vmax.f32 %v3527_v51, 0.0  ;;  %v4078_v11 = vmax.f32 %v3604_v52, 0.0  ;;  %v4195_v52 = vld [vmem:[%s10895_s3 + $0x2b8] sm:$0xff] }
 0xf05   : > { %v4077_v2 = vmax.f32 %v3529_v59, 0.0  ;;  %v4079_v3 = vmax.f32 %v3606_v60, 0.0  ;;  %v3532_v4 = vpop.f32.mrb[18].mxu1  ;;  %v3609_v5 = vpop.f32.mrb[18].mxu0  ;;  %v9867_v60 = vpack.c.bf16 %v4177_v27, %v4176_v26  ;;  %v4212_v26 = vld [vmem:[%s10895_s3 + $0x340] sm:$0xff]  ;;  %v4213_v27 = vld [vmem:[%s10895_s3 + $0x348] sm:$0xff] }
 0xf06   : > { %v3533_v12 = vadd.f32 %v3532_v4, %v3377_v37  ;;  %v3610_v13 = vadd.f32 %v3609_v5, %v3385_v38  ;;  %v3534_v15 = vpop.f32.mrb[19].mxu1  ;;  %v3611_v16 = vpop.f32.mrb[19].mxu0  ;;  %v4208_v37 = vld [vmem:[%s10895_s3 + $0x320] sm:$0xff]  ;;  %v4209_v38 = vld [vmem:[%s10895_s3 + $0x328] sm:$0xff]  ;;  %v3417_v4 = vrot.slane %v11294_v48, %v3384_v33  ;;  %v9869_v5 = vpack.c.bf16 %v4195_v52, %v4194_v44  ;;  %v4182_v44 = vld [vmem:[%s10895_s3 + $0x250] sm:$0xff] }
 0xf07   : > { %v3535_v19 = vadd.f32 %v3534_v15, %v3381_v39  ;;  %v3612_v20 = vadd.f32 %v3611_v16, %v3389_v40  ;;  %4435 = vmatprep.mubr.f32.mxu1 %v4077_v2  ;;  %4510 = vmatprep.mubr.f32.mxu0 %v4079_v3 }
 0xf08   : > { %4436 = vmatmul.mubr.f32.vlgmr.msra.gmra.mrb[32].mxu1 %v4076_v10  ;;  %4511 = vmatmul.mubr.f32.vlgmr.msra.gmra.mrb[32].mxu0 %v4078_v11  ;;  %v4092_v39 = vmax.f32 %v3533_v12, 0.0  ;;  %v4094_v40 = vmax.f32 %v3610_v13, 0.0  ;;  %v4197_v10 = vld [vmem:[%s10895_s3 + $0x2c8] sm:$0xff]  ;;  %v4228_v11 = vld [vmem:[%s10895_s3 + $0x3c0] sm:$0xff] }
 0xf09   : > { %v4093_v53 = vmax.f32 %v3535_v19, 0.0  ;;  %v4095_v28 = vmax.f32 %v3612_v20, 0.0  ;;  %9860 = vmatpush3.bf16.msra.mxu1 %v9859_v62  ;;  %9892 = vmatpush3.bf16.msra.mxu0 %v9891_v63  ;;  %v11287_v29 = vpop.f32.mrb[20].mxu1  ;;  %v11289_v30 = vpop.f32.mrb[20].mxu0  ;;  %v9899_v62 = vpack.c.bf16 %v4209_v38, %v4208_v37  ;;  %v4178_v63 = vld [vmem:[%s10895_s3 + $0x230] sm:$0xff]  ;;  %v4229_v12 = vld [vmem:[%s10895_s3 + $0x3c8] sm:$0xff]  ;;  %v9873_v24 = vpack.c.bf16 %v4197_v10, %v4196_v9 }
 0xf0a   : > { %v3682_v41 = vpop.f32.mrb[21].mxu1  ;;  %v3759_v42 = vpop.f32.mrb[21].mxu0  ;;  %9862 = vmatprep.subr.bf16.mxu1 %v9861_v6  ;;  %9894 = vmatprep.subr.bf16.mxu0 %v9893_v7  ;;  %v9901_v6 = vpack.c.bf16 %v4227_v57, %v4226_v54  ;;  %v4210_v7 = vld [vmem:[%s10895_s3 + $0x330] sm:$0xff]  ;;  %v9871_v15 = vpack.c.bf16 %v4179_v1, %v4178_v63  ;;  %v9905_v25 = vpack.c.bf16 %v4229_v12, %v4228_v11  ;;  %v4231_v38 = vld [vmem:[%s10895_s3 + $0x3d8] sm:$0xff]  ;;  %v4201_v63 = vld [vmem:[%s10895_s3 + $0x2e8] sm:$0xff] }
 0xf0b   : > { %v3683_v50 = vadd.f32 %v3682_v41, %v11270_v0  ;;  %v3760_v51 = vadd.f32 %v3759_v42, %v11280_v21  ;;  %4440 = vmatprep.mubr.f32.mxu1 %v4093_v53  ;;  %4515 = vmatprep.mubr.f32.mxu0 %v4095_v28  ;;  %v9903_v16 = vpack.c.bf16 %v4211_v8, %v4210_v7  ;;  %v4198_v53 = vld [vmem:[%s10895_s3 + $0x2d0] sm:$0xff]  ;;  %v3392_v28 = vsub.s32 4, %v11236_v43  ;;  %v4184_v12 = vld [vmem:[%s10895_s3 + $0x260] sm:$0xff] }
 0xf0c   : > { %4441 = vmatmul.mubr.f32.gmra.mrb[34].mxu1 %v4092_v39  ;;  %4516 = vmatmul.mubr.f32.gmra.mrb[34].mxu0 %v4094_v40  ;;  %v4230_v37 = vld [vmem:[%s10895_s3 + $0x3d0] sm:$0xff]  ;;  %v9875_v39 = vpack.c.bf16 %v4181_v18, %v4180_v17  ;;  %v9907_v42 = vpack.c.bf16 %v4213_v27, %v4212_v26  ;;  %v3429_v1 = vrot.slane %v11294_v48, %v3396_v45  ;;  %v4185_v45 = vld [vmem:[%s10895_s3 + $0x268] sm:$0xff]  ;;  %v4203_v26 = vld [vmem:[%s10895_s3 + $0x2f8] sm:$0xff] }
 0xf0d   : > { %v4081_v55 = vmax.f32 %v3683_v50, 0.0  ;;  %v4083_v56 = vmax.f32 %v3760_v51, 0.0  ;;  %9864 = vmatpush3.bf16.msra.mxu1 %v9863_v31  ;;  %9896 = vmatpush3.bf16.msra.mxu0 %v9895_v49  ;;  %v11302_v58 = vpop.f32.mrb[22].mxu1  ;;  %v11304_v59 = vpop.f32.mrb[22].mxu0  ;;  %v3400_v31 = vsub.s32 6, %v11236_v43  ;;  %v4199_v49 = vld [vmem:[%s10895_s3 + $0x2d8] sm:$0xff] }
 0xf0e   : > { %v11308_v2 = vpop.f32.mrb[23].mxu1  ;;  %v11310_v3 = vpop.f32.mrb[23].mxu0  ;;  %9866 = vmatprep.subr.bf16.mxu1 %v9865_v46  ;;  %9898 = vmatprep.subr.bf16.mxu0 %v9897_v47  ;;  %v3425_v46 = vrot.slane %v11294_v48, %v3392_v28  ;;  %v4183_v50 = vld [vmem:[%s10895_s3 + $0x258] sm:$0xff]  ;;  %v4214_v51 = vld [vmem:[%s10895_s3 + $0x350] sm:$0xff] }
 0xf0f   : > { %4585 = vmatprep.mubr.f32.mxu1 %v4081_v55  ;;  %4660 = vmatprep.mubr.f32.mxu0 %v4083_v56  ;;  %v3433_v47 = vrot.slane %v11294_v48, %v3400_v31  ;;  %v9877_v55 = vpack.c.bf16 %v4199_v49, %v4198_v53  ;;  %v9909_v56 = vpack.c.bf16 %v4231_v38, %v4230_v37  ;;  %v4234_v49 = vld [vmem:[%s10895_s3 + $0x3f0] sm:$0xff]  ;;  %v4235_v37 = vld [vmem:[%s10895_s3 + $0x3f8] sm:$0xff] }
 0xf10   : > { %v9879_v9 = vpack.c.bf16 %v4183_v50, %v4182_v44  ;;  %v3393_v38 = vrot.slane %v11241_v34, %v3392_v28  ;;  %v9883_v44 = vpack.c.bf16 %v4185_v45, %v4184_v12  ;;  %v4237_v12 = vld [vmem:[%s10895_s3 + $0x408] sm:$0xff] }
 0xf11   : > { %9868 = vmatpush3.bf16.msra.mxu1 %v9867_v60  ;;  %9900 = vmatpush3.bf16.msra.mxu0 %v9899_v62  ;;  %v11321_v13 = vpop.f32.mrb[24].mxu1  ;;  %v3911_v33 = vpop.f32.mrb[24].mxu0  ;;  %v4215_v60 = vld [vmem:[%s10895_s3 + $0x358] sm:$0xff]  ;;  %v4200_v62 = vld [vmem:[%s10895_s3 + $0x2e0] sm:$0xff] }
 0xf12   : > { %v11325_v19 = vadd.f32 %v3911_v33, %v3417_v4  ;;  %v11327_v20 = vpop.f32.mrb[25].mxu1  ;;  %v11329_v22 = vpop.f32.mrb[25].mxu0  ;;  %9870 = vmatprep.subr.bf16.mxu1 %v9869_v5  ;;  %9902 = vmatprep.subr.bf16.mxu0 %v9901_v6  ;;  %v4232_v5 = vld [vmem:[%s10895_s3 + $0x3e0] sm:$0xff]  ;;  %v4233_v6 = vld [vmem:[%s10895_s3 + $0x3e8] sm:$0xff]  ;;  %v9911_v10 = vpack.c.bf16 %v4215_v60, %v4214_v51  ;;  %v9881_v11 = vpack.c.bf16 %v4201_v63, %v4200_v62  ;;  %v4218_v60 = vld [vmem:[%s10895_s3 + $0x370] sm:$0xff] }
 0xf13   : > { %v4216_v33 = vld [vmem:[%s10895_s3 + $0x360] sm:$0xff]  ;;  %v9913_v18 = vpack.c.bf16 %v4233_v6, %v4232_v5  ;;  %v9917_v63 = vpack.c.bf16 %v4235_v37, %v4234_v49  ;;  %v4219_v5 = vld [vmem:[%s10895_s3 + $0x378] sm:$0xff]  ;;  %v3689_v37 = vadd.f32 %v11308_v2, %v11270_v0 }
 0xf14   : > { %v4252_v6 = vld [vmem:[%s10895_s3 + $0x480] sm:$0xff]  ;;  %v9919_v45 = vpack.c.bf16 %v4219_v5, %v4218_v60  ;;  %v4287_v49 = vld [vmem:[%s10895_s3 + $0x598] sm:$0xff] }
 0xf15   : > { %9872 = vmatpush3.bf16.msra.mxu1 %v9871_v15  ;;  %9904 = vmatpush3.bf16.msra.mxu0 %v9903_v16  ;;  %v11339_v40 = vpop.f32.mrb[26].mxu1  ;;  %v3917_v41 = vpop.f32.mrb[26].mxu0 }
 0xf16   : > { %v11346_v52 = vadd.f32 %v3917_v41, %v3417_v4  ;;  %v11348_v54 = vpop.f32.mrb[27].mxu1  ;;  %v11350_v57 = vpop.f32.mrb[27].mxu0  ;;  %9874 = vmatprep.subr.bf16.mxu1 %v9873_v24  ;;  %9906 = vmatprep.subr.bf16.mxu0 %v9905_v25  ;;  %v3437_v4 = vrot.slane %v11294_v48, %v3404_v61  ;;  %v4217_v24 = vld [vmem:[%s10895_s3 + $0x368] sm:$0xff]  ;;  %v4202_v25 = vld [vmem:[%s10895_s3 + $0x2f0] sm:$0xff] }
 0xf17   : > { %v9915_v50 = vpack.c.bf16 %v4217_v24, %v4216_v33  ;;  %v9885_v51 = vpack.c.bf16 %v4203_v26, %v4202_v25  ;;  %v4255_v25 = vld [vmem:[%s10895_s3 + $0x498] sm:$0xff]  ;;  %v4286_v26 = vld [vmem:[%s10895_s3 + $0x590] sm:$0xff] }
 0xf19   : > { %9876 = vmatpush3.bf16.msra.mxu1 %v9875_v39  ;;  %9908 = vmatpush3.bf16.msra.mxu0 %v9907_v42  ;;  %v3988_v7 = vpop.f32.mrb[28].mxu1  ;;  %v4065_v8 = vpop.f32.mrb[28].mxu0  ;;  %v3401_v39 = vrot.slane %v11241_v34, %v3400_v31 }
 0xf1a   : > { %v11366_v15 = vadd.f32 %v3988_v7, %v3425_v46  ;;  %v11368_v61 = vadd.f32 %v4065_v8, %v3433_v47  ;;  %v3990_v16 = vpop.f32.mrb[29].mxu1  ;;  %v4067_v17 = vpop.f32.mrb[29].mxu0  ;;  %9878 = vmatprep.subr.bf16.mxu1 %v9877_v55  ;;  %9910 = vmatprep.subr.bf16.mxu0 %v9909_v56  ;;  %v4186_v55 = vld [vmem:[%s10895_s3 + $0x270] sm:$0xff]  ;;  %v4187_v56 = vld [vmem:[%s10895_s3 + $0x278] sm:$0xff]  ;;  %v4253_v7 = vld [vmem:[%s10895_s3 + $0x488] sm:$0xff] }
 0xf1b   : > { %v11373_v27 = vadd.f32 %v3990_v16, %v3429_v1  ;;  %v11375_v53 = vadd.f32 %v4067_v17, %v3437_v4  ;;  %v9921_v33 = vpack.c.bf16 %v4253_v7, %v4252_v6  ;;  %v4268_v16 = vld [vmem:[%s10895_s3 + $0x500] sm:$0xff]  ;;  %v4269_v17 = vld [vmem:[%s10895_s3 + $0x508] sm:$0xff] }
 0xf1c   : > { %v9955_v0 = vpack.c.bf16 %v4269_v17, %v4268_v16  ;;  %v4240_v7 = vld [vmem:[%s10895_s3 + $0x420] sm:$0xff]  ;;  %v4258_v16 = vld [vmem:[%s10895_s3 + $0x4b0] sm:$0xff]  ;;  %v4259_v17 = vld [vmem:[%s10895_s3 + $0x4b8] sm:$0xff] }
 0xf1d   : > { %9880 = vmatpush3.bf16.msra.mxu1 %v9879_v9  ;;  %9912 = vmatpush3.bf16.msra.mxu0 %v9911_v10  ;;  %v3994_v41 = vpop.f32.mrb[30].mxu1  ;;  %v4071_v42 = vpop.f32.mrb[30].mxu0  ;;  %v4284_v10 = vld [vmem:[%s10895_s3 + $0x580] sm:$0xff] }
 0xf1e   : > { %v11384_v28 = vadd.f32 %v3994_v41, %v3425_v46  ;;  %v11386_v34 = vadd.f32 %v4071_v42, %v3433_v47  ;;  %v3996_v31 = vpop.f32.mrb[31].mxu1  ;;  %v4073_v62 = vpop.f32.mrb[31].mxu0  ;;  %9882 = vmatprep.subr.bf16.mxu1 %v9881_v11  ;;  %9914 = vmatprep.subr.bf16.mxu0 %v9913_v18  ;;  %v4285_v46 = vld [vmem:[%s10895_s3 + $0x588] sm:$0xff]  ;;  %v4236_v47 = vld [vmem:[%s10895_s3 + $0x400] sm:$0xff]  ;;  %v9887_v11 = vpack.c.bf16 %v4187_v56, %v4186_v55  ;;  %v4254_v18 = vld [vmem:[%s10895_s3 + $0x490] sm:$0xff]  ;;  %v4097_v55 = vmax.f32 %v3689_v37, 0.0 }
 0xf1f   : > { %v11391_v8 = vadd.f32 %v3996_v31, %v3429_v1  ;;  %v11393_v9 = vadd.f32 %v4073_v62, %v3437_v4  ;;  %v3681_v1 = vadd.f32 %v11287_v29, %v3393_v38  ;;  %v3758_v4 = vadd.f32 %v11289_v30, %v3401_v39  ;;  %v4270_v62 = vld [vmem:[%s10895_s3 + $0x510] sm:$0xff] }
 0xf20   : > { %v9953_v24 = vpack.c.bf16 %v4285_v46, %v4284_v10  ;;  %v3766_v41 = vadd.f32 %v11310_v3, %v11280_v21  ;;  %v11414_v29 = vrot.slane %v11294_v48, %v3380_v35  ;;  %v11419_v30 = vrot.slane %v11294_v48, %v3388_v36  ;;  %v4238_v36 = vld [vmem:[%s10895_s3 + $0x410] sm:$0xff]  ;;  %v4241_v10 = vld [vmem:[%s10895_s3 + $0x428] sm:$0xff] }
 0xf21   : > { %9884 = vmatpush3.bf16.msra.mxu1 %v9883_v44  ;;  %9916 = vmatpush3.bf16.msra.mxu0 %v9915_v50  ;;  %v9923_v42 = vpack.c.bf16 %v4237_v12, %v4236_v47  ;;  %v9925_v2 = vpack.c.bf16 %v4255_v25, %v4254_v18  ;;  %v9957_v21 = vpack.c.bf16 %v4287_v49, %v4286_v26  ;;  %v4080_v3 = vmax.f32 %v3681_v1, 0.0  ;;  %v4290_v18 = vld [vmem:[%s10895_s3 + $0x5b0] sm:$0xff]  ;;  %v4291_v1 = vld [vmem:[%s10895_s3 + $0x5b8] sm:$0xff] }
 0xf22   : > { %9886 = vmatprep.subr.bf16.mxu1 %v9885_v51  ;;  %9918 = vmatprep.subr.bf16.mxu0 %v9917_v63  ;;  %v4082_v44 = vmax.f32 %v3758_v4, 0.0  ;;  %v3687_v35 = vadd.f32 %v11302_v58, %v3393_v38  ;;  %v3764_v50 = vadd.f32 %v11304_v59, %v3401_v39  ;;  %v4239_v51 = vld [vmem:[%s10895_s3 + $0x418] sm:$0xff]  ;;  %v4099_v56 = vmax.f32 %v3766_v41, 0.0  ;;  %v4256_v58 = vld [vmem:[%s10895_s3 + $0x4a0] sm:$0xff]  ;;  %v4257_v59 = vld [vmem:[%s10895_s3 + $0x4a8] sm:$0xff] }
 0xf23   : > { %v3837_v60 = vadd.f32 %v11327_v20, %v11414_v29  ;;  %v3914_v31 = vadd.f32 %v11329_v22, %v11419_v30  ;;  %v4271_v63 = vld [vmem:[%s10895_s3 + $0x518] sm:$0xff]  ;;  %v4288_v38 = vld [vmem:[%s10895_s3 + $0x5a0] sm:$0xff]  ;;  %v4289_v39 = vld [vmem:[%s10895_s3 + $0x5a8] sm:$0xff]  ;;  %v9927_v22 = vpack.c.bf16 %v4239_v51, %v4238_v36  ;;  %v9929_v12 = vpack.c.bf16 %v4257_v59, %v4256_v58 }
 0xf24   : > { %v4096_v5 = vmax.f32 %v3687_v35, 0.0  ;;  %v4098_v20 = vmax.f32 %v3764_v50, 0.0  ;;  %v9959_v6 = vpack.c.bf16 %v4271_v63, %v4270_v62  ;;  %v9931_v4 = vpack.c.bf16 %v4241_v10, %v4240_v7  ;;  %v4242_v25 = vld [vmem:[%s10895_s3 + $0x430] sm:$0xff]  ;;  %v4243_v26 = vld [vmem:[%s10895_s3 + $0x438] sm:$0xff]  ;;  %v4244_v50 = vld [vmem:[%s10895_s3 + $0x440] sm:$0xff] }
 0xf25   : > { %9888 = vmatpush3.bf16.msra.mxu1 %v9887_v11  ;;  %9920 = vmatpush3.bf16.msra.mxu0 %v9919_v45  ;;  %v4085_v46 = vmax.f32 %v3837_v60, 0.0  ;;  %v4087_v47 = vmax.f32 %v3914_v31, 0.0  ;;  %v9961_v11 = vpack.c.bf16 %v4289_v39, %v4288_v38  ;;  %v4272_v45 = vld [vmem:[%s10895_s3 + $0x520] sm:$0xff]  ;;  %v9933_v49 = vpack.c.bf16 %v4259_v17, %v4258_v16  ;;  %v4274_v41 = vld [vmem:[%s10895_s3 + $0x530] sm:$0xff]  ;;  %v4245_v36 = vld [vmem:[%s10895_s3 + $0x448] sm:$0xff] }
 0xf26   : > { %9922 = vmatprep.subr.bf16.mxu1 %v9921_v33  ;;  %9954 = vmatprep.subr.bf16.mxu0 %v9953_v24  ;;  %v4273_v33 = vld [vmem:[%s10895_s3 + $0x528] sm:$0xff]  ;;  %v9965_v37 = vpack.c.bf16 %v4291_v1, %v4290_v18  ;;  %v4262_v31 = vld [vmem:[%s10895_s3 + $0x4d0] sm:$0xff]  ;;  %v4263_v62 = vld [vmem:[%s10895_s3 + $0x4d8] sm:$0xff]  ;;  %v9939_v59 = vpack.c.bf16 %v4245_v36, %v4244_v50 }
 0xf27   : > { %v9963_v24 = vpack.c.bf16 %v4273_v33, %v4272_v45  ;;  %v4277_v60 = vld [vmem:[%s10895_s3 + $0x548] sm:$0xff]  ;;  %v4294_v63 = vld [vmem:[%s10895_s3 + $0x5d0] sm:$0xff]  ;;  %v4295_v58 = vld [vmem:[%s10895_s3 + $0x5d8] sm:$0xff] }
 0xf28   : > { %4586 = vmatmul.mubr.f32.vlgmr.msra.gmra.mrb[36].mxu1 %v4080_v3  ;;  %4661 = vmatmul.mubr.f32.vlgmr.msra.gmra.mrb[36].mxu0 %v4082_v44  ;;  %v4293_v3 = vld [vmem:[%s10895_s3 + $0x5c8] sm:$0xff]  ;;  %v9935_v44 = vpack.c.bf16 %v4243_v26, %v4242_v25  ;;  %v4246_v39 = vld [vmem:[%s10895_s3 + $0x450] sm:$0xff]  ;;  %v4279_v7 = vld [vmem:[%s10895_s3 + $0x558] sm:$0xff] }
 0xf29   : > { %4590 = vmatprep.mubr.f32.mxu1 %v4097_v55  ;;  %4665 = vmatprep.mubr.f32.mxu0 %v4099_v56  ;;  %v4276_v56 = vld [vmem:[%s10895_s3 + $0x540] sm:$0xff]  ;;  %v4249_v16 = vld [vmem:[%s10895_s3 + $0x468] sm:$0xff]  ;;  %v4267_v25 = vld [vmem:[%s10895_s3 + $0x4f8] sm:$0xff] }
 0xf2a   : > { %9924 = vmatpush3.bf16.msra.mxu1 %v9923_v42  ;;  %9956 = vmatpush3.bf16.msra.mxu0 %v9955_v0  ;;  %v4275_v42 = vld [vmem:[%s10895_s3 + $0x538] sm:$0xff]  ;;  %v4260_v0 = vld [vmem:[%s10895_s3 + $0x4c0] sm:$0xff]  ;;  %v9971_v38 = vpack.c.bf16 %v4277_v60, %v4276_v56  ;;  %v4298_v26 = vld [vmem:[%s10895_s3 + $0x5f0] sm:$0xff] }
 0xf2b   : > { %9926 = vmatprep.subr.bf16.mxu1 %v9925_v2  ;;  %9958 = vmatprep.subr.bf16.mxu0 %v9957_v21  ;;  %v4261_v2 = vld [vmem:[%s10895_s3 + $0x4c8] sm:$0xff]  ;;  %v4292_v21 = vld [vmem:[%s10895_s3 + $0x5c0] sm:$0xff]  ;;  %v9967_v35 = vpack.c.bf16 %v4275_v42, %v4274_v41  ;;  %v4250_v42 = vld [vmem:[%s10895_s3 + $0x470] sm:$0xff] }
 0xf2c   : > { %4591 = vmatmul.mubr.f32.gmra.mrb[38].mxu1 %v4096_v5  ;;  %4666 = vmatmul.mubr.f32.gmra.mrb[38].mxu0 %v4098_v20  ;;  %v9937_v51 = vpack.c.bf16 %v4261_v2, %v4260_v0  ;;  %v9969_v55 = vpack.c.bf16 %v4293_v3, %v4292_v21  ;;  %v4247_v5 = vld [vmem:[%s10895_s3 + $0x458] sm:$0xff]  ;;  %v9941_v20 = vpack.c.bf16 %v4263_v62, %v4262_v31  ;;  %v4264_v10 = vld [vmem:[%s10895_s3 + $0x4e0] sm:$0xff]  ;;  %v4317_v36 = vld [vmem:[%s10895_s3 + $0x688] sm:$0xff] }
 0xf2d   : > { %4735 = vmatprep.mubr.f32.mxu1 %v4085_v46  ;;  %4810 = vmatprep.mubr.f32.mxu0 %v4087_v47  ;;  %v4265_v46 = vld [vmem:[%s10895_s3 + $0x4e8] sm:$0xff]  ;;  %v4296_v47 = vld [vmem:[%s10895_s3 + $0x5e0] sm:$0xff]  ;;  %v4251_v0 = vld [vmem:[%s10895_s3 + $0x478] sm:$0xff]  ;;  %v3409_v2 = vrot.slane %v11294_v48, %v3376_v32 }
 0xf2e   : > { %9928 = vmatpush3.bf16.msra.mxu1 %v9927_v22  ;;  %9960 = vmatpush3.bf16.msra.mxu0 %v9959_v6  ;;  %v9973_v22 = vpack.c.bf16 %v4295_v58, %v4294_v63  ;;  %v4278_v6 = vld [vmem:[%s10895_s3 + $0x550] sm:$0xff]  ;;  %v4248_v33 = vld [vmem:[%s10895_s3 + $0x460] sm:$0xff]  ;;  %v9945_v17 = vpack.c.bf16 %v4265_v46, %v4264_v10  ;;  %v9951_v43 = vpack.c.bf16 %v4251_v0, %v4250_v42  ;;  %v4301_v62 = vld [vmem:[%s10895_s3 + $0x608] sm:$0xff] }
 0xf2f   : > { %9930 = vmatprep.subr.bf16.mxu1 %v9929_v12  ;;  %9962 = vmatprep.subr.bf16.mxu0 %v9961_v11  ;;  %v4297_v12 = vld [vmem:[%s10895_s3 + $0x5e8] sm:$0xff]  ;;  %v9943_v11 = vpack.c.bf16 %v4247_v5, %v4246_v39  ;;  %v9975_v45 = vpack.c.bf16 %v4279_v7, %v4278_v6  ;;  %v4280_v1 = vld [vmem:[%s10895_s3 + $0x560] sm:$0xff]  ;;  %v3835_v48 = vadd.f32 %v11321_v13, %v3409_v2  ;;  %v4318_v39 = vld [vmem:[%s10895_s3 + $0x690] sm:$0xff] }
 0xf30   : > { %v9977_v18 = vpack.c.bf16 %v4297_v12, %v4296_v47  ;;  %v4316_v50 = vld [vmem:[%s10895_s3 + $0x680] sm:$0xff]  ;;  %v3843_v63 = vadd.f32 %v11348_v54, %v11414_v29  ;;  %v3920_v58 = vadd.f32 %v11350_v57, %v11419_v30  ;;  %v4319_v5 = vld [vmem:[%s10895_s3 + $0x698] sm:$0xff]  ;;  %v4086_v54 = vmax.f32 %v11325_v19, 0.0  ;;  %v4302_v30 = vld [vmem:[%s10895_s3 + $0x610] sm:$0xff] }
 0xf31   : > { %v9985_v56 = vpack.c.bf16 %v4317_v36, %v4316_v50  ;;  %v4300_v31 = vld [vmem:[%s10895_s3 + $0x600] sm:$0xff]  ;;  %v4351_v13 = vld [vmem:[%s10895_s3 + $0x798] sm:$0xff]  ;;  %v4084_v6 = vmax.f32 %v3835_v48, 0.0  ;;  %v3841_v57 = vadd.f32 %v11339_v40, %v3409_v2  ;;  %v9989_v47 = vpack.c.bf16 %v4319_v5, %v4318_v39  ;;  %v4321_v19 = vld [vmem:[%s10895_s3 + $0x6a8] sm:$0xff] }
 0xf32   : > { %9932 = vmatpush3.bf16.msra.mxu1 %v9931_v4  ;;  %9964 = vmatpush3.bf16.msra.mxu0 %v9963_v24  ;;  %v4281_v4 = vld [vmem:[%s10895_s3 + $0x568] sm:$0xff]  ;;  %v4266_v24 = vld [vmem:[%s10895_s3 + $0x4f0] sm:$0xff]  ;;  %v4303_v7 = vld [vmem:[%s10895_s3 + $0x618] sm:$0xff]  ;;  %v4101_v10 = vmax.f32 %v3843_v63, 0.0  ;;  %v4103_v46 = vmax.f32 %v3920_v58, 0.0 }
 0xf33   : > { %9934 = vmatprep.subr.bf16.mxu1 %v9933_v49  ;;  %9966 = vmatprep.subr.bf16.mxu0 %v9965_v37  ;;  %v4299_v49 = vld [vmem:[%s10895_s3 + $0x5f8] sm:$0xff]  ;;  %v9947_v37 = vpack.c.bf16 %v4249_v16, %v4248_v33  ;;  %v9979_v41 = vpack.c.bf16 %v4281_v4, %v4280_v1  ;;  %v9949_v21 = vpack.c.bf16 %v4267_v25, %v4266_v24  ;;  %v4320_v33 = vld [vmem:[%s10895_s3 + $0x6a0] sm:$0xff]  ;;  %v4353_v16 = vld [vmem:[%s10895_s3 + $0x7a8] sm:$0xff] }
 0xf34   : > { %v9981_v3 = vpack.c.bf16 %v4299_v49, %v4298_v26  ;;  %v4352_v40 = vld [vmem:[%s10895_s3 + $0x7a0] sm:$0xff]  ;;  %v9991_v1 = vpack.c.bf16 %v4303_v7, %v4302_v30  ;;  %v4305_v25 = vld [vmem:[%s10895_s3 + $0x628] sm:$0xff]  ;;  %v4089_v26 = vmax.f32 %v11373_v27, 0.0  ;;  %v4091_v49 = vmax.f32 %v11375_v53, 0.0  ;;  %v4322_v0 = vld [vmem:[%s10895_s3 + $0x6b0] sm:$0xff] }
 0xf35   : > { %v4304_v24 = vld [vmem:[%s10895_s3 + $0x620] sm:$0xff]  ;;  %v4337_v42 = vld [vmem:[%s10895_s3 + $0x728] sm:$0xff]  ;;  %v4323_v2 = vld [vmem:[%s10895_s3 + $0x6b8] sm:$0xff] }
 0xf36   : > { %9936 = vmatpush3.bf16.msra.mxu1 %v9935_v44  ;;  %9968 = vmatpush3.bf16.msra.mxu0 %v9967_v35  ;;  %v4282_v44 = vld [vmem:[%s10895_s3 + $0x570] sm:$0xff]  ;;  %v4283_v35 = vld [vmem:[%s10895_s3 + $0x578] sm:$0xff]  ;;  %v9995_v27 = vpack.c.bf16 %v4305_v25, %v4304_v24  ;;  %v9997_v50 = vpack.c.bf16 %v4323_v2, %v4322_v0  ;;  %v4356_v48 = vld [vmem:[%s10895_s3 + $0x7c0] sm:$0xff] }
 0xf37   : > { %9938 = vmatprep.subr.bf16.mxu1 %v9937_v51  ;;  %9970 = vmatprep.subr.bf16.mxu0 %v9969_v55  ;;  %v4348_v51 = vld [vmem:[%s10895_s3 + $0x780] sm:$0xff]  ;;  %v4349_v55 = vld [vmem:[%s10895_s3 + $0x788] sm:$0xff]  ;;  %v9983_v32 = vpack.c.bf16 %v4283_v35, %v4282_v44  ;;  %v4306_v44 = vld [vmem:[%s10895_s3 + $0x630] sm:$0xff] }
 0xf38   : > { %v10017_v60 = vpack.c.bf16 %v4349_v55, %v4348_v51  ;;  %v4307_v35 = vld [vmem:[%s10895_s3 + $0x638] sm:$0xff]  ;;  %v4338_v51 = vld [vmem:[%s10895_s3 + $0x730] sm:$0xff]  ;;  %v4309_v63 = vld [vmem:[%s10895_s3 + $0x648] sm:$0xff] }
 0xf39   : > { %v4339_v55 = vld [vmem:[%s10895_s3 + $0x738] sm:$0xff]  ;;  %v4341_v39 = vld [vmem:[%s10895_s3 + $0x748] sm:$0xff]  ;;  %v4326_v5 = vld [vmem:[%s10895_s3 + $0x6d0] sm:$0xff] }
 0xf3a   : > { %9940 = vmatpush3.bf16.msra.mxu1 %v9939_v59  ;;  %9972 = vmatpush3.bf16.msra.mxu0 %v9971_v38  ;;  %v4332_v59 = vld [vmem:[%s10895_s3 + $0x700] sm:$0xff]  ;;  %v4333_v38 = vld [vmem:[%s10895_s3 + $0x708] sm:$0xff]  ;;  %v4330_v24 = vld [vmem:[%s10895_s3 + $0x6f0] sm:$0xff] }
 0xf3b   : > { %9942 = vmatprep.subr.bf16.mxu1 %v9941_v20  ;;  %9974 = vmatprep.subr.bf16.mxu0 %v9973_v22  ;;  %v4350_v20 = vld [vmem:[%s10895_s3 + $0x790] sm:$0xff]  ;;  %v9987_v22 = vpack.c.bf16 %v4301_v62, %v4300_v31  ;;  %v10019_v29 = vpack.c.bf16 %v4333_v38, %v4332_v59  ;;  %v10031_v31 = vpack.c.bf16 %v4339_v55, %v4338_v51  ;;  %v4308_v62 = vld [vmem:[%s10895_s3 + $0x640] sm:$0xff]  ;;  %v4331_v25 = vld [vmem:[%s10895_s3 + $0x6f8] sm:$0xff]  ;;  %v4104_v51 = vmax.f32 %v11384_v28, 0.0 }
 0xf3c   : > { %v10021_v12 = vpack.c.bf16 %v4351_v13, %v4350_v20  ;;  %v4340_v38 = vld [vmem:[%s10895_s3 + $0x740] sm:$0xff]  ;;  %v4327_v20 = vld [vmem:[%s10895_s3 + $0x6d8] sm:$0xff]  ;;  %v4358_v13 = vld [vmem:[%s10895_s3 + $0x7d0] sm:$0xff]  ;;  %v4106_v55 = vmax.f32 %v11386_v34, 0.0 }
 0xf3d   : > { %v10005_v30 = vpack.c.bf16 %v4327_v20, %v4326_v5  ;;  %v4315_v2 = vld [vmem:[%s10895_s3 + $0x678] sm:$0xff] }
 0xf3e   : > { %9944 = vmatpush3.bf16.msra.mxu1 %v9943_v11  ;;  %9976 = vmatpush3.bf16.msra.mxu0 %v9975_v45  ;;  %v4334_v11 = vld [vmem:[%s10895_s3 + $0x710] sm:$0xff]  ;;  %v4335_v45 = vld [vmem:[%s10895_s3 + $0x718] sm:$0xff] }
 0xf3f   : > { %9946 = vmatprep.subr.bf16.mxu1 %v9945_v17  ;;  %9978 = vmatprep.subr.bf16.mxu0 %v9977_v18  ;;  %v4100_v17 = vmax.f32 %v3841_v57, 0.0  ;;  %v4102_v18 = vmax.f32 %v11346_v52, 0.0  ;;  %v10023_v4 = vpack.c.bf16 %v4335_v45, %v4334_v11  ;;  %v4336_v52 = vld [vmem:[%s10895_s3 + $0x720] sm:$0xff]  ;;  %v4310_v57 = vld [vmem:[%s10895_s3 + $0x650] sm:$0xff]  ;;  %v4361_v45 = vld [vmem:[%s10895_s3 + $0x7e8] sm:$0xff] }
 0xf40   : > { %v10027_v53 = vpack.c.bf16 %v4337_v42, %v4336_v52  ;;  %v4360_v11 = vld [vmem:[%s10895_s3 + $0x7e0] sm:$0xff]  ;;  %v4314_v52 = vld [vmem:[%s10895_s3 + $0x670] sm:$0xff]  ;;  %v10013_v42 = vpack.c.bf16 %v4331_v25, %v4330_v24 }
 0xf42   : > { %9948 = vmatpush3.bf16.msra.mxu1 %v9947_v37  ;;  %9980 = vmatpush3.bf16.msra.mxu0 %v9979_v41  ;;  %v9993_v37 = vpack.c.bf16 %v4321_v19, %v4320_v33  ;;  %v10025_v41 = vpack.c.bf16 %v4353_v16, %v4352_v40  ;;  %v4312_v40 = vld [vmem:[%s10895_s3 + $0x660] sm:$0xff]  ;;  %v4313_v16 = vld [vmem:[%s10895_s3 + $0x668] sm:$0xff] }
 0xf43   : > { %9950 = vmatprep.subr.bf16.mxu1 %v9949_v21  ;;  %9982 = vmatprep.subr.bf16.mxu0 %v9981_v3  ;;  %v4354_v21 = vld [vmem:[%s10895_s3 + $0x7b0] sm:$0xff]  ;;  %v4355_v3 = vld [vmem:[%s10895_s3 + $0x7b8] sm:$0xff] }
 0xf44   : > { %v10029_v36 = vpack.c.bf16 %v4355_v3, %v4354_v21  ;;  %v4346_v21 = vld [vmem:[%s10895_s3 + $0x770] sm:$0xff]  ;;  %v4347_v3 = vld [vmem:[%s10895_s3 + $0x778] sm:$0xff] }
 0xf46   : > { %9952 = vmatpush3.bf16.msra.mxu1 %v9951_v43  ;;  %9984 = vmatpush3.bf16.msra.mxu0 %v9983_v32  ;;  %v4324_v43 = vld [vmem:[%s10895_s3 + $0x6c0] sm:$0xff]  ;;  %v4325_v32 = vld [vmem:[%s10895_s3 + $0x6c8] sm:$0xff] }
 0xf47   : > { %9986 = vmatprep.subr.bf16.mxu1 %v9985_v56  ;;  %10018 = vmatprep.subr.bf16.mxu0 %v10017_v60  ;;  %v4357_v56 = vld [vmem:[%s10895_s3 + $0x7c8] sm:$0xff]  ;;  %v9999_v60 = vpack.c.bf16 %v4307_v35, %v4306_v44  ;;  %v10001_v58 = vpack.c.bf16 %v4325_v32, %v4324_v43  ;;  %v4088_v44 = vmax.f32 %v11366_v15, 0.0  ;;  %v4090_v35 = vmax.f32 %v11368_v61, 0.0  ;;  %v8552_v15 = vld [vmem:[%s1563_s10] ss:$0 sm:$0xff]  ;;  %s12076_s10 = sld [smem:[#allocation28_spill]] (!%p8555_p1) }
 0xf48   : > { %v10033_v59 = vpack.c.bf16 %v4357_v56, %v4356_v48 }
 0xf49   : > { %4736 = vmatmul.mubr.f32.vlgmr.msra.gmra.mrb[40].mxu1 %v4084_v6  ;;  %4811 = vmatmul.mubr.f32.vlgmr.msra.gmra.mrb[40].mxu0 %v4086_v54  ;;  %v10003_v6 = vpack.c.bf16 %v4309_v63, %v4308_v62  ;;  %v10035_v54 = vpack.c.bf16 %v4341_v39, %v4340_v38 }
 0xf4a   : > { %4740 = vmatprep.mubr.f32.mxu1 %v4101_v10  ;;  %4815 = vmatprep.mubr.f32.mxu0 %v4103_v46  ;;  %v4342_v10 = vld [vmem:[%s10895_s3 + $0x750] sm:$0xff]  ;;  %v4343_v46 = vld [vmem:[%s10895_s3 + $0x758] sm:$0xff] }
 0xf4b   : > { %9988 = vmatpush3.bf16.msra.mxu1 %v9987_v22  ;;  %10020 = vmatpush3.bf16.msra.mxu0 %v10019_v29  ;;  %v4359_v22 = vld [vmem:[%s10895_s3 + $0x7d8] sm:$0xff]  ;;  %v10039_v19 = vpack.c.bf16 %v4343_v46, %v4342_v10 }
 0xf4c   : > { %9990 = vmatprep.subr.bf16.mxu1 %v9989_v47  ;;  %10022 = vmatprep.subr.bf16.mxu0 %v10021_v12  ;;  %v4311_v29 = vld [vmem:[%s10895_s3 + $0x658] sm:$0xff]  ;;  %v10037_v7 = vpack.c.bf16 %v4359_v22, %v4358_v13  ;;  %v4328_v47 = vld [vmem:[%s10895_s3 + $0x6e0] sm:$0xff]  ;;  %v4329_v12 = vld [vmem:[%s10895_s3 + $0x6e8] sm:$0xff] }
 0xf4d   : > { %4741 = vmatmul.mubr.f32.gmra.mrb[42].mxu1 %v4100_v17  ;;  %4816 = vmatmul.mubr.f32.gmra.mrb[42].mxu0 %v4102_v18  ;;  %v10007_v33 = vpack.c.bf16 %v4311_v29, %v4310_v57  ;;  %v10009_v17 = vpack.c.bf16 %v4329_v12, %v4328_v47  ;;  %v10041_v18 = vpack.c.bf16 %v4361_v45, %v4360_v11 }
 0xf4e   : > { %4885 = vmatprep.mubr.f32.mxu1 %v4089_v26  ;;  %4960 = vmatprep.mubr.f32.mxu0 %v4091_v49  ;;  %v4362_v26 = vld [vmem:[%s10895_s3 + $0x7f0] sm:$0xff]  ;;  %v4363_v49 = vld [vmem:[%s10895_s3 + $0x7f8] sm:$0xff] }
 0xf4f   : > { %9992 = vmatpush3.bf16.msra.mxu1 %v9991_v1  ;;  %10024 = vmatpush3.bf16.msra.mxu0 %v10023_v4  ;;  %v4344_v1 = vld [vmem:[%s10895_s3 + $0x760] sm:$0xff]  ;;  %v4345_v4 = vld [vmem:[%s10895_s3 + $0x768] sm:$0xff]  ;;  %v10045_v0 = vpack.c.bf16 %v4363_v49, %v4362_v26  ;;  %s12092_s3 = sld [smem:[#allocation43_spill]] (!%p8555_p1) }
 0xf50   : > { %9994 = vmatprep.subr.bf16.mxu1 %v9993_v37  ;;  %10026 = vmatprep.subr.bf16.mxu0 %v10025_v41  ;;  %v10011_v37 = vpack.c.bf16 %v4313_v16, %v4312_v40  ;;  %v10043_v41 = vpack.c.bf16 %v4345_v4, %v4344_v1 }
 0xf53   : > { %9996 = vmatpush3.bf16.msra.mxu1 %v9995_v27  ;;  %10028 = vmatpush3.bf16.msra.mxu0 %v10027_v53  ;;  %v10015_v27 = vpack.c.bf16 %v4315_v2, %v4314_v52  ;;  %v10047_v53 = vpack.c.bf16 %v4347_v3, %v4346_v21 }
 0xf54   : > { %9998 = vmatprep.subr.bf16.mxu1 %v9997_v50  ;;  %10030 = vmatprep.subr.bf16.mxu0 %v10029_v36  ;;  %v4105_v50 = vmax.f32 %v11391_v8, 0.0  ;;  %v4107_v36 = vmax.f32 %v11393_v9, 0.0 }
 0xf57   : > { %10000 = vmatpush3.bf16.msra.mxu1 %v9999_v60  ;;  %10032 = vmatpush3.bf16.msra.mxu0 %v10031_v31 }
 0xf58   : > { %10002 = vmatprep.subr.bf16.mxu1 %v10001_v58  ;;  %10034 = vmatprep.subr.bf16.mxu0 %v10033_v59 }
 0xf5b   : > { %10004 = vmatpush3.bf16.msra.mxu1 %v10003_v6  ;;  %10036 = vmatpush3.bf16.msra.mxu0 %v10035_v54 }
 0xf5c   : > { %10006 = vmatprep.subr.bf16.mxu1 %v10005_v30  ;;  %10038 = vmatprep.subr.bf16.mxu0 %v10037_v7 }
 0xf5f   : > { %10008 = vmatpush3.bf16.msra.mxu1 %v10007_v33  ;;  %10040 = vmatpush3.bf16.msra.mxu0 %v10039_v19 }
 0xf60   : > { %10010 = vmatprep.subr.bf16.mxu1 %v10009_v17  ;;  %10042 = vmatprep.subr.bf16.mxu0 %v10041_v18 }
 0xf63   : > { %10012 = vmatpush3.bf16.msra.mxu1 %v10011_v37  ;;  %10044 = vmatpush3.bf16.msra.mxu0 %v10043_v41 }
 0xf64   : > { %10014 = vmatprep.subr.bf16.mxu1 %v10013_v42  ;;  %10046 = vmatprep.subr.bf16.mxu0 %v10045_v0 }
 0xf67   : > { %10016 = vmatpush3.bf16.msra.mxu1 %v10015_v27  ;;  %10048 = vmatpush3.bf16.msra.mxu0 %v10047_v53 }
 0xf6a   : > { %4886 = vmatmul.mubr.f32.vlgmr.msra.gmra.mrb[44].mxu1 %v4088_v44  ;;  %4961 = vmatmul.mubr.f32.vlgmr.msra.gmra.mrb[44].mxu0 %v4090_v35 }
 0xf6b   : > { %4890 = vmatprep.mubr.f32.mxu1 %v4105_v50  ;;  %4965 = vmatprep.mubr.f32.mxu0 %v4107_v36 }
 0xf6e   : > { %4891 = vmatmul.mubr.f32.gmra.mrb[46].mxu1 %v4104_v51  ;;  %4966 = vmatmul.mubr.f32.gmra.mrb[46].mxu0 %v4106_v55 }
 0xfdb   : > { %v8813_v43 = vpop.f32.mrb[32].mxu1  ;;  %v8851_v32 = vpop.f32.mrb[32].mxu0 }
 0xfdc   : > { %v8814_v48 = vpop.f32.mrb[33].mxu1  ;;  %v8852_v61 = vpop.f32.mrb[33].mxu0 }
 0xfdd   : > { %v8815_v56 = vadd.f32 %v8814_v48, %v8813_v43  ;;  %v8853_v8 = vadd.f32 %v8852_v61, %v8851_v32 }
 0xfdf   : > { %v4438_v60 = vadd.f32 %v8815_v56, %v8552_v15  ;;  %v8816_v9 = vpop.f32.mrb[34].mxu1  ;;  %v8854_v31 = vpop.f32.mrb[34].mxu0 }
 0xfe0   : > { %v8817_v62 = vpop.f32.mrb[35].mxu1  ;;  %v8855_v63 = vpop.f32.mrb[35].mxu0 }
 0xfe1   : > { %v4513_v58 = vadd.f32 %v8853_v8, %v4438_v60  ;;  %v8818_v59 = vadd.f32 %v8817_v62, %v8816_v9  ;;  %v8856_v28 = vadd.f32 %v8855_v63, %v8854_v31 }
 0xfe3   : > { %v4443_v38 = vadd.f32 %v8818_v59, %v8552_v15 }
 0xfe5   : > { %v4518_v34 = vadd.f32 %v8856_v28, %v4443_v38 }
 0xffb   : > { %v8889_v39 = vpop.f32.mrb[36].mxu1  ;;  %v8927_v5 = vpop.f32.mrb[36].mxu0 }
 0xffc   : > { %v8890_v20 = vpop.f32.mrb[37].mxu1  ;;  %v8928_v13 = vpop.f32.mrb[37].mxu0 }
 0xffd   : > { %v8891_v22 = vadd.f32 %v8890_v20, %v8889_v39  ;;  %v8929_v6 = vadd.f32 %v8928_v13, %v8927_v5 }
 0xfff   : > { %v4588_v54 = vadd.f32 %v8891_v22, %v4513_v58  ;;  %v8892_v57 = vpop.f32.mrb[38].mxu1  ;;  %v8930_v29 = vpop.f32.mrb[38].mxu0 }
0x1000   : > { %v8893_v30 = vpop.f32.mrb[39].mxu1  ;;  %v8931_v7 = vpop.f32.mrb[39].mxu0 }
0x1001   : > { %v4663_v10 = vadd.f32 %v8929_v6, %v4588_v54  ;;  %v8894_v46 = vadd.f32 %v8893_v30, %v8892_v57  ;;  %v8932_v47 = vadd.f32 %v8931_v7, %v8930_v29  ;;  %v8553_v6 = vld [vmem:[%s1566_s14] ss:$0 sm:$0xff]  ;;  %s12067_s14 = sld [smem:[#allocation25_spill]] (!%p8555_p1) }
0x1002   : > { %v8554_v57 = vld [vmem:[%s1569_s9] ss:$0 sm:$0xff]  ;;  %s12068_s9 = sld [smem:[#allocation56_spill]] (!%p8555_p1) }
0x1003   : > { %v4593_v12 = vadd.f32 %v8894_v46, %v4518_v34 }
0x1005   : > { %v4668_v11 = vadd.f32 %v8932_v47, %v4593_v12 }
0x1007   : > { %v5025_v12 = vld [vmem:[%s12067_s14] sm:$0xff] (!%p8555_p1) }
0x101c   : > { %v8965_v45 = vpop.f32.mrb[40].mxu1  ;;  %v9003_v33 = vpop.f32.mrb[40].mxu0 }
0x101d   : > { %v8966_v19 = vpop.f32.mrb[41].mxu1  ;;  %v9004_v40 = vpop.f32.mrb[41].mxu0 }
0x101e   : > { %v8967_v16 = vadd.f32 %v8966_v19, %v8965_v45  ;;  %v9005_v17 = vadd.f32 %v9004_v40, %v9003_v33  ;;  %v5027_v45 = vld [vmem:[%s12067_s14 + $0x10] sm:$0xff] (!%p8555_p1)  ;;  %v5028_v19 = vld [vmem:[%s12067_s14 + $0x18] sm:$0xff] (!%p8555_p1)  ;;  %v5029_v40 = vld [vmem:[%s12067_s14 + $0x20] sm:$0xff] (!%p8555_p1) }
0x1020   : > { %v4738_v18 = vadd.f32 %v8967_v16, %v4663_v10  ;;  %v8968_v1 = vpop.f32.mrb[42].mxu1  ;;  %v9006_v4 = vpop.f32.mrb[42].mxu0  ;;  %v10053_v16 = vpack.c.bf16 (!%p8555_p1), %v5028_v19, %v5027_v45 }
0x1021   : > { %v8969_v24 = vpop.f32.mrb[43].mxu1  ;;  %v9007_v25 = vpop.f32.mrb[43].mxu0 }
0x1022   : > { %v4813_v26 = vadd.f32 %v9005_v17, %v4738_v18  ;;  %v8970_v49 = vadd.f32 %v8969_v24, %v8968_v1  ;;  %v9008_v37 = vadd.f32 %v9007_v25, %v9006_v4  ;;  %v5030_v17 = vld [vmem:[%s12067_s14 + $0x28] sm:$0xff] (!%p8555_p1)  ;;  %v5023_v18 = vld [vmem:[%s12068_s9] sm:$0xff] (!%p8555_p1)  ;;  %v5122_v24 = vld [vmem:[%s12069_s6 + $0x10] sm:$0xff] (!%p8555_p1) }
0x1023   : > { %v5120_v1 = vld [vmem:[%s12069_s6] sm:$0xff] (!%p8555_p1)  ;;  %9399 = vmatprep.mubr.msk.f32.mxu0 (!%p8555_p1), %vm5038_vm5, %v5023_v18  ;;  %v5121_v4 = vld [vmem:[%s12069_s6 + $0x8] sm:$0xff] (!%p8555_p1)  ;;  %v5123_v25 = vld [vmem:[%s12069_s6 + $0x18] sm:$0xff] (!%p8555_p1) }
0x1024   : > { %v4743_v41 = vadd.f32 %v8970_v49, %v4668_v11  ;;  %v5026_v11 = vld [vmem:[%s12067_s14 + $0x8] sm:$0xff] (!%p8555_p1)  ;;  %v10065_v49 = vpack.c.bf16 (!%p8555_p1), %v5123_v25, %v5122_v24 }
0x1025   : > { %v10049_v33 = vpack.c.bf16 (!%p8555_p1), %v5026_v11, %v5025_v12 }
0x1026   : > { %v4818_v52 = vadd.f32 %v9008_v37, %v4743_v41  ;;  %v10057_v37 = vpack.c.bf16 (!%p8555_p1), %v5030_v17, %v5029_v40  ;;  %v5024_v41 = vld [vmem:[%s12068_s9 + $0x8] sm:$0xff] (!%p8555_p1) }
0x1027   : > { %10050 = vmatprep.subr.bf16.mxu0 (!%p8555_p1), %v10049_v33 }
0x1028   : > { %10052 = vmatpush3.bf16.msra.mxu0 (!%p8555_p1), %v10049_v33 }
0x1029   : > { %10054 = vmatprep.subr.bf16.mxu0 (!%p8555_p1), %v10053_v16 }
0x102c   : > { %10056 = vmatpush3.bf16.msra.mxu0 (!%p8555_p1), %v10053_v16 }
0x102d   : > { %10058 = vmatprep.subr.bf16.mxu0 (!%p8555_p1), %v10057_v37 }
0x1030   : > { %10060 = vmatpush3.bf16.msra.mxu0 (!%p8555_p1), %v10057_v37 }
0x1033   : > { %9400 = vmatmul.mubr.msk.f32.vlgmr.msra.gmra.mrb[0].mxu0 (!%p8555_p1), %vm5038_vm5, %v5024_v41 }
0x103d   : > { %v9041_v42 = vpop.f32.mrb[44].mxu1  ;;  %v9079_v0 = vpop.f32.mrb[44].mxu0 }
0x103e   : > { %v9042_v2 = vpop.f32.mrb[45].mxu1  ;;  %v9080_v21 = vpop.f32.mrb[45].mxu0 }
0x103f   : > { %v9043_v3 = vadd.f32 %v9042_v2, %v9041_v42  ;;  %v9081_v27 = vadd.f32 %v9080_v21, %v9079_v0  ;;  %v5218_v42 = vld [vmem:[%s12070_s17] sm:$0xff] (!%p8555_p1)  ;;  %v5219_v0 = vld [vmem:[%s12071_s2 + $0x8] sm:$0xff] (!%p8555_p1) }
0x1040   : > { %v10069_v2 = vpack.c.bf16 (!%p8555_p1), %v5219_v0, %v5218_v42  ;;  %v5358_v21 = vld [vmem:[%s12072_s21] sm:$0xff] (!%p8555_p1) }
0x1041   : > { %v4888_v53 = vadd.f32 %v9043_v3, %v4813_v26  ;;  %v9044_v44 = vpop.f32.mrb[46].mxu1  ;;  %v9082_v35 = vpop.f32.mrb[46].mxu0  ;;  %v10061_v26 = vpack.c.bf16 (!%p8555_p1), %v5121_v4, %v5120_v1  ;;  %v5359_v3 = vld [vmem:[%s12073_s0 + $0x8] sm:$0xff] (!%p8555_p1) }
0x1042   : > { %v9045_v50 = vpop.f32.mrb[47].mxu1  ;;  %v9083_v36 = vpop.f32.mrb[47].mxu0 }
0x1043   : > { %v4963_v51 = vadd.f32 %v9081_v27, %v4888_v53  ;;  %v9046_v55 = vadd.f32 %v9045_v50, %v9044_v44  ;;  %v9084_v43 = vadd.f32 %v9083_v36, %v9082_v35  ;;  %10062 = vmatprep.subr.bf16.mxu1 (!%p8555_p1), %v10061_v26  ;;  %v10073_v27 = vpack.c.bf16 (!%p8555_p1), %v5359_v3, %v5358_v21  ;;  %v8556_v53 = vld [vmem:[%s12074_s28] ss:$0 sm:$0xff] (!%p8555_p1) }
0x1044   : > { %10064 = vmatpush3.bf16.msra.mxu1 (!%p8555_p1), %v10061_v26  ;;  %v5534_v3 = vld [vmem:[%s12082_s5] sm:$0xff] (!%p8555_p1) }
0x1045   : > { %v4893_v32 = vadd.f32 %v9046_v55, %v4818_v52  ;;  %v4971_v15 = vadd.f32 %v4963_v51, %v11090_v14  ;;  %10066 = vmatprep.subr.bf16.mxu1 (!%p8555_p1), %v10065_v49  ;;  %v5124_v52 = vld [vmem:[%s12069_s6 + $0x20] sm:$0xf] (!%p8555_p1)  ;;  %10074 = vmatprep.subr.bf16.mxu0 (!%p8555_p1), %v10073_v27  ;;  %v5220_v51 = vld [vmem:[%s12071_s2 + $0x10] sm:$0xff] (!%p8555_p1) }
0x1046   : > { %10076 = vmatpush3.bf16.msra.mxu0 (!%p8555_p1), %v10073_v27  ;;  %v5449_v55 = vld [vmem:[%s12075_s15] sm:$0xff] (!%p8555_p1)  ;;  %v5535_v27 = vld [vmem:[%s12082_s5 + $0x8] sm:$0xff] (!%p8555_p1) }
0x1047   : > { %v4968_v48 = vadd.f32 %v9084_v43, %v4893_v32  ;;  %v4975_v61 = vsel %vm1664_vm1, %v4971_v15, 0.0  ;;  %v5450_v43 = vld [vmem:[%s12075_s15 + $0x8] sm:$0xff] (!%p8555_p1) }
0x1048   : > { %4976 = vadd.xlane.f32.xlu0 %v4975_v61  ;;  %10068 = vmatpush3.bf16.msra.mxu1 (!%p8555_p1), %v10065_v49  ;;  %v10077_v32 = vpack.c.bf16 (!%p8555_p1), %v5450_v43, %v5449_v55  ;;  %v8559_v61 = vld [vmem:[%s12076_s10] ss:$0 sm:$0xff] (!%p8555_p1) }
0x1049   : > { %v4972_v56 = vadd.f32 %v4968_v48, %v11104_v23  ;;  %9410 = vmatprep.subr.msk.mxu1 (!%p8555_p1), %vm5139_vm6, %v5124_v52  ;;  %v5360_v48 = vld [vmem:[%s12073_s0 + $0x10] sm:$0xff] (!%p8555_p1) }
0x104a   : > { %9428 = vmatprep.subr.mxu0 (!%p8555_p1), %v5360_v48 }
0x104b   : > { %v4978_v8 = vsel %vm1664_vm1, %v4972_v56, 0.0  ;;  %9429 = vmatpush3.msra.mxu0 (!%p8555_p1), %v5360_v48 }
0x104c   : > { %4979 = vadd.xlane.f32.xlu1 %v4978_v8  ;;  %9411 = vmatpush3.msk.msra.mxu1 (!%p8555_p1), %vm5139_vm6, %v5124_v52  ;;  %v8566_v52 = vld [vmem:[%s12080_s27] ss:$0 sm:$0xff] (!%p8555_p1) }
0x104d   : > { %10070 = vmatprep.subr.bf16.mxu1 (!%p8555_p1), %v10069_v2 }
0x10d5   : > { %v4977_v60 = vpop.xlane.xlu0 %4976 }
0x10d6   : > { %v4981_v9 = vmul.f32 0.041666668, %v4977_v60 }
0x10d8   : > { %v4983_v31 = vsub.f32 %v4971_v15, %v4981_v9  ;;  %v5451_v15 = vld [vmem:[%s12075_s15 + $0x10] sm:$0xff] (!%p8555_p1) }
0x10d9   : > { %v4980_v62 = vpop.xlane.xlu1 %4979 }
0x10da   : > { %v4982_v63 = vmul.f32 0.041666668, %v4980_v62  ;;  %v4985_v58 = vmul.f32 %v4983_v31, %v4983_v31 }
0x10dc   : > { %v4984_v59 = vsub.f32 %v4972_v56, %v4982_v63  ;;  %v4987_v14 = vsel %vm1664_vm1, %v4985_v58, 0.0 }
0x10dd   : > { %4988 = vadd.xlane.f32.xlu0 %v4987_v14 }
0x10de   : > { %v4986_v28 = vmul.f32 %v4984_v59, %v4984_v59 }
0x10e0   : > { %v4990_v23 = vsel %vm1664_vm1, %v4986_v28, 0.0 }
0x10e1   : > { %4991 = vadd.xlane.f32.xlu1 %v4990_v23  ;;  %v8569_v23 = vld [vmem:[%s12077_s13] ss:$0 sm:$0xff] (!%p8555_p1) }
0x1106   : > { %v9401_v44 = vpop.f32.mrb[0].mxu0 (!%p8555_p1) }
0x1107   : > { %v5111_v35 = vpop.f32.mrb[1].mxu0 (!%p8555_p1)  ;;  %v5117_v36 = vadd.f32 (!%p8555_p1), %v9401_v44, %v8556_v53  ;;  %v5536_v44 = vld [vmem:[%s12082_s5 + $0x10] sm:$0xff] (!%p8555_p1) }
0x1108   : > { %v5112_v50 = vadd.f32 (!%p8555_p1), %v8556_v53, %v5111_v35  ;;  %v10081_v53 = vpack.c.bf16 (!%p8555_p1), %v5535_v27, %v5534_v3  ;;  %v8622_v3 = vld [vmem:[%s12075_s15 + $0x30] sm:$0xff] (!%p8555_p1)  ;;  %v8623_v27 = vld [vmem:[%s12075_s15 + $0x38] sm:$0xff] (!%p8555_p1) }
0x110a   : > { %9412 = vmatprep.mubr.msk.f32.mxu1 (!%p8555_p1), %vm5132_vm7, %v5112_v50  ;;  %10082 = vmatprep.subr.bf16.mxu0 (!%p8555_p1), %v10081_v53 }
0x110b   : > { %9413 = vmatmul.mubr.msk.f32.vlgmr.msra.gmra.mrb[0].mxu1 (!%p8555_p1), %vm5132_vm7, %v5117_v36 }
0x110c   : > { %10072 = vmatpush3.bf16.msra.mxu1 (!%p8555_p1), %v10069_v2 }
0x110d   : > { %9419 = vmatprep.subr.mxu1 (!%p8555_p1), %v5220_v51 }
0x1110   : > { %9420 = vmatpush3.msra.mxu1 (!%p8555_p1), %v5220_v51 }
0x1111   : > { %10078 = vmatprep.subr.bf16.mxu1 (!%p8555_p1), %v10077_v32 }
0x116a   : > { %v4989_v38 = vpop.xlane.xlu0 %4988 }
0x116b   : > { %v4993_v34 = vmul.f32 0.041666668, %v4989_v38 }
0x116d   : > { %v4995_v39 = vadd.f32 1e-05, %v4993_v34 }
0x116e   : > { %v4992_v5 = vpop.xlane.xlu1 %4991 }
0x116f   : > { %10366 = vrsqrt.f32 %v4995_v39  ;;  %v4994_v20 = vmul.f32 0.041666668, %v4992_v5 }
0x1171   : > { %v4996_v13 = vadd.f32 1e-05, %v4994_v20 }
0x1173   : > { %10368 = vrsqrt.f32 %v4996_v13 }
0x1179   : > { %v10367_v22 = vpop.eup %10366 }
0x117a   : > { %v4999_v54 = vmul.f32 %v10367_v22, %v4983_v31  ;;  %v8563_v31 = vld [vmem:[#allocation3] ss:$0 sm:$0xff] (!%p8555_p1) }
0x117c   : > { %v5007_v29 = vmul.f32 %v8553_v6, %v4999_v54 }
0x117d   : > { %v10369_v30 = vpop.eup %10368 }
0x117e   : > { %v11577_v7 = vadd.f32 %v8554_v57, %v5007_v29  ;;  %v5000_v10 = vmul.f32 %v10369_v30, %v4984_v59  ;;  %5022 = sbr.rel (%p8555_p1) target bundleno = 8609 (0x21a1), region = 196 }
0x1180   : > { %5017 = vst.msk [vmem:[#allocation2] sm:$0xff] %vm1664_vm1, %v11577_v7  ;;  %v5008_v46 = vmul.f32 %v8553_v6, %v5000_v10  ;;  %9421 = vmatprep.mubr.msk.f32.mxu1 (!%p8555_p1), %vm1664_vm1, %v11577_v7 }
0x1182   : > { %v11581_v47 = vadd.f32 %v8554_v57, %v5008_v46 }
0x1184   : > { %5018 = vst.msk [vmem:[#allocation2 + $0x8] sm:$0xff] %vm1664_vm1, %v11581_v47  ;;  %9422 = vmatmul.mubr.msk.f32.vlgmr.msra.gmra.mrb[2].mxu1 (!%p8555_p1), %vm1664_vm1, %v11581_v47 }
0x1185   : > { %10080 = vmatpush3.bf16.msra.mxu1 %v10077_v32  ;;  %9439 = vmatprep.mubr.msk.f32.mxu1 %vm1664_vm1, %v11577_v7 }
0x1186   : > { %9437 = vmatprep.subr.mxu1 %v5451_v15 }
0x1189   : > { %9438 = vmatpush3.msra.mxu1 %v5451_v15 }
0x118a   : > { %9440 = vmatmul.mubr.msk.f32.vlgmr.msra.gmra.mrb[4].mxu1 %vm1664_vm1, %v11581_v47 }
0x11de   : > { %v9414_v56 = vpop.f32.mrb[0].mxu1 }
0x11df   : > { %v5209_v8 = vpop.f32.mrb[1].mxu1  ;;  %v11622_v9 = vadd.f32 %v9414_v56, %v8559_v61 }
0x11e0   : > { %v11620_v60 = vadd.f32 %v8559_v61, %v5209_v8 }
0x11e2   : > { %9430 = vmatprep.mubr.msk.f32.mxu0 %vm1664_vm1, %v11620_v60 }
0x11e3   : > { %9431 = vmatmul.mubr.msk.f32.vlgmr.msra.gmra.mrb[2].mxu0 %vm1664_vm1, %v11622_v9 }
0x11e4   : > { %9448 = vmatprep.mubr.msk.f32.mxu0 %vm1664_vm1, %v11577_v7  ;;  %10084 = vmatpush3.bf16.msra.mxu0 %v10081_v53  ;;  %v10121_v53 = vpack.c.bf16 %v8623_v27, %v8622_v3  ;;  %v8608_v3 = vld [vmem:[%s12084_s7 + $0x8] sm:$0x3f] }
0x11e5   : > { %9446 = vmatprep.subr.mxu0 %v5536_v44 }
0x11e8   : > { %9447 = vmatpush3.msra.mxu0 %v5536_v44  ;;  %v8624_v44 = vld [vmem:[%s12075_s15 + $0x40] sm:$0xff] }
0x11e9   : > { %9449 = vmatmul.mubr.msk.f32.vlgmr.msra.gmra.mrb[4].mxu0 %vm1664_vm1, %v11581_v47 }
0x1257   : > { %v9423_v62 = vpop.f32.mrb[2].mxu1 }
0x1258   : > { %v5306_v63 = vadd.f32 %v9423_v62, %v8563_v31  ;;  %v5300_v58 = vpop.f32.mrb[3].mxu1 }
0x1259   : > { %v5301_v59 = vadd.f32 %v8563_v31, %v5300_v58 }
0x125a   : > { %v5311_v14 = vsel %vm5309_vm8, %v5306_v63, -inf }
0x125b   : > { %v5310_v28 = vsel %vm5309_vm8, %v5301_v59, -inf }
0x125c   : > { %v5312_v38 = vmax.f32 %v5310_v28, %v5311_v14  ;;  %v8589_v14 = vld [vmem:[%s12075_s15 + $0x20] sm:$0xff] }
0x125d   : > { %v9441_v34 = vpop.f32.mrb[4].mxu1 }
0x125e   : > { %v5313_v39 = vrot.slane %v5312_v38, 4  ;;  %v5531_v5 = vadd.f32 %v9441_v34, %v8569_v23  ;;  %v5525_v20 = vpop.f32.mrb[5].mxu1  ;;  %v8590_v34 = vld [vmem:[%s12075_s15 + $0x28] sm:$0xff] }
0x125f   : > { %v5526_v13 = vadd.f32 %v8569_v23, %v5525_v20 }
0x1260   : > { %v5314_v22 = vmax.f32 %v5312_v38, %v5313_v39  ;;  %v8572_v38 = vld [vmem:[%s12083_s29] ss:$0 sm:$0xff] }
0x1261   : > { %v10085_v54 = vpack.c.bf16 %v5531_v5, %v5526_v13 }
0x1262   : > { %v5315_v57 = vrot.slane %v5314_v22, 2 }
0x1263   : > { %10087 = vmatprep.subr.msk.bf16.mxu1 %vm11635_vm10, %v10085_v54 }
0x1264   : > { %v5316_v29 = vmax.f32 %v5314_v22, %v5315_v57  ;;  %10090 = vmatpush3.bf16.xpose.msk.msra.mxu1 %vm11635_vm10, %v10085_v54  ;;  %v8581_v22 = vld [vmem:[%s12073_s0 + $0x18] sm:$0xff]  ;;  %v8582_v54 = vld [vmem:[%s12073_s0 + $0x20] sm:$0xff] }
0x1265   : > { %v10095_v57 = vpack.c.bf16 %v8582_v54, %v8581_v22 }
0x1266   : > { %v5317_v30 = vrot.slane %v5316_v29, 1 }
0x1268   : > { %v5318_v10 = vmax.f32 %v5316_v29, %v5317_v30 }
0x126a   : > { %v5319_v46 = vsub.f32 %v5301_v59, %v5318_v10  ;;  %v5320_v12 = vsub.f32 %v5306_v63, %v5318_v10  ;;  %v8588_v59 = vld [vmem:[%s12075_s15 + $0x18] sm:$0xff] }
0x126b   : > { %v10099_v28 = vpack.c.bf16 %v8589_v14, %v8588_v59 }
0x126c   : > { %v5321_v11 = vmul.f32 1.442695, %v5319_v46  ;;  %v5323_v45 = vmul.f32 1.442695, %v5320_v12 }
0x126d   : > { %10100 = vmatprep.subr.bf16.mxu1 %v10099_v28 }
0x126e   : > { %10372 = vpow2.f32 %v5321_v11 }
0x126f   : > { %10374 = vpow2.f32 %v5323_v45  ;;  %v8583_v45 = vld [vmem:[%s12073_s0 + $0x28] sm:$0xff] }
0x1278   : > { %v10373_v33 = vpop.eup %10372 }
0x1279   : > { %v10375_v19 = vpop.eup %10374  ;;  %v5325_v40 = vsel %vm5309_vm8, %v10373_v33, 0.0 }
0x127a   : > { %v5326_v16 = vsel %vm5309_vm8, %v10375_v19, 0.0 }
0x127b   : > { %v5327_v17 = vadd.f32 %v5326_v16, %v5325_v40 }
0x127d   : > { %v5328_v18 = vrot.slane %v5327_v17, 4 }
0x127f   : > { %v5329_v1 = vadd.f32 %v5328_v18, %v5327_v17 }
0x1281   : > { %v5330_v4 = vrot.slane %v5329_v1, 2 }
0x1283   : > { %v5331_v24 = vadd.f32 %v5330_v4, %v5329_v1  ;;  %v8615_v1 = vld [vmem:[%s12073_s0 + $0x30] sm:$0xff]  ;;  %v8616_v4 = vld [vmem:[%s12073_s0 + $0x38] sm:$0xff] }
0x1285   : > { %v5332_v25 = vrot.slane %v5331_v24, 1 }
0x1287   : > { %v5333_v26 = vadd.f32 %v5332_v25, %v5331_v24  ;;  %v10117_v24 = vpack.c.bf16 %v8616_v4, %v8615_v1 }
0x1289   : > { %10376 = vrcp.f32 %v5333_v26 }
0x1293   : > { %v10377_v49 = vpop.eup %10376 }
0x1294   : > { %v11645_v37 = vmul.f32 %v10377_v49, %v10375_v19  ;;  %v11647_v41 = vmul.f32 %v10377_v49, %v10373_v33  ;;  %v8592_v33 = vld [vmem:[%s12077_s13 + $0x1] ss:$0 sm:$0xff] }
0x1295   : > { %v8585_v49 = vld [vmem:[%s12081_s11 + $0x1] ss:$0 sm:$0xff] }
0x12b6   : > { %v9432_v42 = vpop.f32.mrb[2].mxu0 }
0x12b7   : > { %v5440_v0 = vpop.f32.mrb[3].mxu0  ;;  %v5446_v21 = vadd.f32 %v9432_v42, %v8566_v52 }
0x12b8   : > { %v5441_v2 = vadd.f32 %v8566_v52, %v5440_v0 }
0x12ba   : > { %9455 = vmatprep.mubr.msk.f32.mxu1 %vm5619_vm9, %v5441_v2 }
0x12bb   : > { %9456 = vmatmul.mubr.msk.f32.vlgmr.msra.gmra.mrb[6].mxu1 %vm5619_vm9, %v5446_v21  ;;  %v8617_v21 = vld [vmem:[%s12073_s0 + $0x40] sm:$0xff] }
0x12bc   : > { %9480 = vmatprep.mubr.msk.f32.mxu1 %vm1664_vm1, %v11577_v7  ;;  %v9450_v23 = vpop.f32.mrb[4].mxu0  ;;  %10102 = vmatpush3.bf16.msra.mxu1 %v10099_v28  ;;  %v8646_v28 = vld [vmem:[%s12073_s0 + $0x48] sm:$0xff] }
0x12bd   : > { %v5616_v39 = vadd.f32 %v9450_v23, %v8572_v38  ;;  %v5610_v5 = vpop.f32.mrb[5].mxu0  ;;  %9478 = vmatprep.subr.mxu1 %v8590_v34  ;;  %v8647_v23 = vld [vmem:[%s12073_s0 + $0x50] sm:$0xff] }
0x12be   : > { %v5611_v20 = vadd.f32 %v8572_v38, %v5610_v5 }
0x12c0   : > { %v10091_v13 = vpack.c.bf16 %v5616_v39, %v5611_v20  ;;  %9479 = vmatpush3.msra.mxu1 %v8590_v34  ;;  %v10139_v39 = vpack.c.bf16 %v8647_v23, %v8646_v28  ;;  %v8648_v20 = vld [vmem:[%s12073_s0 + $0x58] sm:$0xff]  ;;  %v8631_v23 = vld [vmem:[%s12082_s5 + $0x40] sm:$0xff] }
0x12c1   : > { %9481 = vmatmul.mubr.msk.f32.vlgmr.msra.gmra.mrb[8].mxu1 %vm1664_vm1, %v11581_v47 }
0x12c2   : > { %10092 = vmatprep.subr.bf16.mxu0 %v10091_v13 }
0x12c3   : > { %10094 = vmatpush3.bf16.msra.mxu0 %v10091_v13 }
0x12c4   : > { %10096 = vmatprep.subr.bf16.mxu0 %v10095_v57 }
0x138e   : > { %v9457_v35 = vpop.f32.mrb[6].mxu1 }
0x138f   : > { %v5698_v50 = vpop.f32.mrb[7].mxu1  ;;  %v5708_v51 = vmul.f32 0.4082483, %v9457_v35  ;;  %v8595_v35 = vld [vmem:[%s12082_s5 + $0x18] sm:$0xff] }
0x1390   : > { %v5707_v36 = vmul.f32 0.4082483, %v5698_v50  ;;  %v8596_v50 = vld [vmem:[%s12082_s5 + $0x20] sm:$0xff] }
0x1391   : > { %v5712_v43 = vsel %vm2006_vm4, %v5708_v51, -inf }
0x1392   : > { %v5709_v55 = vsel %vm2006_vm4, %v5707_v36, -inf }
0x1393   : > { %5710 = vmax.xlane.f32.xlu0 %v5709_v55 }
0x1394   : > { %v9482_v19 = vpop.f32.mrb[8].mxu1 }
0x1395   : > { %v5984_v40 = vadd.f32 %v9482_v19, %v8592_v33  ;;  %v5978_v16 = vpop.f32.mrb[9].mxu1 }
0x1396   : > { %v5979_v17 = vadd.f32 %v8592_v33, %v5978_v16  ;;  %v8599_v33 = vld [vmem:[%s12083_s29 + $0x1] ss:$0 sm:$0xff] }
0x1397   : > { %5713 = vmax.xlane.f32.xlu0 %v5712_v43 }
0x1398   : > { %v10107_v18 = vpack.c.bf16 %v5984_v40, %v5979_v17 }
0x139a   : > { %10109 = vmatprep.subr.msk.bf16.mxu1 %vm11635_vm10, %v10107_v18 }
0x139b   : > { %10112 = vmatpush3.bf16.xpose.msk.msra.mxu1 %vm11635_vm10, %v10107_v18 }
0x139c   : > { %10118 = vmatprep.subr.bf16.mxu1 %v10117_v24 }
0x1420   : > { %v5711_v32 = vpop.xlane.xlu0 %5710 }
0x1421   : > { %v5715_v15 = vsub.f32 %v5707_v36, %v5711_v32  ;;  %v10103_v36 = vpack.c.bf16 %v8596_v50, %v8595_v35 }
0x1423   : > { %v5717_v48 = vmul.f32 1.442695, %v5715_v15 }
0x1424   : > { %v5714_v61 = vpop.xlane.xlu0 %5713 }
0x1425   : > { %10378 = vpow2.f32 %v5717_v48  ;;  %v5716_v56 = vsub.f32 %v5708_v51, %v5714_v61  ;;  %v8597_v51 = vld [vmem:[%s12082_s5 + $0x28] sm:$0xff] }
0x1427   : > { %v5719_v8 = vmul.f32 1.442695, %v5716_v56  ;;  %v8619_v56 = vld [vmem:[%s12081_s11 + $0x2] ss:$0 sm:$0xff] }
0x1429   : > { %10380 = vpow2.f32 %v5719_v8 }
0x142f   : > { %v10379_v31 = vpop.eup %10378 }
0x1430   : > { %v5721_v62 = vsel %vm2006_vm4, %v10379_v31, 0.0 }
0x1431   : > { %5722 = vadd.xlane.f32.xlu1 %v5721_v62 }
0x1433   : > { %v10381_v63 = vpop.eup %10380 }
0x1434   : > { %v5724_v58 = vsel %vm2006_vm4, %v10381_v63, 0.0 }
0x1435   : > { %5725 = vadd.xlane.f32.xlu1 %v5724_v58 }
0x14be   : > { %v5723_v29 = vpop.xlane.xlu1 %5722 }
0x14bf   : > { %10382 = vrcp.f32 %v5723_v29 }
0x14c2   : > { %v5726_v30 = vpop.xlane.xlu1 %5725 }
0x14c3   : > { %10384 = vrcp.f32 %v5726_v30 }
0x14c9   : > { %v10383_v10 = vpop.eup %10382 }
0x14ca   : > { %v5729_v46 = vmul.f32 %v10383_v10, %v10379_v31 }
0x14cc   : > { %9462 = vmatprep.mubr.msk.f32.mxu0 %vm2006_vm4, %v5729_v46 }
0x14cd   : > { %v10385_v12 = vpop.eup %10384 }
0x14ce   : > { %v5730_v11 = vmul.f32 %v10385_v12, %v10381_v63  ;;  %v8626_v63 = vld [vmem:[%s12077_s13 + $0x2] ss:$0 sm:$0xff] }
0x14d0   : > { %9463 = vmatmul.mubr.msk.f32.vlgmr.msra.gmra.mrb[6].mxu0 %vm2006_vm4, %v5730_v11 }
0x14d1   : > { %10098 = vmatpush3.bf16.msra.mxu0 %v10095_v57  ;;  %9471 = vmatprep.mubr.msk.f32.mxu0 %vm1664_vm1, %v11620_v60 }
0x14d2   : > { %9469 = vmatprep.subr.mxu0 %v8583_v45 }
0x14d5   : > { %9470 = vmatpush3.msra.mxu0 %v8583_v45 }
0x14d6   : > { %9472 = vmatmul.mubr.msk.f32.vlgmr.msra.gmra.mrb[8].mxu0 %vm1664_vm1, %v11622_v9  ;;  %10104 = vmatprep.subr.bf16.mxu0 %v10103_v36 }
0x14d7   : > { %9489 = vmatprep.mubr.msk.f32.mxu0 %vm1664_vm1, %v11577_v7  ;;  %10106 = vmatpush3.bf16.msra.mxu0 %v10103_v36 }
0x14d8   : > { %9487 = vmatprep.subr.mxu0 %v8597_v51 }
0x14db   : > { %9488 = vmatpush3.msra.mxu0 %v8597_v51 }
0x14dc   : > { %9490 = vmatmul.mubr.msk.f32.vlgmr.msra.gmra.mrb[10].mxu0 %vm1664_vm1, %v11581_v47 }
0x15a3   : > { %v11687_v25 = vpop.f32.mrb[6].mxu0 }
0x15a4   : > { %v11689_v26 = vpop.f32.mrb[7].mxu0 }
0x15a9   : > { %v9473_v52 = vpop.f32.mrb[8].mxu0 }
0x15aa   : > { %v5891_v42 = vpop.f32.mrb[9].mxu0  ;;  %v5897_v2 = vadd.f32 %v9473_v52, %v8585_v49 }
0x15ab   : > { %v5892_v0 = vadd.f32 %v8585_v49, %v5891_v42  ;;  %v11736_v42 = vld [vmem:[%s12081_s11 + $0x3] ss:$0 sm:$0xff] }
0x15ad   : > { %9496 = vmatprep.mubr.msk.f32.mxu1 %vm5619_vm9, %v5892_v0 }
0x15ae   : > { %9497 = vmatmul.mubr.msk.f32.vlgmr.msra.gmra.mrb[10].mxu1 %vm5619_vm9, %v5897_v2 }
0x15af   : > { %10120 = vmatpush3.bf16.msra.mxu1 %v10117_v24  ;;  %9522 = vmatprep.mubr.msk.f32.mxu1 %vm1664_vm1, %v11620_v60  ;;  %v9491_v45 = vpop.f32.mrb[10].mxu0 }
0x15b0   : > { %9520 = vmatprep.subr.mxu1 %v8617_v21  ;;  %v6071_v19 = vadd.f32 %v9491_v45, %v8599_v33  ;;  %v6065_v40 = vpop.f32.mrb[11].mxu0 }
0x15b1   : > { %v6066_v16 = vadd.f32 %v8599_v33, %v6065_v40  ;;  %v8655_v33 = vld [vmem:[%s12075_s15 + $0x58] sm:$0xff]  ;;  %v8657_v40 = vld [vmem:[%s12077_s13 + $0x3] ss:$0 sm:$0xff] }
0x15b3   : > { %9521 = vmatpush3.msra.mxu1 %v8617_v21  ;;  %v10113_v17 = vpack.c.bf16 %v6071_v19, %v6066_v16 }
0x15b4   : > { %9523 = vmatmul.mubr.msk.f32.vlgmr.msra.gmra.mrb[12].mxu1 %vm1664_vm1, %v11622_v9  ;;  %10122 = vmatprep.subr.bf16.mxu1 %v10121_v53 }
0x15b5   : > { %10124 = vmatpush3.bf16.msra.mxu1 %v10121_v53  ;;  %9531 = vmatprep.mubr.msk.f32.mxu1 %vm1664_vm1, %v11577_v7 }
0x15b6   : > { %9529 = vmatprep.subr.mxu1 %v8624_v44  ;;  %10114 = vmatprep.subr.bf16.mxu0 %v10113_v17 }
0x15b7   : > { %10116 = vmatpush3.bf16.msra.mxu0 %v10113_v17 }
0x15b8   : > { %9506 = vmatprep.subr.msk.mxu0 %vm6274_vm11, %v8608_v3 }
0x15b9   : > { %9530 = vmatpush3.msra.mxu1 %v8624_v44 }
0x15ba   : > { %9532 = vmatmul.mubr.msk.f32.vlgmr.msra.gmra.mrb[14].mxu1 %vm1664_vm1, %v11581_v47 }
0x1681   : > { %v9498_v55 = vpop.f32.mrb[10].mxu1 }
0x1682   : > { %v6162_v43 = vmul.f32 0.4082483, %v9498_v55  ;;  %v6152_v32 = vpop.f32.mrb[11].mxu1 }
0x1683   : > { %v6161_v15 = vmul.f32 0.4082483, %v6152_v32 }
0x1684   : > { %v6166_v48 = vsel %vm2006_vm4, %v6162_v43, -inf }
0x1685   : > { %6167 = vmax.xlane.f32.xlu1 %v6166_v48  ;;  %v6163_v61 = vsel %vm2006_vm4, %v6161_v15, -inf }
0x1686   : > { %6164 = vmax.xlane.f32.xlu0 %v6163_v61 }
0x1687   : > { %v9524_v8 = vpop.f32.mrb[12].mxu1 }
0x1688   : > { %v6515_v31 = vpop.f32.mrb[13].mxu1  ;;  %v6521_v5 = vadd.f32 %v9524_v8, %v8619_v56 }
0x1689   : > { %v6516_v62 = vadd.f32 %v8619_v56, %v6515_v31 }
0x168b   : > { %9547 = vmatprep.mubr.msk.f32.mxu1 %vm5619_vm9, %v6516_v62  ;;  %v5812_v62 = vld [vmem:[%s12084_s7] sm:$0x3f] }
0x168d   : > { %v9533_v58 = vpop.f32.mrb[14].mxu1 }
0x168e   : > { %v6608_v59 = vadd.f32 %v9533_v58, %v8626_v63  ;;  %v6602_v14 = vpop.f32.mrb[15].mxu1  ;;  %v8630_v58 = vld [vmem:[%s12082_s5 + $0x38] sm:$0xff] }
0x168f   : > { %v6603_v38 = vadd.f32 %v8626_v63, %v6602_v14  ;;  %v8629_v63 = vld [vmem:[%s12082_s5 + $0x30] sm:$0xff] }
0x1690   : > { %v10125_v28 = vpack.c.bf16 %v8630_v58, %v8629_v63  ;;  %v8673_v58 = vld [vmem:[%s12084_s7 + $0x18] sm:$0x3f] }
0x1691   : > { %v10129_v34 = vpack.c.bf16 %v6608_v59, %v6603_v38 }
0x1693   : > { %10131 = vmatprep.subr.msk.bf16.mxu1 %vm11635_vm10, %v10129_v34 }
0x1694   : > { %10134 = vmatpush3.bf16.xpose.msk.msra.mxu1 %vm11635_vm10, %v10129_v34 }
0x1695   : > { %10140 = vmatprep.subr.bf16.mxu1 %v10139_v39 }
0x169b   : > { %9548 = vmatmul.mubr.msk.f32.vlgmr.msra.gmra.mrb[16].mxu1 %vm5619_vm9, %v6521_v5 }
0x169c   : > { %10142 = vmatpush3.bf16.msra.mxu1 %v10139_v39  ;;  %9568 = vmatprep.mubr.msk.f32.mxu1 %vm1664_vm1, %v11620_v60 }
0x169d   : > { %9566 = vmatprep.subr.mxu1 %v8648_v20 }
0x16a0   : > { %9567 = vmatpush3.msra.mxu1 %v8648_v20 }
0x16a1   : > { %9569 = vmatmul.mubr.msk.f32.vlgmr.msra.gmra.mrb[18].mxu1 %vm1664_vm1, %v11622_v9 }
0x16a2   : > { %9586 = vmatprep.mubr.msk.f32.mxu1 %vm1664_vm1, %v11577_v7 }
0x1712   : > { %v6168_v13 = vpop.xlane.xlu1 %6167 }
0x1713   : > { %v6170_v22 = vsub.f32 %v6162_v43, %v6168_v13  ;;  %v6165_v54 = vpop.xlane.xlu0 %6164 }
0x1714   : > { %v6169_v57 = vsub.f32 %v6161_v15, %v6165_v54 }
0x1715   : > { %v6173_v29 = vmul.f32 1.442695, %v6170_v22 }
0x1716   : > { %v6171_v30 = vmul.f32 1.442695, %v6169_v57 }
0x1717   : > { %10386 = vpow2.f32 %v6173_v29  ;;  %v8642_v29 = vld [vmem:[%s12084_s7 + $0x10] sm:$0x3f] }
0x1718   : > { %10388 = vpow2.f32 %v6171_v30 }
0x1721   : > { %v10387_v10 = vpop.eup %10386 }
0x1722   : > { %v10389_v46 = vpop.eup %10388  ;;  %v6178_v12 = vsel %vm2006_vm4, %v10387_v10, 0.0 }
0x1723   : > { %6179 = vadd.xlane.f32.xlu1 %v6178_v12  ;;  %v6175_v11 = vsel %vm2006_vm4, %v10389_v46, 0.0 }
0x1724   : > { %6176 = vadd.xlane.f32.xlu0 %v6175_v11 }
0x176e   : > { %v9549_v18 = vpop.f32.mrb[16].mxu1 }
0x176f   : > { %v6786_v1 = vmul.f32 0.4082483, %v9549_v18  ;;  %v6776_v4 = vpop.f32.mrb[17].mxu1 }
0x1770   : > { %v6785_v24 = vmul.f32 0.4082483, %v6776_v4 }
0x1771   : > { %v6790_v49 = vsel %vm2006_vm4, %v6786_v1, -inf }
0x1772   : > { %6791 = vmax.xlane.f32.xlu1 %v6790_v49  ;;  %v6787_v52 = vsel %vm2006_vm4, %v6785_v24, -inf  ;;  %v8661_v49 = vld [vmem:[%s12082_s5 + $0x50] sm:$0xff] }
0x1773   : > { %6788 = vmax.xlane.f32.xlu0 %v6787_v52 }
0x1774   : > { %v9570_v0 = vpop.f32.mrb[18].mxu1 }
0x1775   : > { %v11739_v2 = vadd.f32 %v9570_v0, %v11736_v42  ;;  %v11741_v21 = vpop.f32.mrb[19].mxu1 }
0x1776   : > { %v7057_v19 = vadd.f32 %v11736_v42, %v11741_v21  ;;  %v8662_v42 = vld [vmem:[%s12082_s5 + $0x58] sm:$0xff] }
0x17b0   : > { %v6180_v27 = vpop.xlane.xlu1 %6179 }
0x17b1   : > { %10390 = vrcp.f32 %v6180_v27  ;;  %v6177_v53 = vpop.xlane.xlu0 %6176 }
0x17b2   : > { %10392 = vrcp.f32 %v6177_v53  ;;  %v10550_v53 = vmov 0  }
0x17b3   : > { %10371 = vset.pattern.permute.xlu1 %v10550_v53  ;;  %10370 = vset.pattern.permute.xlu0 %v10550_v53 }
0x17bb   : > { %v10391_v44 = vpop.eup %10390 }
0x17bc   : > { %v10393_v35 = vpop.eup %10392  ;;  %v6184_v36 = vmul.f32 %v10391_v44, %v10387_v10  ;;  %v8653_v10 = vld [vmem:[%s12075_s15 + $0x48] sm:$0xff] }
0x17bd   : > { %v6183_v50 = vmul.f32 %v10393_v35, %v10389_v46  ;;  %v8654_v46 = vld [vmem:[%s12075_s15 + $0x50] sm:$0xff] }
0x17be   : > { %v10143_v12 = vpack.c.bf16 %v8654_v46, %v8653_v10  ;;  %v7549_v10 = vsel %vm1664_vm1, %v11622_v9, 0.0 }
0x17bf   : > { %9503 = vmatprep.mubr.msk.f32.mxu0 %vm2006_vm4, %v6183_v50 }
0x17c0   : > { %9504 = vmatmul.mubr.msk.f32.vlgmr.msra.gmra.mrb[12].mxu0 %vm2006_vm4, %v6184_v36 }
0x17c1   : > { %9507 = vmatpush3.msk.msra.mxu0 %vm6274_vm11, %v8608_v3 }
0x17c2   : > { %9511 = vmatprep.subr.msk.mxu0 %vm6274_vm11, %v5812_v62 }
0x17ff   : > { %v6792_v51 = vpop.xlane.xlu1 %6791 }
0x1800   : > { %v6794_v55 = vsub.f32 %v6786_v1, %v6792_v51  ;;  %v6789_v43 = vpop.xlane.xlu0 %6788 }
0x1801   : > { %v6793_v32 = vsub.f32 %v6785_v24, %v6789_v43  ;;  %v8660_v24 = vld [vmem:[%s12082_s5 + $0x48] sm:$0xff] }
0x1802   : > { %v6797_v15 = vmul.f32 1.442695, %v6794_v55  ;;  %v10147_v52 = vpack.c.bf16 %v8661_v49, %v8660_v24 }
0x1803   : > { %v6795_v48 = vmul.f32 1.442695, %v6793_v32 }
0x1804   : > { %10394 = vpow2.f32 %v6797_v15  ;;  %10148 = vmatprep.subr.bf16.mxu1 %v10147_v52 }
0x1805   : > { %10396 = vpow2.f32 %v6795_v48  ;;  %10150 = vmatpush3.bf16.msra.mxu1 %v10147_v52 }
0x1806   : > { %9584 = vmatprep.subr.mxu1 %v8662_v42 }
0x1809   : > { %9585 = vmatpush3.msra.mxu1 %v8662_v42 }
0x180a   : > { %9587 = vmatmul.mubr.msk.f32.vlgmr.msra.gmra.mrb[20].mxu1 %vm1664_vm1, %v11581_v47 }
0x180e   : > { %v10395_v61 = vpop.eup %10394 }
0x180f   : > { %v10397_v56 = vpop.eup %10396  ;;  %v6802_v8 = vsel %vm2006_vm4, %v10395_v61, 0.0 }
0x1810   : > { %6803 = vadd.xlane.f32.xlu1 %v6802_v8  ;;  %v6799_v31 = vsel %vm2006_vm4, %v10397_v56, 0.0 }
0x1811   : > { %6800 = vadd.xlane.f32.xlu0 %v6799_v31 }
0x1893   : > { %v9505_v59 = vpop.f32.mrb[12].mxu0 }
0x1894   : > { %v6257_v14 = vpop.f32.mrb[13].mxu0 }
0x1895   : > { %9508 = vmatprep.mubr.msk.f32.mxu0 %vm5619_vm9, %v6257_v14 }
0x1896   : > { %9509 = vmatmul.mubr.msk.f32.vlgmr.msra.gmra.mrb[14].mxu0 %vm5619_vm9, %v9505_v59 }
0x1897   : > { %9512 = vmatpush3.msk.msra.mxu0 %vm6274_vm11, %v5812_v62  ;;  %9513 = vmatprep.mubr.msk.f32.mxu0 %vm5619_vm9, %v11689_v26 }
0x1898   : > { %10126 = vmatprep.subr.bf16.mxu0 %v10125_v28 }
0x189d   : > { %v6804_v39 = vpop.xlane.xlu1 %6803 }
0x189e   : > { %v6801_v38 = vpop.xlane.xlu0 %6800  ;;  %9514 = vmatmul.mubr.msk.f32.vlgmr.msra.gmra.mrb[14].mxu0 %vm5619_vm9, %v11687_v25  ;;  %v8633_v25 = vld [vmem:[%s12083_s29 + $0x2] ss:$0 sm:$0xff] }
0x189f   : > { %10398 = vrcp.f32 %v6801_v38  ;;  %10128 = vmatpush3.bf16.msra.mxu0 %v10125_v28  ;;  %9540 = vmatprep.mubr.msk.f32.mxu0 %vm1664_vm1, %v11577_v7 }
0x18a0   : > { %9538 = vmatprep.subr.mxu0 %v8631_v23  ;;  %10400 = vrcp.f32 %v6804_v39  ;;  %v8679_v39 = vld [vmem:[%s12086_s23 + $0x20] sm:$0xff] }
0x18a3   : > { %9539 = vmatpush3.msra.mxu0 %v8631_v23 }
0x18a4   : > { %9541 = vmatmul.mubr.msk.f32.vlgmr.msra.gmra.mrb[16].mxu0 %vm1664_vm1, %v11581_v47 }
0x18a9   : > { %v10399_v34 = vpop.eup %10398 }
0x18aa   : > { %v6807_v26 = vmul.f32 %v10399_v34, %v10397_v56  ;;  %v10401_v57 = vpop.eup %10400  ;;  %v8664_v56 = vld [vmem:[%s12083_s29 + $0x3] ss:$0 sm:$0xff] }
0x18ab   : > { %v6808_v30 = vmul.f32 %v10401_v57, %v10395_v61  ;;  %v10552_v57 = vmov 0.0  }
0x18ac   : > { %9554 = vmatprep.mubr.msk.f32.mxu0 %vm2006_vm4, %v6807_v26  ;;  %v8678_v26 = vld [vmem:[%s12085_s18 + $0x18] sm:$0xff] }
0x18dd   : > { %v9588_v61 = vpop.f32.mrb[20].mxu1 }
0x18de   : > { %v7236_v8 = vadd.f32 %v9588_v61, %v8664_v56  ;;  %v7230_v31 = vpop.f32.mrb[21].mxu1 }
0x18df   : > { %v7231_v62 = vadd.f32 %v8664_v56, %v7230_v31  ;;  %v8683_v56 = vld [vmem:[%s12086_s23 + $0x30] sm:$0xff] }
0x18e1   : > { %v10157_v63 = vpack.c.bf16 %v7236_v8, %v7231_v62  ;;  %v8684_v8 = vld [vmem:[%s12086_s23 + $0x38] sm:$0xff] }
0x18e3   : > { %10158 = vmatprep.subr.bf16.mxu1 %v10157_v63 }
0x18e4   : > { %10160 = vmatpush3.bf16.msra.mxu1 %v10157_v63 }
0x1977   : > { %v9542_v5 = vpop.f32.mrb[16].mxu0 }
0x1978   : > { %v6695_v20 = vadd.f32 %v9542_v5, %v8633_v25  ;;  %v6689_v13 = vpop.f32.mrb[17].mxu0  ;;  %v10551_v5 = vmov 0.0|0.0  }
0x1979   : > { %v6690_v22 = vadd.f32 %v8633_v25, %v6689_v13  ;;  %v10162_v25 = vpack.c.bf16 %v8679_v39, %v8678_v26  ;;  %10161 = vmatprep.subr.bf16.mxu1 %v10551_v5  ;;  %v7568_v13 = vld [vmem:[%s12086_s23 + $0x8] sm:$0xff] }
0x197b   : > { %v10135_v54 = vpack.c.bf16 %v6695_v20, %v6690_v22  ;;  %v7567_v20 = vld [vmem:[%s12086_s23] sm:$0xff] }
0x197c   : > { %v10165_v22 = vpack.c.bf16 %v7568_v13, %v7567_v20  ;;  %v8692_v20 = vld [vmem:[%s12086_s23 + $0x68] sm:$0xff] }
0x197d   : > { %10136 = vmatprep.subr.bf16.mxu0 %v10135_v54 }
0x197e   : > { %10138 = vmatpush3.bf16.msra.mxu0 %v10135_v54  ;;  %v8680_v54 = vld [vmem:[%s12086_s23 + $0x28] sm:$0xff] }
0x197f   : > { %9557 = vmatprep.subr.msk.mxu0 %vm6274_vm11, %v8642_v29 }
0x1981   : > { %9555 = vmatmul.mubr.msk.f32.vlgmr.msra.gmra.mrb[18].mxu0 %vm2006_vm4, %v6808_v30  ;;  %v7548_v30 = vsel %vm1664_vm1, %v11620_v60, 0.0 }
0x1982   : > { %9558 = vmatpush3.msk.msra.mxu0 %vm6274_vm11, %v8642_v29  ;;  %v7569_v29 = vld [vmem:[%s12086_s23 + $0x10] sm:$0xff] }
0x1983   : > { %10144 = vmatprep.subr.bf16.mxu0 %v10143_v12 }
0x1a54   : > { %v9556_v11 = vpop.f32.mrb[18].mxu0 }
0x1a55   : > { %v6881_v45 = vpop.f32.mrb[19].mxu0 }
0x1a56   : > { %9559 = vmatprep.mubr.msk.f32.mxu0 %vm5619_vm9, %v6881_v45 }
0x1a57   : > { %9560 = vmatmul.mubr.msk.f32.vlgmr.msra.gmra.mrb[14].mxu0 %vm5619_vm9, %v9556_v11 }
0x1a58   : > { %10146 = vmatpush3.bf16.msra.mxu0 %v10143_v12  ;;  %9577 = vmatprep.mubr.msk.f32.mxu0 %vm1664_vm1, %v11577_v7  ;;  %v7550_v12 = vadd.f32 %v7549_v10, %v7548_v30  ;;  %v8689_v10 = vld [vmem:[%s12086_s23 + $0x58] sm:$0xff] }
0x1a59   : > { %9575 = vmatprep.subr.mxu0 %v8655_v33 }
0x1a5c   : > { %9576 = vmatpush3.msra.mxu0 %v8655_v33  ;;  %v8677_v33 = vld [vmem:[%s12087_s22] ss:$0 sm:$0xff] }
0x1a5d   : > { %9578 = vmatmul.mubr.msk.f32.vlgmr.msra.gmra.mrb[20].mxu0 %vm1664_vm1, %v11581_v47 }
0x1a5e   : > { %9593 = vmatprep.mubr.msk.f32.mxu0 %vm5619_vm9, %v7057_v19  ;;  %v7558_v19 = vsel %vm1664_vm1, %v11620_v60, -inf }
0x1b30   : > { %v9579_v16 = vpop.f32.mrb[20].mxu0 }
0x1b31   : > { %v7149_v17 = vadd.f32 %v9579_v16, %v8657_v40  ;;  %v7143_v18 = vpop.f32.mrb[21].mxu0  ;;  %v7551_v16 = vrot.slane %v7550_v12, 4 }
0x1b32   : > { %v7144_v1 = vadd.f32 %v8657_v40, %v7143_v18  ;;  %v7559_v40 = vsel %vm1664_vm1, %v11622_v9, -inf }
0x1b33   : > { %v7560_v24 = vmax.f32 %v7558_v19, %v7559_v40  ;;  %v7958_v19 = vld [vmem:[%s12088_s12 + $0x8] sm:$0xff] }
0x1b34   : > { %v10151_v4 = vpack.c.bf16 %v7149_v17, %v7144_v1 }
0x1b36   : > { %10153 = vmatprep.subr.msk.bf16.mxu0 %vm11635_vm10, %v10151_v4 }
0x1b37   : > { %10156 = vmatpush3.bf16.xpose.msk.msra.mxu0 %vm11635_vm10, %v10151_v4 }
0x1b38   : > { %9603 = vmatprep.subr.msk.mxu0 %vm6274_vm11, %v8673_v58 }
0x1b3e   : > { %9594 = vmatmul.mubr.msk.f32.vlgmr.msra.gmra.mrb[22].mxu0 %vm5619_vm9, %v11739_v2 }
0x1b3f   : > { %9604 = vmatpush3.msk.msra.mxu0 %vm6274_vm11, %v8673_v58  ;;  %v8687_v58 = vld [vmem:[%s12086_s23 + $0x48] sm:$0xff] }
0x1b40   : > { %10164 = vmatprep.subr.bf16.mxu0 %v10551_v5 }
0x1c11   : > { %v9595_v0 = vpop.f32.mrb[22].mxu0 }
0x1c12   : > { %v7327_v21 = vmul.f32 0.4082483, %v9595_v0  ;;  %v7317_v3 = vpop.f32.mrb[23].mxu0  ;;  %v7552_v0 = vadd.f32 %v7551_v16, %v7550_v12  ;;  %v7959_v16 = vld [vmem:[%s12088_s12 + $0x10] sm:$0xff] }
0x1c13   : > { %v7326_v27 = vmul.f32 0.4082483, %v7317_v3 }
0x1c14   : > { %v7331_v6 = vsel %vm2006_vm4, %v7327_v21, -inf }
0x1c15   : > { %7332 = vmax.xlane.f32.xlu1 %v7331_v6  ;;  %v7328_v2 = vsel %vm2006_vm4, %v7326_v27, -inf  ;;  %v7561_v6 = vrot.slane %v7560_v24, 4 }
0x1c16   : > { %7329 = vmax.xlane.f32.xlu0 %v7328_v2 }
0x1ca2   : > { %v7333_v44 = vpop.xlane.xlu1 %7332 }
0x1ca3   : > { %v7335_v35 = vsub.f32 %v7327_v21, %v7333_v44  ;;  %v7330_v50 = vpop.xlane.xlu0 %7329  ;;  %v7553_v44 = vrot.slane %v7552_v0, 2 }
0x1ca4   : > { %v7334_v36 = vsub.f32 %v7326_v27, %v7330_v50 }
0x1ca5   : > { %v7338_v51 = vmul.f32 1.442695, %v7335_v35 }
0x1ca6   : > { %v7336_v55 = vmul.f32 1.442695, %v7334_v36 }
0x1ca7   : > { %10402 = vpow2.f32 %v7338_v51  ;;  %v7562_v51 = vmax.f32 %v7560_v24, %v7561_v6  ;;  %v8047_v6 = vld [vmem:[%s12089_s1 + $0x28] sm:$0xff] }
0x1ca8   : > { %10404 = vpow2.f32 %v7336_v55 }
0x1ca9   : > { %v7563_v31 = vrot.slane %v7562_v51, 2 }
0x1cb1   : > { %v10403_v43 = vpop.eup %10402 }
0x1cb2   : > { %v10405_v32 = vpop.eup %10404  ;;  %v7343_v15 = vsel %vm2006_vm4, %v10403_v43, 0.0 }
0x1cb3   : > { %7344 = vadd.xlane.f32.xlu1 %v7343_v15  ;;  %v7340_v48 = vsel %vm2006_vm4, %v10405_v32, 0.0 }
0x1cb4   : > { %7341 = vadd.xlane.f32.xlu0 %v7340_v48 }
0x1cc4   : > { %5344 = vperm.xlu1 %10371, %v11645_v37  }
0x1cca   : > { %5339 = vperm.xlu0 %10370, %v11647_v41  }
0x1d40   : > { %v7345_v59 = vpop.xlane.xlu1 %7344 }
0x1d41   : > { %10406 = vrcp.f32 %v7345_v59  ;;  %v7342_v14 = vpop.xlane.xlu0 %7341  ;;  %v8688_v59 = vld [vmem:[%s12086_s23 + $0x50] sm:$0xff] }
0x1d42   : > { %10408 = vrcp.f32 %v7342_v14 }
0x1d44   : > { %v5345_v11 = vpop.permute.xlu1 %5344 }
0x1d45   : > { %v5348_v17 = vmul.f32 %v5345_v11, %v11581_v47  ;;  %v8693_v11 = vld [vmem:[%s12086_s23 + $0x70] sm:$0xff] }
0x1d47   : > { %v5350_v60 = vsel %vm1664_vm1, %v5348_v17, 0.0  ;;  %v7960_v17 = vld [vmem:[%s12088_s12 + $0x18] sm:$0xff] }
0x1d49   : > { %v5340_v46 = vpop.permute.xlu0 %5339 }
0x1d4a   : > { %v5347_v45 = vmul.f32 %v5340_v46, %v11577_v7 }
0x1d4b   : > { %v10407_v37 = vpop.eup %10406 }
0x1d4c   : > { %v10409_v28 = vpop.eup %10408  ;;  %v7349_v38 = vmul.f32 %v10407_v37, %v10403_v43  ;;  %v5349_v49 = vsel %vm1664_vm1, %v5347_v45, 0.0  ;;  %v10168_v37 = vpack.c.bf16 %v8684_v8, %v8683_v56  ;;  %v7954_v56 = vld [vmem:[%s12090_s26] sm:$0x1] }
0x1d4d   : > { %v7348_v23 = vmul.f32 %v10409_v28, %v10405_v32  ;;  %v5351_v3 = vadd.f32 %v5350_v60, %v5349_v49  ;;  %v7554_v32 = vadd.f32 %v7553_v44, %v7552_v0  ;;  %v7963_v49 = vld [vmem:[%s12088_s12 + $0x30] sm:$0xff]  ;;  %v8042_v0 = vld [vmem:[%s12089_s1] sm:$0xff]  ;;  %v8043_v60 = vld [vmem:[%s12089_s1 + $0x8] sm:$0xff] }
0x1d4f   : > { %9600 = vmatprep.mubr.msk.f32.mxu1 %vm2006_vm4, %v7348_v23  ;;  %v5352_v35 = vrot.slane %v5351_v3, 4  ;;  %v7555_v14 = vrot.slane %v7554_v32, 1 }
0x1d50   : > { %9601 = vmatmul.mubr.msk.f32.vlgmr.msra.gmra.mrb[22].mxu1 %vm2006_vm4, %v7349_v38 }
0x1d51   : > { %10163 = vmatpush3.bf16.msra.mxu1 %v10162_v25  ;;  %9614 = vmatprep.mubr.msk.f32.mxu1 %vm10553_vm12, %v10552_v57  ;;  %v5353_v15 = vadd.f32 %v5352_v35, %v5351_v3  ;;  %v7556_v39 = vadd.f32 %v7555_v14, %v7554_v32  ;;  %v8691_v25 = vld [vmem:[%s12086_s23 + $0x60] sm:$0xff]  ;;  %v8045_v3 = vld [vmem:[%s12089_s1 + $0x18] sm:$0xff] }
0x1d52   : > { %9612 = vmatprep.subr.mxu1 %v10552_v57  ;;  %v8050_v14 = vld [vmem:[%s12089_s1 + $0x40] sm:$0xff] }
0x1d53   : > { %v5354_v28 = vrot.slane %v5353_v15, 2  ;;  %v7557_v30 = vmul.f32 0.0625, %v7556_v39 }
0x1d55   : > { %9613 = vmatpush3.msra.mxu1 %v8680_v54  ;;  %v5355_v13 = vadd.f32 %v5354_v28, %v5353_v15 }
0x1d56   : > { %10167 = vmatprep.subr.bf16.mxu1 %v10551_v5 }
0x1d57   : > { %v5356_v46 = vrot.slane %v5355_v13, 1 }
0x1d59   : > { %v5357_v45 = vadd.f32 %v5356_v46, %v5355_v13 }
0x1e23   : > { %v9602_v41 = vpop.f32.mrb[22].mxu1 }
0x1e24   : > { %v7422_v34 = vpop.f32.mrb[23].mxu1 }
0x1e25   : > { %9605 = vmatprep.mubr.msk.f32.mxu0 %vm5619_vm9, %v7422_v34  ;;  %v10171_v34 = vpack.c.bf16 %v8688_v59, %v8687_v58  ;;  %v8049_v58 = vld [vmem:[%s12089_s1 + $0x38] sm:$0xff] }
0x1e26   : > { %9606 = vmatmul.mubr.msk.f32.vlgmr.msra.gmra.mrb[14].mxu0 %vm5619_vm9, %v9602_v41  ;;  %v7564_v41 = vmax.f32 %v7562_v51, %v7563_v31 }
0x1e27   : > { %10166 = vmatpush3.bf16.msra.mxu0 %v10165_v22  ;;  %9623 = vmatprep.mubr.msk.f32.mxu0 %vm10553_vm12, %v10552_v57  ;;  %v8685_v22 = vld [vmem:[%s12086_s23 + $0x40] sm:$0xff] }
0x1e28   : > { %9621 = vmatprep.subr.mxu0 %v10552_v57  ;;  %v7565_v54 = vrot.slane %v7564_v41, 1 }
0x1e2a   : > { %v7566_v12 = vmax.f32 %v7564_v41, %v7565_v54 }
0x1e2b   : > { %9622 = vmatpush3.msra.mxu0 %v7569_v29  ;;  %v10174_v29 = vpack.c.bf16 %v8692_v20, %v8691_v25 }
0x1e2c   : > { %10170 = vmatprep.subr.bf16.mxu0 %v10551_v5 }
0x1ef9   : > { %v9607_v18 = vpop.f32.mrb[14].mxu0 }
0x1efa   : > { %v7527_v1 = vadd.f32 %v9607_v18, %v8677_v33  ;;  %v7508_v4 = vpop.f32.mrb[15].mxu0  ;;  %v10180_v18 = vpack.c.bf16 %v7960_v17, %v7959_v16 }
0x1efb   : > { %v7526_v52 = vadd.f32 %v8677_v33, %v7508_v4  ;;  %v7957_v33 = vld [vmem:[%s12088_s12] sm:$0xff]  ;;  %v7962_v4 = vld [vmem:[%s12088_s12 + $0x28] sm:$0xff] }
0x1efc   : > { %v7529_v42 = vsel %vm1664_vm1, %v7527_v1, 0.0  ;;  %v7540_v7 = vsel %vm1664_vm1, %v7527_v1, -inf  ;;  %v10177_v40 = vpack.c.bf16 %v7958_v19, %v7957_v33  ;;  %v7961_v1 = vld [vmem:[%s12088_s12 + $0x20] sm:$0xff] }
0x1efd   : > { %v7528_v21 = vsel %vm1664_vm1, %v7526_v52, 0.0  ;;  %v7539_v9 = vsel %vm1664_vm1, %v7526_v52, -inf  ;;  %v10183_v24 = vpack.c.bf16 %v7962_v4, %v7961_v1  ;;  %v7964_v52 = vld [vmem:[%s12088_s12 + $0x38] sm:$0xff] }
0x1efe   : > { %v7530_v47 = vadd.f32 %v7529_v42, %v7528_v21  ;;  %v7541_v27 = vmax.f32 %v7539_v9, %v7540_v7  ;;  %v10186_v42 = vpack.c.bf16 %v7964_v52, %v7963_v49  ;;  %v7965_v7 = vld [vmem:[%s12088_s12 + $0x40] sm:$0xff]  ;;  %v8044_v21 = vld [vmem:[%s12089_s1 + $0x10] sm:$0xff]  ;;  %v10189_v9 = vpack.c.bf16 %v8043_v60, %v8042_v0 }
0x1f00   : > { %v7531_v2 = vrot.slane %v7530_v47, 4  ;;  %v7542_v53 = vrot.slane %v7541_v27, 4 }
0x1f02   : > { %v7532_v50 = vadd.f32 %v7531_v2, %v7530_v47  ;;  %v7543_v36 = vmax.f32 %v7541_v27, %v7542_v53  ;;  %v10192_v47 = vpack.c.bf16 %v8045_v3, %v8044_v21  ;;  %v8046_v27 = vld [vmem:[%s12089_s1 + $0x20] sm:$0xff] }
0x1f03   : > { %v10195_v2 = vpack.c.bf16 %v8047_v6, %v8046_v27 }
0x1f04   : > { %v7533_v55 = vrot.slane %v7532_v50, 2  ;;  %v7544_v43 = vrot.slane %v7543_v36, 2 }
0x1f06   : > { %v7534_v48 = vadd.f32 %v7533_v55, %v7532_v50  ;;  %v7545_v61 = vmax.f32 %v7543_v36, %v7544_v43 }
0x1f08   : > { %v7535_v62 = vrot.slane %v7534_v48, 1  ;;  %v7546_v63 = vrot.slane %v7545_v61, 1 }
0x1f0a   : > { %v7547_v23 = vmax.f32 %v7545_v61, %v7546_v63  ;;  %v7536_v38 = vadd.f32 %v7535_v62, %v7534_v48  ;;  %v8048_v63 = vld [vmem:[%s12089_s1 + $0x30] sm:$0xff] }
0x1f0b   : > { %v10198_v59 = vpack.c.bf16 %v8049_v58, %v8048_v63 }
0x1f0c   : > { %9615 = vmatmul.mubr.msk.f32.vlgmr.msra.gmra.mrb[24].mxu1 %vm1664_vm1, %v7547_v23  ;;  %v7538_v26 = vmul.f32 0.0625, %v7536_v38 }
0x1f0d   : > { %10169 = vmatpush3.bf16.msra.mxu1 %v10168_v37  ;;  %9632 = vmatprep.mubr.msk.f32.mxu1 %vm10553_vm12, %v10552_v57  ;;  %v7966_v37 = vld [vmem:[%s12091_s25] sm:$0x1] }
0x1f0e   : > { %9624 = vmatmul.mubr.msk.f32.vlgmr.msra.gmra.mrb[24].mxu0 %vm1664_vm1, %v7538_v26  ;;  %9630 = vmatprep.subr.mxu1 %v10552_v57 }
0x1f0f   : > { %10172 = vmatpush3.bf16.msra.mxu0 %v10171_v34  ;;  %9641 = vmatprep.mubr.msk.f32.mxu0 %vm10553_vm12, %v10552_v57  ;;  %v8051_v34 = vld [vmem:[%s12092_s3] sm:$0x1] }
0x1f10   : > { %9639 = vmatprep.subr.mxu0 %v10552_v57 }
0x1f11   : > { %9631 = vmatpush3.msra.mxu1 %v8685_v22 }
0x1f12   : > { %9633 = vmatmul.mubr.msk.f32.vlgmr.msra.gmra.mrb[26].mxu1 %vm1664_vm1, %v7557_v30  ;;  %10173 = vmatprep.subr.bf16.mxu1 %v10551_v5 }
0x1f13   : > { %9640 = vmatpush3.msra.mxu0 %v8689_v10  ;;  %10175 = vmatpush3.bf16.msra.mxu1 %v10174_v29 }
0x1f14   : > { %9642 = vmatmul.mubr.msk.f32.vlgmr.msra.gmra.mrb[26].mxu0 %vm1664_vm1, %v7566_v12  ;;  %9648 = vmatprep.subr.mxu1 %v10552_v57 }
0x1f15   : > { %9650 = vmatprep.mubr.msk.f32.mxu1 %vm10553_vm12, %v10552_v57  ;;  %10176 = vmatprep.subr.bf16.mxu0 %v10551_v5 }
0x1f16   : > { %9671 = vmatprep.mubr.msk.f32.mxu0 %vm10553_vm12, %v10552_v57  ;;  %10178 = vmatpush3.bf16.msra.mxu0 %v10177_v40 }
0x1f17   : > { %9649 = vmatpush3.msra.mxu1 %v8693_v11  ;;  %10179 = vmatprep.subr.bf16.mxu0 %v10551_v5 }
0x1f18   : > { %9651 = vmatmul.mubr.msk.f32.vlgmr.msra.gmra.mrb[28].mxu1 %vm1664_vm1, %v5357_v45  ;;  %10188 = vmatprep.subr.bf16.mxu1 %v10551_v5 }
0x1f19   : > { %9692 = vmatprep.mubr.msk.f32.mxu1 %vm10553_vm12, %v10552_v57  ;;  %10190 = vmatpush3.bf16.msra.mxu1 %v10189_v9 }
0x1f1a   : > { %10181 = vmatpush3.bf16.msra.mxu0 %v10180_v18  ;;  %10191 = vmatprep.subr.bf16.mxu1 %v10551_v5 }
0x1f1b   : > { %10182 = vmatprep.subr.bf16.mxu0 %v10551_v5 }
0x1f1d   : > { %10193 = vmatpush3.bf16.msra.mxu1 %v10192_v47 }
0x1f1e   : > { %10184 = vmatpush3.bf16.msra.mxu0 %v10183_v24  ;;  %10194 = vmatprep.subr.bf16.mxu1 %v10551_v5 }
0x1f1f   : > { %10185 = vmatprep.subr.bf16.mxu0 %v10551_v5 }
0x1f21   : > { %10196 = vmatpush3.bf16.msra.mxu1 %v10195_v2 }
0x1f22   : > { %10187 = vmatpush3.bf16.msra.mxu0 %v10186_v42  ;;  %10197 = vmatprep.subr.bf16.mxu1 %v10551_v5 }
0x1f23   : > { %9669 = vmatprep.subr.mxu0 %v10552_v57 }
0x1f25   : > { %10199 = vmatpush3.bf16.msra.mxu1 %v10198_v59 }
0x1f26   : > { %9670 = vmatpush3.msra.mxu0 %v7965_v7  ;;  %9690 = vmatprep.subr.mxu1 %v10552_v57 }
0x1f29   : > { %9691 = vmatpush3.msra.mxu1 %v8050_v14 }
0x1fdf   : > { %v7643_v53 = vpop.f32.mrb[24].mxu1 }
0x1fe0   : > { %v9616_v44 = vpop.f32.mrb[25].mxu1 }
0x1fe1   : > { %v7716_v35 = vpop.f32.mrb[24].mxu0 }
0x1fe2   : > { %v7717_v50 = vadd.f32 %v7716_v35, %v7643_v53  ;;  %v9625_v36 = vpop.f32.mrb[25].mxu0 }
0x1fe5   : > { %v7793_v51 = vpop.f32.mrb[26].mxu1 }
0x1fe6   : > { %v7797_v55 = vadd.f32 %v7793_v51, %v7717_v50  ;;  %v9634_v43 = vpop.f32.mrb[27].mxu1 }
0x1fe7   : > { %v7871_v32 = vpop.f32.mrb[26].mxu0 }
0x1fe8   : > { %v7875_v15 = vadd.f32 %v7871_v32, %v7797_v55  ;;  %v9643_v48 = vpop.f32.mrb[27].mxu0 }
0x1feb   : > { %v7949_v61 = vpop.f32.mrb[28].mxu1 }
0x1fec   : > { %v7953_v8 = vadd.f32 %v7949_v61, %v7875_v15  ;;  %v9652_v31 = vpop.f32.mrb[29].mxu1 }
0x1fee   : > { %v7955_v5 = vadd.f32 %v7954_v56, %v7953_v8 }
0x1ff0   : > { %v7956_v62 = vmax.f32 %v7955_v5, 0.0 }
0x1ff2   : > { %9672 = vmatmul.mubr.msk.f32.vlgmr.msra.gmra.mrb[28].mxu0 %vm7967_vm13, %v7956_v62 }
0x20c5   : > { %v8037_v28 = vpop.f32.mrb[28].mxu0 }
0x20c6   : > { %v8038_v23 = vadd.f32 %v8037_v28, %v7966_v37  ;;  %v9673_v38 = vpop.f32.mrb[29].mxu0 }
0x20c8   : > { %v8041_v41 = vmax.f32 %v8038_v23, 0.0 }
0x20ca   : > { %9693 = vmatmul.mubr.msk.f32.vlgmr.msra.gmra.mrb[30].mxu1 %vm7967_vm13, %v8041_v41 }
0x219d   : > { %v8121_v26 = vpop.f32.mrb[30].mxu1 }
0x219e   : > { %v8122_v39 = vadd.f32 %v8121_v26, %v8051_v34  ;;  %v9694_v25 = vpop.f32.mrb[31].mxu1 }
0x21a0   : > { %8126 = vst.msk [vmem:[%s10905_s19] sm:$0x1] %vm8125_vm14, %v8122_v39 }
0x21a1 PF: > { %s12093_s8 = sld [smem:[#allocation47_spill]]  ;;  %s8140_s10 = sshll.u32 %s10905_s19, 4  ;;  %s8141_s10 = int_to_ptr.vmem [resolvable:$true] %s8140_s10 }
0x21a2   : > { %s12094_s9 = sld [smem:[#allocation44_spill]]  ;;  %s12096_s27 = sand.u32 1, %s10480_s16  }
0x21a3   : > { %s8128_s18 = scalar_lea.sflag [#allocation5], %s12096_s27  ;;  %s10410_s22 = scalar_lea.vmem %s8141_s10, 16 }
0x21a4   : > { %p10411_p2 = scmp.ne.s32.totalorder %s8141_s10, %s10410_s22  ;;  %s10554_s26 = smov [#allocation4]  }
0x21a5   : > { %s10414_s25 = sshll.u32 %s10554_s26, 4  ;;  %s10415_s25 = int_to_ptr.vmem [resolvable:$false] %s10414_s25 }
0x21a6   : > { %p10412_p4 = pnand %p10411_p2, %p10822_p3  ;;  %s10416_s3 = scalar_lea.vmem %s10415_s25, 32 }
0x21a7   : > { %s8697_s21 = sshll.u32 %s12093_s8, 4  ;;  %p10417_p6 = scmp.lt.s32.totalorder %s8141_s10, %s10415_s25 }
0x21a8   : > { %s11905_s28 = scalar_lea.hbm %s12094_s9, %s8697_s21  ;;  %p10413_p5 = pneg %p10412_p4 }
0x21a9   : > { %p10418_p7 = scmp.lt.s32.totalorder %s10416_s3, %s10410_s22 }
0x21ab   : > { %p10419_p8 = por %p10418_p7, %p10417_p6 }
0x21ad   : > { %p10420_p10 = pnand %p10419_p8, %p10413_p5 }
0x21af   : > { %10423 = shalt.err (!%p10420_p10)
}
0x21b0   : > { %s10424_s19 = scalar_lea.hbm %s11905_s28, 16  ;;  %s10428_s8 = scalar_lea.hbm %s12094_s9, 32 }
0x21b1   : > { %p10425_p11 = scmp.ne.s32.totalorder %s11905_s28, %s10424_s19  ;;  %p10429_p0 = scmp.lt.u32.totalorder %s11905_s28, %s12094_s9 }
0x21b2   : > { %p10430_p1 = scmp.lt.u32.totalorder %s10428_s8, %s10424_s19  ;;  %p10432_p4 = scmp.lt.u32.totalorder %s10424_s19, %s11905_s28 }
0x21b3   : > { %p10426_p12 = pnand %p10425_p11, %p10822_p3 }
0x21b4   : > { %p10431_p2 = por %p10430_p1, %p10429_p0 }
0x21b5   : > { %p10427_p13 = pneg %p10426_p12 }
0x21b6   : > { %p10433_p6 = por %p10432_p4, %p10431_p2 }
0x21b8   : > { %p10434_p5 = pnand %p10433_p6, %p10427_p13 }
0x21ba   : > { %10437 = shalt.err (!%p10434_p5)
}
0x21bb   : > { %10214 = dma.vmem_to_hbm [thread:$0]  (%p10822_p3), %s8141_s10, 16, %s11905_s28, %s8128_s18  }
0x21bc PF: > { %s12097_s21 = sld [smem:[#allocation50_spill]]  ;;  %s12098_s27 = sld [smem:[#allocation45_spill]] }
0x21c2   : > { %p10220_p7 = scmp.ge.s32.totalorder %s12097_s21, 2  ;;  %s8152_s26 = sand.u32 1, %s12098_s27  }
0x21c3   : > { %s8153_s25 = scalar_lea.sflag [#allocation5], %s8152_s26 }
0x21c4   : > { %p10217_p8 = pnand %p10220_p7, %p10832_p9 }
0x21c6   : > { %10471 = dma.done.wait (!%p10217_p8), %s8153_s25, 16  }
0x21c7   : > { %10473 = vsyncadd (!%p10217_p8), %s8153_s25, 4294967280  ;;  %s100_s28 = sadd.s32 1, %s12097_s21   ;;  %s12100_s3 = sld [smem:[#allocation46_spill]] }
0x21c8   : > { %p97_p10 = scmp.ge.s32.totalorder %s100_s28, 8   ;;  %s12101_s18 = sld [smem:[#allocation55_spill]] }
0x21c9   : > { %s12102_s17 = sld [smem:[#allocation48_spill]]  ;;  %s12103_s22 = sld [smem:[#allocation49_spill]] }
0x21ca   : > { %s12104_s26 = sld [smem:[#allocation51_spill]]  ;;  %s12105_s21 = sld [smem:[#allocation53_spill]] }
0x21cb   : > { %s12106_s27 = smov %s10480_s16  ;;  %99 = sbr.rel (!%p97_p10) target bundleno = 90 (0x5a), region = 363 }
0x21cd   : > { %s12107_s16 = smov %s12100_s3 }
0x21d2   :  { %8157 = vsyncpa [#allocation5], 1 }
0x21d3   :  { %8159 = vsyncpa [#allocation5 + $0x1], 1 }

</bundles_post_ra>
